<compile_context>
chip_gen: v7x
topology: tpu7x:2x2x1
jax: 0.10.0
libtpu: 0.0.40
codegen_flags: <defaults>
</compile_context>

<pallas_src>
import functools

import jax
import jax.numpy as jnp
from jax import lax
from jax.experimental import pallas as pl
from jax.experimental.pallas import tpu as pltpu

_EPS = 1e-12  # matches F.normalize default eps (denominator = max(norm, eps))

_PARALLEL_1D = pltpu.CompilerParams(dimension_semantics=("parallel",))


# ----------------------------------------------------------------------------
# Kernel 1: fused base_model + NetVLAD + region aggregation + normalisation.
# One grid step processes one tuple (anchor + pairs); everything stays in VMEM.
# ----------------------------------------------------------------------------
def _make_region_vlad_kernel(per_tuple, P, K, Cf):
    NQ = per_tuple * 4  # quarters per tuple

    def kernel(x_ref, wb_ref, bb_ref, wv_ref, cent_ref, out_ref):
        # ---- base_model stand-in: 1x1 conv + ReLU on every position of the tuple
        x = x_ref[0].astype(jnp.float32)                                # (NQ*P, Cin)
        feat = jnp.dot(x, wb_ref[...], preferred_element_type=jnp.float32)
        feat = jnp.maximum(feat + bb_ref[...], 0.0)                     # (NQ*P, Cf)

        # ---- NetVLAD: per-position L2 normalise + 1x1-conv soft-assign softmax
        nrm = jnp.sqrt(jnp.sum(feat * feat, axis=-1, keepdims=True))
        xn = feat / jnp.maximum(nrm, _EPS)                              # (NQ*P, Cf)
        logits = jnp.dot(xn, wv_ref[...], preferred_element_type=jnp.float32)
        m = jnp.max(logits, axis=-1, keepdims=True)
        e = jnp.exp(logits - m)
        a = e / jnp.sum(e, axis=-1, keepdims=True)                      # (NQ*P, K)

        cent = cent_ref[...].astype(jnp.float32)                        # (K, Cf)

        # ---- per-quarter VLAD aggregation (statically unrolled; NQ is small)
        quarter_vlads = []
        for q in range(NQ):
            lo = q * P
            aq = a[lo:lo + P, :]                                        # (P, K)
            xq = xn[lo:lo + P, :]                                       # (P, Cf)
            # vlad[k, c] = sum_p a[p, k] * xn[p, c]
            v = lax.dot_general(aq, xq, (((0,), (0,)), ((), ())),
                                preferred_element_type=jnp.float32)     # (K, Cf)
            # sum_p a[p, k] via a VPU/XLU reduction (no ones-matmul / MXU push)
            asum = jnp.sum(aq, axis=0, keepdims=True)                   # (1, K)
            quarter_vlads.append(v - asum.T * cent)                     # (K, Cf)

        # ---- 9 regions per image (global, 4 halves, 4 quarters) + both norms
        for j in range(per_tuple):
            q0, q1, q2, q3 = quarter_vlads[4 * j:4 * j + 4]
            regions = (q0 + q1 + q2 + q3,            # global
                       q0 + q1, q2 + q3,             # top / bottom halves
                       q0 + q2, q1 + q3,             # left / right halves
                       q0, q1, q2, q3)               # quarters (TL, TR, BL, BR)
            for r, reg in enumerate(regions):
                n1 = jnp.sqrt(jnp.sum(reg * reg, axis=-1, keepdims=True))   # (K, 1)
                reg = reg / jnp.maximum(n1, _EPS)
                n2 = jnp.sqrt(jnp.sum(reg * reg, keepdims=True))            # (1, 1)
                reg = reg / jnp.maximum(n2, _EPS)
                out_ref[0, j, r] = reg.astype(out_ref.dtype)

    return kernel


# ----------------------------------------------------------------------------
# Kernel 2: per-tuple region similarity.  The anchor (9, K*Cf) tile is loaded
# once and reused for every pair in the tuple (no broadcasted anchor in HBM).
# ----------------------------------------------------------------------------
def _make_score_kernel(per_tuple):
    num_pairs = per_tuple - 1

    def kernel(v_ref, score_ref):
        anchor = v_ref[0, 0].astype(jnp.float32)                        # (9, L)
        for p in range(num_pairs):
            pair = v_ref[0, p + 1].astype(jnp.float32)                  # (9, L)
            s = lax.dot_general(anchor, pair, (((1,), (1,)), ((), ())),
                                preferred_element_type=jnp.float32)     # (9, 9)
            score_ref[0, p] = s.astype(score_ref.dtype)

    return kernel


# ----------------------------------------------------------------------------
# EmbedRegionNet forward (training path)
# ----------------------------------------------------------------------------
def embed_region_forward(x, params, tuple_size):
    """x: (B, Cin, H, W) NCHW, B = tuple_size * (1 anchor + n pairs)."""
    B, Cin, H, W = x.shape
    assert B % tuple_size == 0
    per_tuple = B // tuple_size
    assert per_tuple >= 2, "need at least one pair per anchor"
    num_pairs = per_tuple - 1
    h, w = H // 2, W // 2
    P = h * w

    wb, bb = params["base_w"], params["base_b"]
    wv, cent = params["vlad_w"], params["centroids"]
    Cf = wb.shape[1]
    K = cent.shape[0]
    L = K * Cf

    # NCHW -> channel-last, split each image into quarters (TL, TR, BL, BR) and
    # flatten positions.  The 1x1-conv base model commutes with this spatial
    # re-grouping, so quartering *before* the base conv is exact and avoids an
    # HBM round trip of the feature map.
    xq = jnp.transpose(x, (0, 2, 3, 1))                    # (B, H, W, Cin)
    xq = xq.reshape(B, 2, h, 2, w, Cin)
    xq = jnp.transpose(xq, (0, 1, 3, 2, 4, 5))             # (B, 2, 2, h, w, Cin)
    xq = xq.reshape(tuple_size, per_tuple * 4 * P, Cin)    # (t, M, Cin)
    M = per_tuple * 4 * P

    # --- kernel 1: fused base + NetVLAD + regions + normalisation ------------
    regions = pl.pallas_call(
        _make_region_vlad_kernel(per_tuple, P, K, Cf),
        grid=(tuple_size,),
        in_specs=[
            pl.BlockSpec((1, M, Cin), lambda t: (t, 0, 0)),
            pl.BlockSpec((Cin, Cf), lambda t: (0, 0)),
            pl.BlockSpec((1, Cf), lambda t: (0, 0)),
            pl.BlockSpec((Cf, K), lambda t: (0, 0)),
            pl.BlockSpec((K, Cf), lambda t: (0, 0)),
        ],
        out_specs=pl.BlockSpec((1, per_tuple, 9, K, Cf),
                               lambda t: (t, 0, 0, 0, 0)),
        out_shape=jax.ShapeDtypeStruct((tuple_size, per_tuple, 9, K, Cf),
                                       jnp.float32),
        compiler_params=_PARALLEL_1D,
    )(xq, wb, bb, wv, cent)

    # Free trailing-dims merge (row-major, K-major -> matches torch .view(N,B,-1))
    vlad_all = regions.reshape(tuple_size, per_tuple, 9, L)   # lane-dense: L=K*Cf

    # --- kernel 2: region similarity scores ----------------------------------
    score = pl.pallas_call(
        _make_score_kernel(per_tuple),
        grid=(tuple_size,),
        in_specs=[pl.BlockSpec((1, per_tuple, 9, L), lambda t: (t, 0, 0, 0))],
        out_specs=pl.BlockSpec((1, num_pairs, 9, 9), lambda t: (t, 0, 0, 0)),
        out_shape=jax.ShapeDtypeStruct((tuple_size, num_pairs, 9, 9),
                                       jnp.float32),
        compiler_params=_PARALLEL_1D,
    )(vlad_all)

    vlad_A = vlad_all[:, :1]       # (t, 1, 9, L)
    vlad_B = vlad_all[:, 1:]       # (t, num_pairs, 9, L)
    return score, vlad_A, vlad_B


# ----------------------------------------------------------------------------
if __name__ == "__main__":
    key = jax.random.PRNGKey(0)
    k_x, k_w, k_b, k_v, k_c = jax.random.split(key, 5)

    tuple_size = 2
    per_tuple = 3          # 1 anchor + 2 pairs per tuple
    Cin, H, W = 4, 8, 8    # H, W even (region splitting)
    Cf, K = 16, 8          # NetVLAD feature dim / cluster count (K*Cf = 128 lanes)

    x = jax.random.normal(k_x, (tuple_size * per_tuple, Cin, H, W), jnp.float32)
    params = {
        "base_w": 0.5 * jax.random.normal(k_w, (Cin, Cf), jnp.float32),
        "base_b": 0.1 * jax.random.normal(k_b, (1, Cf), jnp.float32),
        "vlad_w": jax.random.normal(k_v, (Cf, K), jnp.float32),
        "centroids": jax.random.normal(k_c, (K, Cf), jnp.float32),
    }

    fwd = jax.jit(functools.partial(embed_region_forward, tuple_size=tuple_size))
    score, vlad_A, vlad_B = fwd(x, params)
    jax.block_until_ready((score, vlad_A, vlad_B))

    assert score.shape == (tuple_size, per_tuple - 1, 9, 9)
    assert vlad_A.shape == (tuple_size, 1, 9, K * Cf)
    assert vlad_B.shape == (tuple_size, per_tuple - 1, 9, K * Cf)
    print("KERNEL_OK")
</pallas_src>

<mosaic_0001>
module attributes {stable_mosaic.version = 11 : i64} {
  func.func @kernel(%arg0: i32, %arg1: memref<1x192x4xf32, #tpu.memory_space<vmem>>, %arg2: memref<4x16xf32, #tpu.memory_space<vmem>>, %arg3: memref<1x16xf32, #tpu.memory_space<vmem>>, %arg4: memref<16x8xf32, #tpu.memory_space<vmem>>, %arg5: memref<8x16xf32, #tpu.memory_space<vmem>>, %arg6: memref<1x3x9x8x16xf32, #tpu.memory_space<vmem>>) attributes {dimension_semantics = [#tpu.dimension_semantics<parallel>], iteration_bounds = array<i64: 2>, scalar_prefetch = 0 : i64, scratch_operands = 0 : i64, tpu.core_type = #tpu.core_type<tc>, window_params = [{transform_indices = @transform_0, window_bounds = array<i64: 1, 192, 4>}, {pipeline_mode = #tpu.pipeline_mode<synchronous>, transform_indices = @transform_1, window_bounds = array<i64: 4, 16>}, {pipeline_mode = #tpu.pipeline_mode<synchronous>, transform_indices = @transform_2, window_bounds = array<i64: 1, 16>}, {pipeline_mode = #tpu.pipeline_mode<synchronous>, transform_indices = @transform_3, window_bounds = array<i64: 16, 8>}, {pipeline_mode = #tpu.pipeline_mode<synchronous>, transform_indices = @transform_4, window_bounds = array<i64: 8, 16>}, {transform_indices = @transform_5, window_bounds = array<i64: 1, 3, 9, 8, 16>}]} {
    %c0 = arith.constant 0 : index
    %c0_0 = arith.constant 0 : index
    %c0_1 = arith.constant 0 : index
    %0 = vector.load %arg1[%c0, %c0_0, %c0_1] : memref<1x192x4xf32, #tpu.memory_space<vmem>>, vector<1x192x4xf32>
    %1 = vector.shape_cast %0 : vector<1x192x4xf32> to vector<192x4xf32>
    %c0_2 = arith.constant 0 : index
    %c0_3 = arith.constant 0 : index
    %2 = vector.load %arg2[%c0_2, %c0_3] : memref<4x16xf32, #tpu.memory_space<vmem>>, vector<4x16xf32>
    %cst = arith.constant dense<0.000000e+00> : vector<192x16xf32>
    %3 = tpu.matmul %1, %2, %cst {dimension_numbers = #tpu.dot_dimension_numbers<[1], [0], [0], [1], [0, 0, 1, 1], [], []>} : vector<192x4xf32>, vector<4x16xf32>, vector<192x16xf32> -> vector<192x16xf32>
    %c0_4 = arith.constant 0 : index
    %c0_5 = arith.constant 0 : index
    %4 = vector.load %arg3[%c0_4, %c0_5] : memref<1x16xf32, #tpu.memory_space<vmem>>, vector<1x16xf32>
    %5 = vector.broadcast %4 : vector<1x16xf32> to vector<192x16xf32>
    %6 = arith.addf %3, %5 : vector<192x16xf32>
    %cst_6 = arith.constant 0.000000e+00 : f32
    %7 = vector.broadcast %cst_6 : f32 to vector<192x16xf32>
    %8 = arith.maximumf %6, %7 : vector<192x16xf32>
    %9 = arith.mulf %8, %8 : vector<192x16xf32>
    %cst_7 = arith.constant dense<0.000000e+00> : vector<192xf32>
    %10 = vector.multi_reduction <add>, %9, %cst_7 [1] : vector<192x16xf32> to vector<192xf32>
    %11 = vector.shape_cast %10 : vector<192xf32> to vector<192x1xf32>
    %12 = math.sqrt %11 : vector<192x1xf32>
    %cst_8 = arith.constant 9.99999996E-13 : f32
    %13 = vector.broadcast %cst_8 : f32 to vector<192x1xf32>
    %14 = arith.maximumf %12, %13 : vector<192x1xf32>
    %15 = vector.broadcast %14 : vector<192x1xf32> to vector<192x16xf32>
    %16 = arith.divf %8, %15 : vector<192x16xf32>
    %c0_9 = arith.constant 0 : index
    %c0_10 = arith.constant 0 : index
    %17 = vector.load %arg4[%c0_9, %c0_10] : memref<16x8xf32, #tpu.memory_space<vmem>>, vector<16x8xf32>
    %cst_11 = arith.constant dense<0.000000e+00> : vector<192x8xf32>
    %18 = tpu.matmul %16, %17, %cst_11 {dimension_numbers = #tpu.dot_dimension_numbers<[1], [0], [0], [1], [0, 0, 1, 1], [], []>} : vector<192x16xf32>, vector<16x8xf32>, vector<192x8xf32> -> vector<192x8xf32>
    %cst_12 = arith.constant dense<0xFF800000> : vector<192xf32>
    %19 = vector.multi_reduction <maximumf>, %18, %cst_12 [1] : vector<192x8xf32> to vector<192xf32>
    %20 = vector.shape_cast %19 : vector<192xf32> to vector<192x1xf32>
    %21 = vector.broadcast %20 : vector<192x1xf32> to vector<192x8xf32>
    %22 = arith.subf %18, %21 : vector<192x8xf32>
    %23 = math.exp %22 : vector<192x8xf32>
    %cst_13 = arith.constant dense<0.000000e+00> : vector<192xf32>
    %24 = vector.multi_reduction <add>, %23, %cst_13 [1] : vector<192x8xf32> to vector<192xf32>
    %25 = vector.shape_cast %24 : vector<192xf32> to vector<192x1xf32>
    %26 = vector.broadcast %25 : vector<192x1xf32> to vector<192x8xf32>
    %27 = arith.divf %23, %26 : vector<192x8xf32>
    %c0_14 = arith.constant 0 : index
    %c0_15 = arith.constant 0 : index
    %28 = vector.load %arg5[%c0_14, %c0_15] : memref<8x16xf32, #tpu.memory_space<vmem>>, vector<8x16xf32>
    %29 = vector.extract_strided_slice %27 {offsets = [0, 0], sizes = [16, 8], strides = [1, 1]} : vector<192x8xf32> to vector<16x8xf32>
    %30 = vector.extract_strided_slice %16 {offsets = [0, 0], sizes = [16, 16], strides = [1, 1]} : vector<192x16xf32> to vector<16x16xf32>
    %cst_16 = arith.constant dense<0.000000e+00> : vector<8x16xf32>
    %31 = tpu.matmul %29, %30, %cst_16 {dimension_numbers = #tpu.dot_dimension_numbers<[0], [0], [1], [1], [0, 1, 1, 1], [], []>} : vector<16x8xf32>, vector<16x16xf32>, vector<8x16xf32> -> vector<8x16xf32>
    %cst_17 = arith.constant dense<0.000000e+00> : vector<8xf32>
    %32 = vector.multi_reduction <add>, %29, %cst_17 [0] : vector<16x8xf32> to vector<8xf32>
    %33 = vector.shape_cast %32 : vector<8xf32> to vector<1x8xf32>
    %34 = tpu.transpose %33, [1, 0] : vector<1x8xf32> -> vector<8x1xf32>
    %35 = vector.broadcast %34 : vector<8x1xf32> to vector<8x16xf32>
    %36 = arith.mulf %35, %28 : vector<8x16xf32>
    %37 = arith.subf %31, %36 : vector<8x16xf32>
    %38 = vector.extract_strided_slice %27 {offsets = [16, 0], sizes = [16, 8], strides = [1, 1]} : vector<192x8xf32> to vector<16x8xf32>
    %39 = vector.extract_strided_slice %16 {offsets = [16, 0], sizes = [16, 16], strides = [1, 1]} : vector<192x16xf32> to vector<16x16xf32>
    %cst_18 = arith.constant dense<0.000000e+00> : vector<8x16xf32>
    %40 = tpu.matmul %38, %39, %cst_18 {dimension_numbers = #tpu.dot_dimension_numbers<[0], [0], [1], [1], [0, 1, 1, 1], [], []>} : vector<16x8xf32>, vector<16x16xf32>, vector<8x16xf32> -> vector<8x16xf32>
    %cst_19 = arith.constant dense<0.000000e+00> : vector<8xf32>
    %41 = vector.multi_reduction <add>, %38, %cst_19 [0] : vector<16x8xf32> to vector<8xf32>
    %42 = vector.shape_cast %41 : vector<8xf32> to vector<1x8xf32>
    %43 = tpu.transpose %42, [1, 0] : vector<1x8xf32> -> vector<8x1xf32>
    %44 = vector.broadcast %43 : vector<8x1xf32> to vector<8x16xf32>
    %45 = arith.mulf %44, %28 : vector<8x16xf32>
    %46 = arith.subf %40, %45 : vector<8x16xf32>
    %47 = vector.extract_strided_slice %27 {offsets = [32, 0], sizes = [16, 8], strides = [1, 1]} : vector<192x8xf32> to vector<16x8xf32>
    %48 = vector.extract_strided_slice %16 {offsets = [32, 0], sizes = [16, 16], strides = [1, 1]} : vector<192x16xf32> to vector<16x16xf32>
    %cst_20 = arith.constant dense<0.000000e+00> : vector<8x16xf32>
    %49 = tpu.matmul %47, %48, %cst_20 {dimension_numbers = #tpu.dot_dimension_numbers<[0], [0], [1], [1], [0, 1, 1, 1], [], []>} : vector<16x8xf32>, vector<16x16xf32>, vector<8x16xf32> -> vector<8x16xf32>
    %cst_21 = arith.constant dense<0.000000e+00> : vector<8xf32>
    %50 = vector.multi_reduction <add>, %47, %cst_21 [0] : vector<16x8xf32> to vector<8xf32>
    %51 = vector.shape_cast %50 : vector<8xf32> to vector<1x8xf32>
    %52 = tpu.transpose %51, [1, 0] : vector<1x8xf32> -> vector<8x1xf32>
    %53 = vector.broadcast %52 : vector<8x1xf32> to vector<8x16xf32>
    %54 = arith.mulf %53, %28 : vector<8x16xf32>
    %55 = arith.subf %49, %54 : vector<8x16xf32>
    %56 = vector.extract_strided_slice %27 {offsets = [48, 0], sizes = [16, 8], strides = [1, 1]} : vector<192x8xf32> to vector<16x8xf32>
    %57 = vector.extract_strided_slice %16 {offsets = [48, 0], sizes = [16, 16], strides = [1, 1]} : vector<192x16xf32> to vector<16x16xf32>
    %cst_22 = arith.constant dense<0.000000e+00> : vector<8x16xf32>
    %58 = tpu.matmul %56, %57, %cst_22 {dimension_numbers = #tpu.dot_dimension_numbers<[0], [0], [1], [1], [0, 1, 1, 1], [], []>} : vector<16x8xf32>, vector<16x16xf32>, vector<8x16xf32> -> vector<8x16xf32>
    %cst_23 = arith.constant dense<0.000000e+00> : vector<8xf32>
    %59 = vector.multi_reduction <add>, %56, %cst_23 [0] : vector<16x8xf32> to vector<8xf32>
    %60 = vector.shape_cast %59 : vector<8xf32> to vector<1x8xf32>
    %61 = tpu.transpose %60, [1, 0] : vector<1x8xf32> -> vector<8x1xf32>
    %62 = vector.broadcast %61 : vector<8x1xf32> to vector<8x16xf32>
    %63 = arith.mulf %62, %28 : vector<8x16xf32>
    %64 = arith.subf %58, %63 : vector<8x16xf32>
    %65 = vector.extract_strided_slice %27 {offsets = [64, 0], sizes = [16, 8], strides = [1, 1]} : vector<192x8xf32> to vector<16x8xf32>
    %66 = vector.extract_strided_slice %16 {offsets = [64, 0], sizes = [16, 16], strides = [1, 1]} : vector<192x16xf32> to vector<16x16xf32>
    %cst_24 = arith.constant dense<0.000000e+00> : vector<8x16xf32>
    %67 = tpu.matmul %65, %66, %cst_24 {dimension_numbers = #tpu.dot_dimension_numbers<[0], [0], [1], [1], [0, 1, 1, 1], [], []>} : vector<16x8xf32>, vector<16x16xf32>, vector<8x16xf32> -> vector<8x16xf32>
    %cst_25 = arith.constant dense<0.000000e+00> : vector<8xf32>
    %68 = vector.multi_reduction <add>, %65, %cst_25 [0] : vector<16x8xf32> to vector<8xf32>
    %69 = vector.shape_cast %68 : vector<8xf32> to vector<1x8xf32>
    %70 = tpu.transpose %69, [1, 0] : vector<1x8xf32> -> vector<8x1xf32>
    %71 = vector.broadcast %70 : vector<8x1xf32> to vector<8x16xf32>
    %72 = arith.mulf %71, %28 : vector<8x16xf32>
    %73 = arith.subf %67, %72 : vector<8x16xf32>
    %74 = vector.extract_strided_slice %27 {offsets = [80, 0], sizes = [16, 8], strides = [1, 1]} : vector<192x8xf32> to vector<16x8xf32>
    %75 = vector.extract_strided_slice %16 {offsets = [80, 0], sizes = [16, 16], strides = [1, 1]} : vector<192x16xf32> to vector<16x16xf32>
    %cst_26 = arith.constant dense<0.000000e+00> : vector<8x16xf32>
    %76 = tpu.matmul %74, %75, %cst_26 {dimension_numbers = #tpu.dot_dimension_numbers<[0], [0], [1], [1], [0, 1, 1, 1], [], []>} : vector<16x8xf32>, vector<16x16xf32>, vector<8x16xf32> -> vector<8x16xf32>
    %cst_27 = arith.constant dense<0.000000e+00> : vector<8xf32>
    %77 = vector.multi_reduction <add>, %74, %cst_27 [0] : vector<16x8xf32> to vector<8xf32>
    %78 = vector.shape_cast %77 : vector<8xf32> to vector<1x8xf32>
    %79 = tpu.transpose %78, [1, 0] : vector<1x8xf32> -> vector<8x1xf32>
    %80 = vector.broadcast %79 : vector<8x1xf32> to vector<8x16xf32>
    %81 = arith.mulf %80, %28 : vector<8x16xf32>
    %82 = arith.subf %76, %81 : vector<8x16xf32>
    %83 = vector.extract_strided_slice %27 {offsets = [96, 0], sizes = [16, 8], strides = [1, 1]} : vector<192x8xf32> to vector<16x8xf32>
    %84 = vector.extract_strided_slice %16 {offsets = [96, 0], sizes = [16, 16], strides = [1, 1]} : vector<192x16xf32> to vector<16x16xf32>
    %cst_28 = arith.constant dense<0.000000e+00> : vector<8x16xf32>
    %85 = tpu.matmul %83, %84, %cst_28 {dimension_numbers = #tpu.dot_dimension_numbers<[0], [0], [1], [1], [0, 1, 1, 1], [], []>} : vector<16x8xf32>, vector<16x16xf32>, vector<8x16xf32> -> vector<8x16xf32>
    %cst_29 = arith.constant dense<0.000000e+00> : vector<8xf32>
    %86 = vector.multi_reduction <add>, %83, %cst_29 [0] : vector<16x8xf32> to vector<8xf32>
    %87 = vector.shape_cast %86 : vector<8xf32> to vector<1x8xf32>
    %88 = tpu.transpose %87, [1, 0] : vector<1x8xf32> -> vector<8x1xf32>
    %89 = vector.broadcast %88 : vector<8x1xf32> to vector<8x16xf32>
    %90 = arith.mulf %89, %28 : vector<8x16xf32>
    %91 = arith.subf %85, %90 : vector<8x16xf32>
    %92 = vector.extract_strided_slice %27 {offsets = [112, 0], sizes = [16, 8], strides = [1, 1]} : vector<192x8xf32> to vector<16x8xf32>
    %93 = vector.extract_strided_slice %16 {offsets = [112, 0], sizes = [16, 16], strides = [1, 1]} : vector<192x16xf32> to vector<16x16xf32>
    %cst_30 = arith.constant dense<0.000000e+00> : vector<8x16xf32>
    %94 = tpu.matmul %92, %93, %cst_30 {dimension_numbers = #tpu.dot_dimension_numbers<[0], [0], [1], [1], [0, 1, 1, 1], [], []>} : vector<16x8xf32>, vector<16x16xf32>, vector<8x16xf32> -> vector<8x16xf32>
    %cst_31 = arith.constant dense<0.000000e+00> : vector<8xf32>
    %95 = vector.multi_reduction <add>, %92, %cst_31 [0] : vector<16x8xf32> to vector<8xf32>
    %96 = vector.shape_cast %95 : vector<8xf32> to vector<1x8xf32>
    %97 = tpu.transpose %96, [1, 0] : vector<1x8xf32> -> vector<8x1xf32>
    %98 = vector.broadcast %97 : vector<8x1xf32> to vector<8x16xf32>
    %99 = arith.mulf %98, %28 : vector<8x16xf32>
    %100 = arith.subf %94, %99 : vector<8x16xf32>
    %101 = vector.extract_strided_slice %27 {offsets = [128, 0], sizes = [16, 8], strides = [1, 1]} : vector<192x8xf32> to vector<16x8xf32>
    %102 = vector.extract_strided_slice %16 {offsets = [128, 0], sizes = [16, 16], strides = [1, 1]} : vector<192x16xf32> to vector<16x16xf32>
    %cst_32 = arith.constant dense<0.000000e+00> : vector<8x16xf32>
    %103 = tpu.matmul %101, %102, %cst_32 {dimension_numbers = #tpu.dot_dimension_numbers<[0], [0], [1], [1], [0, 1, 1, 1], [], []>} : vector<16x8xf32>, vector<16x16xf32>, vector<8x16xf32> -> vector<8x16xf32>
    %cst_33 = arith.constant dense<0.000000e+00> : vector<8xf32>
    %104 = vector.multi_reduction <add>, %101, %cst_33 [0] : vector<16x8xf32> to vector<8xf32>
    %105 = vector.shape_cast %104 : vector<8xf32> to vector<1x8xf32>
    %106 = tpu.transpose %105, [1, 0] : vector<1x8xf32> -> vector<8x1xf32>
    %107 = vector.broadcast %106 : vector<8x1xf32> to vector<8x16xf32>
    %108 = arith.mulf %107, %28 : vector<8x16xf32>
    %109 = arith.subf %103, %108 : vector<8x16xf32>
    %110 = vector.extract_strided_slice %27 {offsets = [144, 0], sizes = [16, 8], strides = [1, 1]} : vector<192x8xf32> to vector<16x8xf32>
    %111 = vector.extract_strided_slice %16 {offsets = [144, 0], sizes = [16, 16], strides = [1, 1]} : vector<192x16xf32> to vector<16x16xf32>
    %cst_34 = arith.constant dense<0.000000e+00> : vector<8x16xf32>
    %112 = tpu.matmul %110, %111, %cst_34 {dimension_numbers = #tpu.dot_dimension_numbers<[0], [0], [1], [1], [0, 1, 1, 1], [], []>} : vector<16x8xf32>, vector<16x16xf32>, vector<8x16xf32> -> vector<8x16xf32>
    %cst_35 = arith.constant dense<0.000000e+00> : vector<8xf32>
    %113 = vector.multi_reduction <add>, %110, %cst_35 [0] : vector<16x8xf32> to vector<8xf32>
    %114 = vector.shape_cast %113 : vector<8xf32> to vector<1x8xf32>
    %115 = tpu.transpose %114, [1, 0] : vector<1x8xf32> -> vector<8x1xf32>
    %116 = vector.broadcast %115 : vector<8x1xf32> to vector<8x16xf32>
    %117 = arith.mulf %116, %28 : vector<8x16xf32>
    %118 = arith.subf %112, %117 : vector<8x16xf32>
    %119 = vector.extract_strided_slice %27 {offsets = [160, 0], sizes = [16, 8], strides = [1, 1]} : vector<192x8xf32> to vector<16x8xf32>
    %120 = vector.extract_strided_slice %16 {offsets = [160, 0], sizes = [16, 16], strides = [1, 1]} : vector<192x16xf32> to vector<16x16xf32>
    %cst_36 = arith.constant dense<0.000000e+00> : vector<8x16xf32>
    %121 = tpu.matmul %119, %120, %cst_36 {dimension_numbers = #tpu.dot_dimension_numbers<[0], [0], [1], [1], [0, 1, 1, 1], [], []>} : vector<16x8xf32>, vector<16x16xf32>, vector<8x16xf32> -> vector<8x16xf32>
    %cst_37 = arith.constant dense<0.000000e+00> : vector<8xf32>
    %122 = vector.multi_reduction <add>, %119, %cst_37 [0] : vector<16x8xf32> to vector<8xf32>
    %123 = vector.shape_cast %122 : vector<8xf32> to vector<1x8xf32>
    %124 = tpu.transpose %123, [1, 0] : vector<1x8xf32> -> vector<8x1xf32>
    %125 = vector.broadcast %124 : vector<8x1xf32> to vector<8x16xf32>
    %126 = arith.mulf %125, %28 : vector<8x16xf32>
    %127 = arith.subf %121, %126 : vector<8x16xf32>
    %128 = vector.extract_strided_slice %27 {offsets = [176, 0], sizes = [16, 8], strides = [1, 1]} : vector<192x8xf32> to vector<16x8xf32>
    %129 = vector.extract_strided_slice %16 {offsets = [176, 0], sizes = [16, 16], strides = [1, 1]} : vector<192x16xf32> to vector<16x16xf32>
    %cst_38 = arith.constant dense<0.000000e+00> : vector<8x16xf32>
    %130 = tpu.matmul %128, %129, %cst_38 {dimension_numbers = #tpu.dot_dimension_numbers<[0], [0], [1], [1], [0, 1, 1, 1], [], []>} : vector<16x8xf32>, vector<16x16xf32>, vector<8x16xf32> -> vector<8x16xf32>
    %cst_39 = arith.constant dense<0.000000e+00> : vector<8xf32>
    %131 = vector.multi_reduction <add>, %128, %cst_39 [0] : vector<16x8xf32> to vector<8xf32>
    %132 = vector.shape_cast %131 : vector<8xf32> to vector<1x8xf32>
    %133 = tpu.transpose %132, [1, 0] : vector<1x8xf32> -> vector<8x1xf32>
    %134 = vector.broadcast %133 : vector<8x1xf32> to vector<8x16xf32>
    %135 = arith.mulf %134, %28 : vector<8x16xf32>
    %136 = arith.subf %130, %135 : vector<8x16xf32>
    %137 = arith.addf %37, %46 : vector<8x16xf32>
    %138 = arith.addf %137, %55 : vector<8x16xf32>
    %139 = arith.addf %138, %64 : vector<8x16xf32>
    %140 = arith.addf %37, %46 : vector<8x16xf32>
    %141 = arith.addf %55, %64 : vector<8x16xf32>
    %142 = arith.addf %37, %55 : vector<8x16xf32>
    %143 = arith.addf %46, %64 : vector<8x16xf32>
    %144 = arith.mulf %139, %139 : vector<8x16xf32>
    %cst_40 = arith.constant dense<0.000000e+00> : vector<8xf32>
    %145 = vector.multi_reduction <add>, %144, %cst_40 [1] : vector<8x16xf32> to vector<8xf32>
    %146 = vector.shape_cast %145 : vector<8xf32> to vector<8x1xf32>
    %147 = math.sqrt %146 : vector<8x1xf32>
    %cst_41 = arith.constant 9.99999996E-13 : f32
    %148 = vector.broadcast %cst_41 : f32 to vector<8x1xf32>
    %149 = arith.maximumf %147, %148 : vector<8x1xf32>
    %150 = vector.broadcast %149 : vector<8x1xf32> to vector<8x16xf32>
    %151 = arith.divf %139, %150 : vector<8x16xf32>
    %152 = arith.mulf %151, %151 : vector<8x16xf32>
    %153 = vector.shape_cast %152 : vector<8x16xf32> to vector<1x8x16xf32>
    %cst_42 = arith.constant dense<0.000000e+00> : vector<1xf32>
    %154 = vector.multi_reduction <add>, %153, %cst_42 [1, 2] : vector<1x8x16xf32> to vector<1xf32>
    %155 = vector.shape_cast %154 : vector<1xf32> to vector<1x1x1xf32>
    %156 = vector.extract %155[0, 0, 0] : f32 from vector<1x1x1xf32>
    %157 = vector.broadcast %156 : f32 to vector<1x1xf32>
    %158 = math.sqrt %157 : vector<1x1xf32>
    %cst_43 = arith.constant 9.99999996E-13 : f32
    %159 = vector.broadcast %cst_43 : f32 to vector<1x1xf32>
    %160 = arith.maximumf %158, %159 : vector<1x1xf32>
    %161 = vector.broadcast %160 : vector<1x1xf32> to vector<8x16xf32>
    %162 = arith.divf %151, %161 : vector<8x16xf32>
    %c0_44 = arith.constant 0 : index
    %c0_45 = arith.constant 0 : index
    %c0_46 = arith.constant 0 : index
    %c0_47 = arith.constant 0 : index
    %c0_48 = arith.constant 0 : index
    %163 = vector.load %arg6[%c0_44, %c0_45, %c0_46, %c0_47, %c0_48] : memref<1x3x9x8x16xf32, #tpu.memory_space<vmem>>, vector<1x1x1x8x16xf32>
    %164 = vector.shape_cast %163 : vector<1x1x1x8x16xf32> to vector<8x16xf32>
    %165 = vector.shape_cast %162 : vector<8x16xf32> to vector<1x1x1x8x16xf32>
    tpu.vector_store %arg6[%c0_44, %c0_45, %c0_46, %c0_47, %c0_48], %165 {strides = array<i32>} : memref<1x3x9x8x16xf32, #tpu.memory_space<vmem>>, vector<1x1x1x8x16xf32>,
    %166 = arith.mulf %140, %140 : vector<8x16xf32>
    %cst_49 = arith.constant dense<0.000000e+00> : vector<8xf32>
    %167 = vector.multi_reduction <add>, %166, %cst_49 [1] : vector<8x16xf32> to vector<8xf32>
    %168 = vector.shape_cast %167 : vector<8xf32> to vector<8x1xf32>
    %169 = math.sqrt %168 : vector<8x1xf32>
    %cst_50 = arith.constant 9.99999996E-13 : f32
    %170 = vector.broadcast %cst_50 : f32 to vector<8x1xf32>
    %171 = arith.maximumf %169, %170 : vector<8x1xf32>
    %172 = vector.broadcast %171 : vector<8x1xf32> to vector<8x16xf32>
    %173 = arith.divf %140, %172 : vector<8x16xf32>
    %174 = arith.mulf %173, %173 : vector<8x16xf32>
    %175 = vector.shape_cast %174 : vector<8x16xf32> to vector<1x8x16xf32>
    %cst_51 = arith.constant dense<0.000000e+00> : vector<1xf32>
    %176 = vector.multi_reduction <add>, %175, %cst_51 [1, 2] : vector<1x8x16xf32> to vector<1xf32>
    %177 = vector.shape_cast %176 : vector<1xf32> to vector<1x1x1xf32>
    %178 = vector.extract %177[0, 0, 0] : f32 from vector<1x1x1xf32>
    %179 = vector.broadcast %178 : f32 to vector<1x1xf32>
    %180 = math.sqrt %179 : vector<1x1xf32>
    %cst_52 = arith.constant 9.99999996E-13 : f32
    %181 = vector.broadcast %cst_52 : f32 to vector<1x1xf32>
    %182 = arith.maximumf %180, %181 : vector<1x1xf32>
    %183 = vector.broadcast %182 : vector<1x1xf32> to vector<8x16xf32>
    %184 = arith.divf %173, %183 : vector<8x16xf32>
    %c0_53 = arith.constant 0 : index
    %c0_54 = arith.constant 0 : index
    %c1 = arith.constant 1 : index
    %c0_55 = arith.constant 0 : index
    %c0_56 = arith.constant 0 : index
    %185 = vector.load %arg6[%c0_53, %c0_54, %c1, %c0_55, %c0_56] : memref<1x3x9x8x16xf32, #tpu.memory_space<vmem>>, vector<1x1x1x8x16xf32>
    %186 = vector.shape_cast %185 : vector<1x1x1x8x16xf32> to vector<8x16xf32>
    %187 = vector.shape_cast %184 : vector<8x16xf32> to vector<1x1x1x8x16xf32>
    tpu.vector_store %arg6[%c0_53, %c0_54, %c1, %c0_55, %c0_56], %187 {strides = array<i32>} : memref<1x3x9x8x16xf32, #tpu.memory_space<vmem>>, vector<1x1x1x8x16xf32>,
    %188 = arith.mulf %141, %141 : vector<8x16xf32>
    %cst_57 = arith.constant dense<0.000000e+00> : vector<8xf32>
    %189 = vector.multi_reduction <add>, %188, %cst_57 [1] : vector<8x16xf32> to vector<8xf32>
    %190 = vector.shape_cast %189 : vector<8xf32> to vector<8x1xf32>
    %191 = math.sqrt %190 : vector<8x1xf32>
    %cst_58 = arith.constant 9.99999996E-13 : f32
    %192 = vector.broadcast %cst_58 : f32 to vector<8x1xf32>
    %193 = arith.maximumf %191, %192 : vector<8x1xf32>
    %194 = vector.broadcast %193 : vector<8x1xf32> to vector<8x16xf32>
    %195 = arith.divf %141, %194 : vector<8x16xf32>
    %196 = arith.mulf %195, %195 : vector<8x16xf32>
    %197 = vector.shape_cast %196 : vector<8x16xf32> to vector<1x8x16xf32>
    %cst_59 = arith.constant dense<0.000000e+00> : vector<1xf32>
    %198 = vector.multi_reduction <add>, %197, %cst_59 [1, 2] : vector<1x8x16xf32> to vector<1xf32>
    %199 = vector.shape_cast %198 : vector<1xf32> to vector<1x1x1xf32>
    %200 = vector.extract %199[0, 0, 0] : f32 from vector<1x1x1xf32>
    %201 = vector.broadcast %200 : f32 to vector<1x1xf32>
    %202 = math.sqrt %201 : vector<1x1xf32>
    %cst_60 = arith.constant 9.99999996E-13 : f32
    %203 = vector.broadcast %cst_60 : f32 to vector<1x1xf32>
    %204 = arith.maximumf %202, %203 : vector<1x1xf32>
    %205 = vector.broadcast %204 : vector<1x1xf32> to vector<8x16xf32>
    %206 = arith.divf %195, %205 : vector<8x16xf32>
    %c0_61 = arith.constant 0 : index
    %c0_62 = arith.constant 0 : index
    %c2 = arith.constant 2 : index
    %c0_63 = arith.constant 0 : index
    %c0_64 = arith.constant 0 : index
    %207 = vector.load %arg6[%c0_61, %c0_62, %c2, %c0_63, %c0_64] : memref<1x3x9x8x16xf32, #tpu.memory_space<vmem>>, vector<1x1x1x8x16xf32>
    %208 = vector.shape_cast %207 : vector<1x1x1x8x16xf32> to vector<8x16xf32>
    %209 = vector.shape_cast %206 : vector<8x16xf32> to vector<1x1x1x8x16xf32>
    tpu.vector_store %arg6[%c0_61, %c0_62, %c2, %c0_63, %c0_64], %209 {strides = array<i32>} : memref<1x3x9x8x16xf32, #tpu.memory_space<vmem>>, vector<1x1x1x8x16xf32>,
    %210 = arith.mulf %142, %142 : vector<8x16xf32>
    %cst_65 = arith.constant dense<0.000000e+00> : vector<8xf32>
    %211 = vector.multi_reduction <add>, %210, %cst_65 [1] : vector<8x16xf32> to vector<8xf32>
    %212 = vector.shape_cast %211 : vector<8xf32> to vector<8x1xf32>
    %213 = math.sqrt %212 : vector<8x1xf32>
    %cst_66 = arith.constant 9.99999996E-13 : f32
    %214 = vector.broadcast %cst_66 : f32 to vector<8x1xf32>
    %215 = arith.maximumf %213, %214 : vector<8x1xf32>
    %216 = vector.broadcast %215 : vector<8x1xf32> to vector<8x16xf32>
    %217 = arith.divf %142, %216 : vector<8x16xf32>
    %218 = arith.mulf %217, %217 : vector<8x16xf32>
    %219 = vector.shape_cast %218 : vector<8x16xf32> to vector<1x8x16xf32>
    %cst_67 = arith.constant dense<0.000000e+00> : vector<1xf32>
    %220 = vector.multi_reduction <add>, %219, %cst_67 [1, 2] : vector<1x8x16xf32> to vector<1xf32>
    %221 = vector.shape_cast %220 : vector<1xf32> to vector<1x1x1xf32>
    %222 = vector.extract %221[0, 0, 0] : f32 from vector<1x1x1xf32>
    %223 = vector.broadcast %222 : f32 to vector<1x1xf32>
    %224 = math.sqrt %223 : vector<1x1xf32>
    %cst_68 = arith.constant 9.99999996E-13 : f32
    %225 = vector.broadcast %cst_68 : f32 to vector<1x1xf32>
    %226 = arith.maximumf %224, %225 : vector<1x1xf32>
    %227 = vector.broadcast %226 : vector<1x1xf32> to vector<8x16xf32>
    %228 = arith.divf %217, %227 : vector<8x16xf32>
    %c0_69 = arith.constant 0 : index
    %c0_70 = arith.constant 0 : index
    %c3 = arith.constant 3 : index
    %c0_71 = arith.constant 0 : index
    %c0_72 = arith.constant 0 : index
    %229 = vector.load %arg6[%c0_69, %c0_70, %c3, %c0_71, %c0_72] : memref<1x3x9x8x16xf32, #tpu.memory_space<vmem>>, vector<1x1x1x8x16xf32>
    %230 = vector.shape_cast %229 : vector<1x1x1x8x16xf32> to vector<8x16xf32>
    %231 = vector.shape_cast %228 : vector<8x16xf32> to vector<1x1x1x8x16xf32>
    tpu.vector_store %arg6[%c0_69, %c0_70, %c3, %c0_71, %c0_72], %231 {strides = array<i32>} : memref<1x3x9x8x16xf32, #tpu.memory_space<vmem>>, vector<1x1x1x8x16xf32>,
    %232 = arith.mulf %143, %143 : vector<8x16xf32>
    %cst_73 = arith.constant dense<0.000000e+00> : vector<8xf32>
    %233 = vector.multi_reduction <add>, %232, %cst_73 [1] : vector<8x16xf32> to vector<8xf32>
    %234 = vector.shape_cast %233 : vector<8xf32> to vector<8x1xf32>
    %235 = math.sqrt %234 : vector<8x1xf32>
    %cst_74 = arith.constant 9.99999996E-13 : f32
    %236 = vector.broadcast %cst_74 : f32 to vector<8x1xf32>
    %237 = arith.maximumf %235, %236 : vector<8x1xf32>
    %238 = vector.broadcast %237 : vector<8x1xf32> to vector<8x16xf32>
    %239 = arith.divf %143, %238 : vector<8x16xf32>
    %240 = arith.mulf %239, %239 : vector<8x16xf32>
    %241 = vector.shape_cast %240 : vector<8x16xf32> to vector<1x8x16xf32>
    %cst_75 = arith.constant dense<0.000000e+00> : vector<1xf32>
    %242 = vector.multi_reduction <add>, %241, %cst_75 [1, 2] : vector<1x8x16xf32> to vector<1xf32>
    %243 = vector.shape_cast %242 : vector<1xf32> to vector<1x1x1xf32>
    %244 = vector.extract %243[0, 0, 0] : f32 from vector<1x1x1xf32>
    %245 = vector.broadcast %244 : f32 to vector<1x1xf32>
    %246 = math.sqrt %245 : vector<1x1xf32>
    %cst_76 = arith.constant 9.99999996E-13 : f32
    %247 = vector.broadcast %cst_76 : f32 to vector<1x1xf32>
    %248 = arith.maximumf %246, %247 : vector<1x1xf32>
    %249 = vector.broadcast %248 : vector<1x1xf32> to vector<8x16xf32>
    %250 = arith.divf %239, %249 : vector<8x16xf32>
    %c0_77 = arith.constant 0 : index
    %c0_78 = arith.constant 0 : index
    %c4 = arith.constant 4 : index
    %c0_79 = arith.constant 0 : index
    %c0_80 = arith.constant 0 : index
    %251 = vector.load %arg6[%c0_77, %c0_78, %c4, %c0_79, %c0_80] : memref<1x3x9x8x16xf32, #tpu.memory_space<vmem>>, vector<1x1x1x8x16xf32>
    %252 = vector.shape_cast %251 : vector<1x1x1x8x16xf32> to vector<8x16xf32>
    %253 = vector.shape_cast %250 : vector<8x16xf32> to vector<1x1x1x8x16xf32>
    tpu.vector_store %arg6[%c0_77, %c0_78, %c4, %c0_79, %c0_80], %253 {strides = array<i32>} : memref<1x3x9x8x16xf32, #tpu.memory_space<vmem>>, vector<1x1x1x8x16xf32>,
    %254 = arith.mulf %37, %37 : vector<8x16xf32>
    %cst_81 = arith.constant dense<0.000000e+00> : vector<8xf32>
    %255 = vector.multi_reduction <add>, %254, %cst_81 [1] : vector<8x16xf32> to vector<8xf32>
    %256 = vector.shape_cast %255 : vector<8xf32> to vector<8x1xf32>
    %257 = math.sqrt %256 : vector<8x1xf32>
    %cst_82 = arith.constant 9.99999996E-13 : f32
    %258 = vector.broadcast %cst_82 : f32 to vector<8x1xf32>
    %259 = arith.maximumf %257, %258 : vector<8x1xf32>
    %260 = vector.broadcast %259 : vector<8x1xf32> to vector<8x16xf32>
    %261 = arith.divf %37, %260 : vector<8x16xf32>
    %262 = arith.mulf %261, %261 : vector<8x16xf32>
    %263 = vector.shape_cast %262 : vector<8x16xf32> to vector<1x8x16xf32>
    %cst_83 = arith.constant dense<0.000000e+00> : vector<1xf32>
    %264 = vector.multi_reduction <add>, %263, %cst_83 [1, 2] : vector<1x8x16xf32> to vector<1xf32>
    %265 = vector.shape_cast %264 : vector<1xf32> to vector<1x1x1xf32>
    %266 = vector.extract %265[0, 0, 0] : f32 from vector<1x1x1xf32>
    %267 = vector.broadcast %266 : f32 to vector<1x1xf32>
    %268 = math.sqrt %267 : vector<1x1xf32>
    %cst_84 = arith.constant 9.99999996E-13 : f32
    %269 = vector.broadcast %cst_84 : f32 to vector<1x1xf32>
    %270 = arith.maximumf %268, %269 : vector<1x1xf32>
    %271 = vector.broadcast %270 : vector<1x1xf32> to vector<8x16xf32>
    %272 = arith.divf %261, %271 : vector<8x16xf32>
    %c0_85 = arith.constant 0 : index
    %c0_86 = arith.constant 0 : index
    %c5 = arith.constant 5 : index
    %c0_87 = arith.constant 0 : index
    %c0_88 = arith.constant 0 : index
    %273 = vector.load %arg6[%c0_85, %c0_86, %c5, %c0_87, %c0_88] : memref<1x3x9x8x16xf32, #tpu.memory_space<vmem>>, vector<1x1x1x8x16xf32>
    %274 = vector.shape_cast %273 : vector<1x1x1x8x16xf32> to vector<8x16xf32>
    %275 = vector.shape_cast %272 : vector<8x16xf32> to vector<1x1x1x8x16xf32>
    tpu.vector_store %arg6[%c0_85, %c0_86, %c5, %c0_87, %c0_88], %275 {strides = array<i32>} : memref<1x3x9x8x16xf32, #tpu.memory_space<vmem>>, vector<1x1x1x8x16xf32>,
    %276 = arith.mulf %46, %46 : vector<8x16xf32>
    %cst_89 = arith.constant dense<0.000000e+00> : vector<8xf32>
    %277 = vector.multi_reduction <add>, %276, %cst_89 [1] : vector<8x16xf32> to vector<8xf32>
    %278 = vector.shape_cast %277 : vector<8xf32> to vector<8x1xf32>
    %279 = math.sqrt %278 : vector<8x1xf32>
    %cst_90 = arith.constant 9.99999996E-13 : f32
    %280 = vector.broadcast %cst_90 : f32 to vector<8x1xf32>
    %281 = arith.maximumf %279, %280 : vector<8x1xf32>
    %282 = vector.broadcast %281 : vector<8x1xf32> to vector<8x16xf32>
    %283 = arith.divf %46, %282 : vector<8x16xf32>
    %284 = arith.mulf %283, %283 : vector<8x16xf32>
    %285 = vector.shape_cast %284 : vector<8x16xf32> to vector<1x8x16xf32>
    %cst_91 = arith.constant dense<0.000000e+00> : vector<1xf32>
    %286 = vector.multi_reduction <add>, %285, %cst_91 [1, 2] : vector<1x8x16xf32> to vector<1xf32>
    %287 = vector.shape_cast %286 : vector<1xf32> to vector<1x1x1xf32>
    %288 = vector.extract %287[0, 0, 0] : f32 from vector<1x1x1xf32>
    %289 = vector.broadcast %288 : f32 to vector<1x1xf32>
    %290 = math.sqrt %289 : vector<1x1xf32>
    %cst_92 = arith.constant 9.99999996E-13 : f32
    %291 = vector.broadcast %cst_92 : f32 to vector<1x1xf32>
    %292 = arith.maximumf %290, %291 : vector<1x1xf32>
    %293 = vector.broadcast %292 : vector<1x1xf32> to vector<8x16xf32>
    %294 = arith.divf %283, %293 : vector<8x16xf32>
    %c0_93 = arith.constant 0 : index
    %c0_94 = arith.constant 0 : index
    %c6 = arith.constant 6 : index
    %c0_95 = arith.constant 0 : index
    %c0_96 = arith.constant 0 : index
    %295 = vector.load %arg6[%c0_93, %c0_94, %c6, %c0_95, %c0_96] : memref<1x3x9x8x16xf32, #tpu.memory_space<vmem>>, vector<1x1x1x8x16xf32>
    %296 = vector.shape_cast %295 : vector<1x1x1x8x16xf32> to vector<8x16xf32>
    %297 = vector.shape_cast %294 : vector<8x16xf32> to vector<1x1x1x8x16xf32>
    tpu.vector_store %arg6[%c0_93, %c0_94, %c6, %c0_95, %c0_96], %297 {strides = array<i32>} : memref<1x3x9x8x16xf32, #tpu.memory_space<vmem>>, vector<1x1x1x8x16xf32>,
    %298 = arith.mulf %55, %55 : vector<8x16xf32>
    %cst_97 = arith.constant dense<0.000000e+00> : vector<8xf32>
    %299 = vector.multi_reduction <add>, %298, %cst_97 [1] : vector<8x16xf32> to vector<8xf32>
    %300 = vector.shape_cast %299 : vector<8xf32> to vector<8x1xf32>
    %301 = math.sqrt %300 : vector<8x1xf32>
    %cst_98 = arith.constant 9.99999996E-13 : f32
    %302 = vector.broadcast %cst_98 : f32 to vector<8x1xf32>
    %303 = arith.maximumf %301, %302 : vector<8x1xf32>
    %304 = vector.broadcast %303 : vector<8x1xf32> to vector<8x16xf32>
    %305 = arith.divf %55, %304 : vector<8x16xf32>
    %306 = arith.mulf %305, %305 : vector<8x16xf32>
    %307 = vector.shape_cast %306 : vector<8x16xf32> to vector<1x8x16xf32>
    %cst_99 = arith.constant dense<0.000000e+00> : vector<1xf32>
    %308 = vector.multi_reduction <add>, %307, %cst_99 [1, 2] : vector<1x8x16xf32> to vector<1xf32>
    %309 = vector.shape_cast %308 : vector<1xf32> to vector<1x1x1xf32>
    %310 = vector.extract %309[0, 0, 0] : f32 from vector<1x1x1xf32>
    %311 = vector.broadcast %310 : f32 to vector<1x1xf32>
    %312 = math.sqrt %311 : vector<1x1xf32>
    %cst_100 = arith.constant 9.99999996E-13 : f32
    %313 = vector.broadcast %cst_100 : f32 to vector<1x1xf32>
    %314 = arith.maximumf %312, %313 : vector<1x1xf32>
    %315 = vector.broadcast %314 : vector<1x1xf32> to vector<8x16xf32>
    %316 = arith.divf %305, %315 : vector<8x16xf32>
    %c0_101 = arith.constant 0 : index
    %c0_102 = arith.constant 0 : index
    %c7 = arith.constant 7 : index
    %c0_103 = arith.constant 0 : index
    %c0_104 = arith.constant 0 : index
    %317 = vector.load %arg6[%c0_101, %c0_102, %c7, %c0_103, %c0_104] : memref<1x3x9x8x16xf32, #tpu.memory_space<vmem>>, vector<1x1x1x8x16xf32>
    %318 = vector.shape_cast %317 : vector<1x1x1x8x16xf32> to vector<8x16xf32>
    %319 = vector.shape_cast %316 : vector<8x16xf32> to vector<1x1x1x8x16xf32>
    tpu.vector_store %arg6[%c0_101, %c0_102, %c7, %c0_103, %c0_104], %319 {strides = array<i32>} : memref<1x3x9x8x16xf32, #tpu.memory_space<vmem>>, vector<1x1x1x8x16xf32>,
    %320 = arith.mulf %64, %64 : vector<8x16xf32>
    %cst_105 = arith.constant dense<0.000000e+00> : vector<8xf32>
    %321 = vector.multi_reduction <add>, %320, %cst_105 [1] : vector<8x16xf32> to vector<8xf32>
    %322 = vector.shape_cast %321 : vector<8xf32> to vector<8x1xf32>
    %323 = math.sqrt %322 : vector<8x1xf32>
    %cst_106 = arith.constant 9.99999996E-13 : f32
    %324 = vector.broadcast %cst_106 : f32 to vector<8x1xf32>
    %325 = arith.maximumf %323, %324 : vector<8x1xf32>
    %326 = vector.broadcast %325 : vector<8x1xf32> to vector<8x16xf32>
    %327 = arith.divf %64, %326 : vector<8x16xf32>
    %328 = arith.mulf %327, %327 : vector<8x16xf32>
    %329 = vector.shape_cast %328 : vector<8x16xf32> to vector<1x8x16xf32>
    %cst_107 = arith.constant dense<0.000000e+00> : vector<1xf32>
    %330 = vector.multi_reduction <add>, %329, %cst_107 [1, 2] : vector<1x8x16xf32> to vector<1xf32>
    %331 = vector.shape_cast %330 : vector<1xf32> to vector<1x1x1xf32>
    %332 = vector.extract %331[0, 0, 0] : f32 from vector<1x1x1xf32>
    %333 = vector.broadcast %332 : f32 to vector<1x1xf32>
    %334 = math.sqrt %333 : vector<1x1xf32>
    %cst_108 = arith.constant 9.99999996E-13 : f32
    %335 = vector.broadcast %cst_108 : f32 to vector<1x1xf32>
    %336 = arith.maximumf %334, %335 : vector<1x1xf32>
    %337 = vector.broadcast %336 : vector<1x1xf32> to vector<8x16xf32>
    %338 = arith.divf %327, %337 : vector<8x16xf32>
    %c0_109 = arith.constant 0 : index
    %c0_110 = arith.constant 0 : index
    %c8 = arith.constant 8 : index
    %c0_111 = arith.constant 0 : index
    %c0_112 = arith.constant 0 : index
    %339 = vector.load %arg6[%c0_109, %c0_110, %c8, %c0_111, %c0_112] : memref<1x3x9x8x16xf32, #tpu.memory_space<vmem>>, vector<1x1x1x8x16xf32>
    %340 = vector.shape_cast %339 : vector<1x1x1x8x16xf32> to vector<8x16xf32>
    %341 = vector.shape_cast %338 : vector<8x16xf32> to vector<1x1x1x8x16xf32>
    tpu.vector_store %arg6[%c0_109, %c0_110, %c8, %c0_111, %c0_112], %341 {strides = array<i32>} : memref<1x3x9x8x16xf32, #tpu.memory_space<vmem>>, vector<1x1x1x8x16xf32>,
    %342 = arith.addf %73, %82 : vector<8x16xf32>
    %343 = arith.addf %342, %91 : vector<8x16xf32>
    %344 = arith.addf %343, %100 : vector<8x16xf32>
    %345 = arith.addf %73, %82 : vector<8x16xf32>
    %346 = arith.addf %91, %100 : vector<8x16xf32>
    %347 = arith.addf %73, %91 : vector<8x16xf32>
    %348 = arith.addf %82, %100 : vector<8x16xf32>
    %349 = arith.mulf %344, %344 : vector<8x16xf32>
    %cst_113 = arith.constant dense<0.000000e+00> : vector<8xf32>
    %350 = vector.multi_reduction <add>, %349, %cst_113 [1] : vector<8x16xf32> to vector<8xf32>
    %351 = vector.shape_cast %350 : vector<8xf32> to vector<8x1xf32>
    %352 = math.sqrt %351 : vector<8x1xf32>
    %cst_114 = arith.constant 9.99999996E-13 : f32
    %353 = vector.broadcast %cst_114 : f32 to vector<8x1xf32>
    %354 = arith.maximumf %352, %353 : vector<8x1xf32>
    %355 = vector.broadcast %354 : vector<8x1xf32> to vector<8x16xf32>
    %356 = arith.divf %344, %355 : vector<8x16xf32>
    %357 = arith.mulf %356, %356 : vector<8x16xf32>
    %358 = vector.shape_cast %357 : vector<8x16xf32> to vector<1x8x16xf32>
    %cst_115 = arith.constant dense<0.000000e+00> : vector<1xf32>
    %359 = vector.multi_reduction <add>, %358, %cst_115 [1, 2] : vector<1x8x16xf32> to vector<1xf32>
    %360 = vector.shape_cast %359 : vector<1xf32> to vector<1x1x1xf32>
    %361 = vector.extract %360[0, 0, 0] : f32 from vector<1x1x1xf32>
    %362 = vector.broadcast %361 : f32 to vector<1x1xf32>
    %363 = math.sqrt %362 : vector<1x1xf32>
    %cst_116 = arith.constant 9.99999996E-13 : f32
    %364 = vector.broadcast %cst_116 : f32 to vector<1x1xf32>
    %365 = arith.maximumf %363, %364 : vector<1x1xf32>
    %366 = vector.broadcast %365 : vector<1x1xf32> to vector<8x16xf32>
    %367 = arith.divf %356, %366 : vector<8x16xf32>
    %c0_117 = arith.constant 0 : index
    %c1_118 = arith.constant 1 : index
    %c0_119 = arith.constant 0 : index
    %c0_120 = arith.constant 0 : index
    %c0_121 = arith.constant 0 : index
    %368 = vector.load %arg6[%c0_117, %c1_118, %c0_119, %c0_120, %c0_121] : memref<1x3x9x8x16xf32, #tpu.memory_space<vmem>>, vector<1x1x1x8x16xf32>
    %369 = vector.shape_cast %368 : vector<1x1x1x8x16xf32> to vector<8x16xf32>
    %370 = vector.shape_cast %367 : vector<8x16xf32> to vector<1x1x1x8x16xf32>
    tpu.vector_store %arg6[%c0_117, %c1_118, %c0_119, %c0_120, %c0_121], %370 {strides = array<i32>} : memref<1x3x9x8x16xf32, #tpu.memory_space<vmem>>, vector<1x1x1x8x16xf32>,
    %371 = arith.mulf %345, %345 : vector<8x16xf32>
    %cst_122 = arith.constant dense<0.000000e+00> : vector<8xf32>
    %372 = vector.multi_reduction <add>, %371, %cst_122 [1] : vector<8x16xf32> to vector<8xf32>
    %373 = vector.shape_cast %372 : vector<8xf32> to vector<8x1xf32>
    %374 = math.sqrt %373 : vector<8x1xf32>
    %cst_123 = arith.constant 9.99999996E-13 : f32
    %375 = vector.broadcast %cst_123 : f32 to vector<8x1xf32>
    %376 = arith.maximumf %374, %375 : vector<8x1xf32>
    %377 = vector.broadcast %376 : vector<8x1xf32> to vector<8x16xf32>
    %378 = arith.divf %345, %377 : vector<8x16xf32>
    %379 = arith.mulf %378, %378 : vector<8x16xf32>
    %380 = vector.shape_cast %379 : vector<8x16xf32> to vector<1x8x16xf32>
    %cst_124 = arith.constant dense<0.000000e+00> : vector<1xf32>
    %381 = vector.multi_reduction <add>, %380, %cst_124 [1, 2] : vector<1x8x16xf32> to vector<1xf32>
    %382 = vector.shape_cast %381 : vector<1xf32> to vector<1x1x1xf32>
    %383 = vector.extract %382[0, 0, 0] : f32 from vector<1x1x1xf32>
    %384 = vector.broadcast %383 : f32 to vector<1x1xf32>
    %385 = math.sqrt %384 : vector<1x1xf32>
    %cst_125 = arith.constant 9.99999996E-13 : f32
    %386 = vector.broadcast %cst_125 : f32 to vector<1x1xf32>
    %387 = arith.maximumf %385, %386 : vector<1x1xf32>
    %388 = vector.broadcast %387 : vector<1x1xf32> to vector<8x16xf32>
    %389 = arith.divf %378, %388 : vector<8x16xf32>
    %c0_126 = arith.constant 0 : index
    %c1_127 = arith.constant 1 : index
    %c1_128 = arith.constant 1 : index
    %c0_129 = arith.constant 0 : index
    %c0_130 = arith.constant 0 : index
    %390 = vector.load %arg6[%c0_126, %c1_127, %c1_128, %c0_129, %c0_130] : memref<1x3x9x8x16xf32, #tpu.memory_space<vmem>>, vector<1x1x1x8x16xf32>
    %391 = vector.shape_cast %390 : vector<1x1x1x8x16xf32> to vector<8x16xf32>
    %392 = vector.shape_cast %389 : vector<8x16xf32> to vector<1x1x1x8x16xf32>
    tpu.vector_store %arg6[%c0_126, %c1_127, %c1_128, %c0_129, %c0_130], %392 {strides = array<i32>} : memref<1x3x9x8x16xf32, #tpu.memory_space<vmem>>, vector<1x1x1x8x16xf32>,
    %393 = arith.mulf %346, %346 : vector<8x16xf32>
    %cst_131 = arith.constant dense<0.000000e+00> : vector<8xf32>
    %394 = vector.multi_reduction <add>, %393, %cst_131 [1] : vector<8x16xf32> to vector<8xf32>
    %395 = vector.shape_cast %394 : vector<8xf32> to vector<8x1xf32>
    %396 = math.sqrt %395 : vector<8x1xf32>
    %cst_132 = arith.constant 9.99999996E-13 : f32
    %397 = vector.broadcast %cst_132 : f32 to vector<8x1xf32>
    %398 = arith.maximumf %396, %397 : vector<8x1xf32>
    %399 = vector.broadcast %398 : vector<8x1xf32> to vector<8x16xf32>
    %400 = arith.divf %346, %399 : vector<8x16xf32>
    %401 = arith.mulf %400, %400 : vector<8x16xf32>
    %402 = vector.shape_cast %401 : vector<8x16xf32> to vector<1x8x16xf32>
    %cst_133 = arith.constant dense<0.000000e+00> : vector<1xf32>
    %403 = vector.multi_reduction <add>, %402, %cst_133 [1, 2] : vector<1x8x16xf32> to vector<1xf32>
    %404 = vector.shape_cast %403 : vector<1xf32> to vector<1x1x1xf32>
    %405 = vector.extract %404[0, 0, 0] : f32 from vector<1x1x1xf32>
    %406 = vector.broadcast %405 : f32 to vector<1x1xf32>
    %407 = math.sqrt %406 : vector<1x1xf32>
    %cst_134 = arith.constant 9.99999996E-13 : f32
    %408 = vector.broadcast %cst_134 : f32 to vector<1x1xf32>
    %409 = arith.maximumf %407, %408 : vector<1x1xf32>
    %410 = vector.broadcast %409 : vector<1x1xf32> to vector<8x16xf32>
    %411 = arith.divf %400, %410 : vector<8x16xf32>
    %c0_135 = arith.constant 0 : index
    %c1_136 = arith.constant 1 : index
    %c2_137 = arith.constant 2 : index
    %c0_138 = arith.constant 0 : index
    %c0_139 = arith.constant 0 : index
    %412 = vector.load %arg6[%c0_135, %c1_136, %c2_137, %c0_138, %c0_139] : memref<1x3x9x8x16xf32, #tpu.memory_space<vmem>>, vector<1x1x1x8x16xf32>
    %413 = vector.shape_cast %412 : vector<1x1x1x8x16xf32> to vector<8x16xf32>
    %414 = vector.shape_cast %411 : vector<8x16xf32> to vector<1x1x1x8x16xf32>
    tpu.vector_store %arg6[%c0_135, %c1_136, %c2_137, %c0_138, %c0_139], %414 {strides = array<i32>} : memref<1x3x9x8x16xf32, #tpu.memory_space<vmem>>, vector<1x1x1x8x16xf32>,
    %415 = arith.mulf %347, %347 : vector<8x16xf32>
    %cst_140 = arith.constant dense<0.000000e+00> : vector<8xf32>
    %416 = vector.multi_reduction <add>, %415, %cst_140 [1] : vector<8x16xf32> to vector<8xf32>
    %417 = vector.shape_cast %416 : vector<8xf32> to vector<8x1xf32>
    %418 = math.sqrt %417 : vector<8x1xf32>
    %cst_141 = arith.constant 9.99999996E-13 : f32
    %419 = vector.broadcast %cst_141 : f32 to vector<8x1xf32>
    %420 = arith.maximumf %418, %419 : vector<8x1xf32>
    %421 = vector.broadcast %420 : vector<8x1xf32> to vector<8x16xf32>
    %422 = arith.divf %347, %421 : vector<8x16xf32>
    %423 = arith.mulf %422, %422 : vector<8x16xf32>
    %424 = vector.shape_cast %423 : vector<8x16xf32> to vector<1x8x16xf32>
    %cst_142 = arith.constant dense<0.000000e+00> : vector<1xf32>
    %425 = vector.multi_reduction <add>, %424, %cst_142 [1, 2] : vector<1x8x16xf32> to vector<1xf32>
    %426 = vector.shape_cast %425 : vector<1xf32> to vector<1x1x1xf32>
    %427 = vector.extract %426[0, 0, 0] : f32 from vector<1x1x1xf32>
    %428 = vector.broadcast %427 : f32 to vector<1x1xf32>
    %429 = math.sqrt %428 : vector<1x1xf32>
    %cst_143 = arith.constant 9.99999996E-13 : f32
    %430 = vector.broadcast %cst_143 : f32 to vector<1x1xf32>
    %431 = arith.maximumf %429, %430 : vector<1x1xf32>
    %432 = vector.broadcast %431 : vector<1x1xf32> to vector<8x16xf32>
    %433 = arith.divf %422, %432 : vector<8x16xf32>
    %c0_144 = arith.constant 0 : index
    %c1_145 = arith.constant 1 : index
    %c3_146 = arith.constant 3 : index
    %c0_147 = arith.constant 0 : index
    %c0_148 = arith.constant 0 : index
    %434 = vector.load %arg6[%c0_144, %c1_145, %c3_146, %c0_147, %c0_148] : memref<1x3x9x8x16xf32, #tpu.memory_space<vmem>>, vector<1x1x1x8x16xf32>
    %435 = vector.shape_cast %434 : vector<1x1x1x8x16xf32> to vector<8x16xf32>
    %436 = vector.shape_cast %433 : vector<8x16xf32> to vector<1x1x1x8x16xf32>
    tpu.vector_store %arg6[%c0_144, %c1_145, %c3_146, %c0_147, %c0_148], %436 {strides = array<i32>} : memref<1x3x9x8x16xf32, #tpu.memory_space<vmem>>, vector<1x1x1x8x16xf32>,
    %437 = arith.mulf %348, %348 : vector<8x16xf32>
    %cst_149 = arith.constant dense<0.000000e+00> : vector<8xf32>
    %438 = vector.multi_reduction <add>, %437, %cst_149 [1] : vector<8x16xf32> to vector<8xf32>
    %439 = vector.shape_cast %438 : vector<8xf32> to vector<8x1xf32>
    %440 = math.sqrt %439 : vector<8x1xf32>
    %cst_150 = arith.constant 9.99999996E-13 : f32
    %441 = vector.broadcast %cst_150 : f32 to vector<8x1xf32>
    %442 = arith.maximumf %440, %441 : vector<8x1xf32>
    %443 = vector.broadcast %442 : vector<8x1xf32> to vector<8x16xf32>
    %444 = arith.divf %348, %443 : vector<8x16xf32>
    %445 = arith.mulf %444, %444 : vector<8x16xf32>
    %446 = vector.shape_cast %445 : vector<8x16xf32> to vector<1x8x16xf32>
    %cst_151 = arith.constant dense<0.000000e+00> : vector<1xf32>
    %447 = vector.multi_reduction <add>, %446, %cst_151 [1, 2] : vector<1x8x16xf32> to vector<1xf32>
    %448 = vector.shape_cast %447 : vector<1xf32> to vector<1x1x1xf32>
    %449 = vector.extract %448[0, 0, 0] : f32 from vector<1x1x1xf32>
    %450 = vector.broadcast %449 : f32 to vector<1x1xf32>
    %451 = math.sqrt %450 : vector<1x1xf32>
    %cst_152 = arith.constant 9.99999996E-13 : f32
    %452 = vector.broadcast %cst_152 : f32 to vector<1x1xf32>
    %453 = arith.maximumf %451, %452 : vector<1x1xf32>
    %454 = vector.broadcast %453 : vector<1x1xf32> to vector<8x16xf32>
    %455 = arith.divf %444, %454 : vector<8x16xf32>
    %c0_153 = arith.constant 0 : index
    %c1_154 = arith.constant 1 : index
    %c4_155 = arith.constant 4 : index
    %c0_156 = arith.constant 0 : index
    %c0_157 = arith.constant 0 : index
    %456 = vector.load %arg6[%c0_153, %c1_154, %c4_155, %c0_156, %c0_157] : memref<1x3x9x8x16xf32, #tpu.memory_space<vmem>>, vector<1x1x1x8x16xf32>
    %457 = vector.shape_cast %456 : vector<1x1x1x8x16xf32> to vector<8x16xf32>
    %458 = vector.shape_cast %455 : vector<8x16xf32> to vector<1x1x1x8x16xf32>
    tpu.vector_store %arg6[%c0_153, %c1_154, %c4_155, %c0_156, %c0_157], %458 {strides = array<i32>} : memref<1x3x9x8x16xf32, #tpu.memory_space<vmem>>, vector<1x1x1x8x16xf32>,
    %459 = arith.mulf %73, %73 : vector<8x16xf32>
    %cst_158 = arith.constant dense<0.000000e+00> : vector<8xf32>
    %460 = vector.multi_reduction <add>, %459, %cst_158 [1] : vector<8x16xf32> to vector<8xf32>
    %461 = vector.shape_cast %460 : vector<8xf32> to vector<8x1xf32>
    %462 = math.sqrt %461 : vector<8x1xf32>
    %cst_159 = arith.constant 9.99999996E-13 : f32
    %463 = vector.broadcast %cst_159 : f32 to vector<8x1xf32>
    %464 = arith.maximumf %462, %463 : vector<8x1xf32>
    %465 = vector.broadcast %464 : vector<8x1xf32> to vector<8x16xf32>
    %466 = arith.divf %73, %465 : vector<8x16xf32>
    %467 = arith.mulf %466, %466 : vector<8x16xf32>
    %468 = vector.shape_cast %467 : vector<8x16xf32> to vector<1x8x16xf32>
    %cst_160 = arith.constant dense<0.000000e+00> : vector<1xf32>
    %469 = vector.multi_reduction <add>, %468, %cst_160 [1, 2] : vector<1x8x16xf32> to vector<1xf32>
    %470 = vector.shape_cast %469 : vector<1xf32> to vector<1x1x1xf32>
    %471 = vector.extract %470[0, 0, 0] : f32 from vector<1x1x1xf32>
    %472 = vector.broadcast %471 : f32 to vector<1x1xf32>
    %473 = math.sqrt %472 : vector<1x1xf32>
    %cst_161 = arith.constant 9.99999996E-13 : f32
    %474 = vector.broadcast %cst_161 : f32 to vector<1x1xf32>
    %475 = arith.maximumf %473, %474 : vector<1x1xf32>
    %476 = vector.broadcast %475 : vector<1x1xf32> to vector<8x16xf32>
    %477 = arith.divf %466, %476 : vector<8x16xf32>
    %c0_162 = arith.constant 0 : index
    %c1_163 = arith.constant 1 : index
    %c5_164 = arith.constant 5 : index
    %c0_165 = arith.constant 0 : index
    %c0_166 = arith.constant 0 : index
    %478 = vector.load %arg6[%c0_162, %c1_163, %c5_164, %c0_165, %c0_166] : memref<1x3x9x8x16xf32, #tpu.memory_space<vmem>>, vector<1x1x1x8x16xf32>
    %479 = vector.shape_cast %478 : vector<1x1x1x8x16xf32> to vector<8x16xf32>
    %480 = vector.shape_cast %477 : vector<8x16xf32> to vector<1x1x1x8x16xf32>
    tpu.vector_store %arg6[%c0_162, %c1_163, %c5_164, %c0_165, %c0_166], %480 {strides = array<i32>} : memref<1x3x9x8x16xf32, #tpu.memory_space<vmem>>, vector<1x1x1x8x16xf32>,
    %481 = arith.mulf %82, %82 : vector<8x16xf32>
    %cst_167 = arith.constant dense<0.000000e+00> : vector<8xf32>
    %482 = vector.multi_reduction <add>, %481, %cst_167 [1] : vector<8x16xf32> to vector<8xf32>
    %483 = vector.shape_cast %482 : vector<8xf32> to vector<8x1xf32>
    %484 = math.sqrt %483 : vector<8x1xf32>
    %cst_168 = arith.constant 9.99999996E-13 : f32
    %485 = vector.broadcast %cst_168 : f32 to vector<8x1xf32>
    %486 = arith.maximumf %484, %485 : vector<8x1xf32>
    %487 = vector.broadcast %486 : vector<8x1xf32> to vector<8x16xf32>
    %488 = arith.divf %82, %487 : vector<8x16xf32>
    %489 = arith.mulf %488, %488 : vector<8x16xf32>
    %490 = vector.shape_cast %489 : vector<8x16xf32> to vector<1x8x16xf32>
    %cst_169 = arith.constant dense<0.000000e+00> : vector<1xf32>
    %491 = vector.multi_reduction <add>, %490, %cst_169 [1, 2] : vector<1x8x16xf32> to vector<1xf32>
    %492 = vector.shape_cast %491 : vector<1xf32> to vector<1x1x1xf32>
    %493 = vector.extract %492[0, 0, 0] : f32 from vector<1x1x1xf32>
    %494 = vector.broadcast %493 : f32 to vector<1x1xf32>
    %495 = math.sqrt %494 : vector<1x1xf32>
    %cst_170 = arith.constant 9.99999996E-13 : f32
    %496 = vector.broadcast %cst_170 : f32 to vector<1x1xf32>
    %497 = arith.maximumf %495, %496 : vector<1x1xf32>
    %498 = vector.broadcast %497 : vector<1x1xf32> to vector<8x16xf32>
    %499 = arith.divf %488, %498 : vector<8x16xf32>
    %c0_171 = arith.constant 0 : index
    %c1_172 = arith.constant 1 : index
    %c6_173 = arith.constant 6 : index
    %c0_174 = arith.constant 0 : index
    %c0_175 = arith.constant 0 : index
    %500 = vector.load %arg6[%c0_171, %c1_172, %c6_173, %c0_174, %c0_175] : memref<1x3x9x8x16xf32, #tpu.memory_space<vmem>>, vector<1x1x1x8x16xf32>
    %501 = vector.shape_cast %500 : vector<1x1x1x8x16xf32> to vector<8x16xf32>
    %502 = vector.shape_cast %499 : vector<8x16xf32> to vector<1x1x1x8x16xf32>
    tpu.vector_store %arg6[%c0_171, %c1_172, %c6_173, %c0_174, %c0_175], %502 {strides = array<i32>} : memref<1x3x9x8x16xf32, #tpu.memory_space<vmem>>, vector<1x1x1x8x16xf32>,
    %503 = arith.mulf %91, %91 : vector<8x16xf32>
    %cst_176 = arith.constant dense<0.000000e+00> : vector<8xf32>
    %504 = vector.multi_reduction <add>, %503, %cst_176 [1] : vector<8x16xf32> to vector<8xf32>
    %505 = vector.shape_cast %504 : vector<8xf32> to vector<8x1xf32>
    %506 = math.sqrt %505 : vector<8x1xf32>
    %cst_177 = arith.constant 9.99999996E-13 : f32
    %507 = vector.broadcast %cst_177 : f32 to vector<8x1xf32>
    %508 = arith.maximumf %506, %507 : vector<8x1xf32>
    %509 = vector.broadcast %508 : vector<8x1xf32> to vector<8x16xf32>
    %510 = arith.divf %91, %509 : vector<8x16xf32>
    %511 = arith.mulf %510, %510 : vector<8x16xf32>
    %512 = vector.shape_cast %511 : vector<8x16xf32> to vector<1x8x16xf32>
    %cst_178 = arith.constant dense<0.000000e+00> : vector<1xf32>
    %513 = vector.multi_reduction <add>, %512, %cst_178 [1, 2] : vector<1x8x16xf32> to vector<1xf32>
    %514 = vector.shape_cast %513 : vector<1xf32> to vector<1x1x1xf32>
    %515 = vector.extract %514[0, 0, 0] : f32 from vector<1x1x1xf32>
    %516 = vector.broadcast %515 : f32 to vector<1x1xf32>
    %517 = math.sqrt %516 : vector<1x1xf32>
    %cst_179 = arith.constant 9.99999996E-13 : f32
    %518 = vector.broadcast %cst_179 : f32 to vector<1x1xf32>
    %519 = arith.maximumf %517, %518 : vector<1x1xf32>
    %520 = vector.broadcast %519 : vector<1x1xf32> to vector<8x16xf32>
    %521 = arith.divf %510, %520 : vector<8x16xf32>
    %c0_180 = arith.constant 0 : index
    %c1_181 = arith.constant 1 : index
    %c7_182 = arith.constant 7 : index
    %c0_183 = arith.constant 0 : index
    %c0_184 = arith.constant 0 : index
    %522 = vector.load %arg6[%c0_180, %c1_181, %c7_182, %c0_183, %c0_184] : memref<1x3x9x8x16xf32, #tpu.memory_space<vmem>>, vector<1x1x1x8x16xf32>
    %523 = vector.shape_cast %522 : vector<1x1x1x8x16xf32> to vector<8x16xf32>
    %524 = vector.shape_cast %521 : vector<8x16xf32> to vector<1x1x1x8x16xf32>
    tpu.vector_store %arg6[%c0_180, %c1_181, %c7_182, %c0_183, %c0_184], %524 {strides = array<i32>} : memref<1x3x9x8x16xf32, #tpu.memory_space<vmem>>, vector<1x1x1x8x16xf32>,
    %525 = arith.mulf %100, %100 : vector<8x16xf32>
    %cst_185 = arith.constant dense<0.000000e+00> : vector<8xf32>
    %526 = vector.multi_reduction <add>, %525, %cst_185 [1] : vector<8x16xf32> to vector<8xf32>
    %527 = vector.shape_cast %526 : vector<8xf32> to vector<8x1xf32>
    %528 = math.sqrt %527 : vector<8x1xf32>
    %cst_186 = arith.constant 9.99999996E-13 : f32
    %529 = vector.broadcast %cst_186 : f32 to vector<8x1xf32>
    %530 = arith.maximumf %528, %529 : vector<8x1xf32>
    %531 = vector.broadcast %530 : vector<8x1xf32> to vector<8x16xf32>
    %532 = arith.divf %100, %531 : vector<8x16xf32>
    %533 = arith.mulf %532, %532 : vector<8x16xf32>
    %534 = vector.shape_cast %533 : vector<8x16xf32> to vector<1x8x16xf32>
    %cst_187 = arith.constant dense<0.000000e+00> : vector<1xf32>
    %535 = vector.multi_reduction <add>, %534, %cst_187 [1, 2] : vector<1x8x16xf32> to vector<1xf32>
    %536 = vector.shape_cast %535 : vector<1xf32> to vector<1x1x1xf32>
    %537 = vector.extract %536[0, 0, 0] : f32 from vector<1x1x1xf32>
    %538 = vector.broadcast %537 : f32 to vector<1x1xf32>
    %539 = math.sqrt %538 : vector<1x1xf32>
    %cst_188 = arith.constant 9.99999996E-13 : f32
    %540 = vector.broadcast %cst_188 : f32 to vector<1x1xf32>
    %541 = arith.maximumf %539, %540 : vector<1x1xf32>
    %542 = vector.broadcast %541 : vector<1x1xf32> to vector<8x16xf32>
    %543 = arith.divf %532, %542 : vector<8x16xf32>
    %c0_189 = arith.constant 0 : index
    %c1_190 = arith.constant 1 : index
    %c8_191 = arith.constant 8 : index
    %c0_192 = arith.constant 0 : index
    %c0_193 = arith.constant 0 : index
    %544 = vector.load %arg6[%c0_189, %c1_190, %c8_191, %c0_192, %c0_193] : memref<1x3x9x8x16xf32, #tpu.memory_space<vmem>>, vector<1x1x1x8x16xf32>
    %545 = vector.shape_cast %544 : vector<1x1x1x8x16xf32> to vector<8x16xf32>
    %546 = vector.shape_cast %543 : vector<8x16xf32> to vector<1x1x1x8x16xf32>
    tpu.vector_store %arg6[%c0_189, %c1_190, %c8_191, %c0_192, %c0_193], %546 {strides = array<i32>} : memref<1x3x9x8x16xf32, #tpu.memory_space<vmem>>, vector<1x1x1x8x16xf32>,
    %547 = arith.addf %109, %118 : vector<8x16xf32>
    %548 = arith.addf %547, %127 : vector<8x16xf32>
    %549 = arith.addf %548, %136 : vector<8x16xf32>
    %550 = arith.addf %109, %118 : vector<8x16xf32>
    %551 = arith.addf %127, %136 : vector<8x16xf32>
    %552 = arith.addf %109, %127 : vector<8x16xf32>
    %553 = arith.addf %118, %136 : vector<8x16xf32>
    %554 = arith.mulf %549, %549 : vector<8x16xf32>
    %cst_194 = arith.constant dense<0.000000e+00> : vector<8xf32>
    %555 = vector.multi_reduction <add>, %554, %cst_194 [1] : vector<8x16xf32> to vector<8xf32>
    %556 = vector.shape_cast %555 : vector<8xf32> to vector<8x1xf32>
    %557 = math.sqrt %556 : vector<8x1xf32>
    %cst_195 = arith.constant 9.99999996E-13 : f32
    %558 = vector.broadcast %cst_195 : f32 to vector<8x1xf32>
    %559 = arith.maximumf %557, %558 : vector<8x1xf32>
    %560 = vector.broadcast %559 : vector<8x1xf32> to vector<8x16xf32>
    %561 = arith.divf %549, %560 : vector<8x16xf32>
    %562 = arith.mulf %561, %561 : vector<8x16xf32>
    %563 = vector.shape_cast %562 : vector<8x16xf32> to vector<1x8x16xf32>
    %cst_196 = arith.constant dense<0.000000e+00> : vector<1xf32>
    %564 = vector.multi_reduction <add>, %563, %cst_196 [1, 2] : vector<1x8x16xf32> to vector<1xf32>
    %565 = vector.shape_cast %564 : vector<1xf32> to vector<1x1x1xf32>
    %566 = vector.extract %565[0, 0, 0] : f32 from vector<1x1x1xf32>
    %567 = vector.broadcast %566 : f32 to vector<1x1xf32>
    %568 = math.sqrt %567 : vector<1x1xf32>
    %cst_197 = arith.constant 9.99999996E-13 : f32
    %569 = vector.broadcast %cst_197 : f32 to vector<1x1xf32>
    %570 = arith.maximumf %568, %569 : vector<1x1xf32>
    %571 = vector.broadcast %570 : vector<1x1xf32> to vector<8x16xf32>
    %572 = arith.divf %561, %571 : vector<8x16xf32>
    %c0_198 = arith.constant 0 : index
    %c2_199 = arith.constant 2 : index
    %c0_200 = arith.constant 0 : index
    %c0_201 = arith.constant 0 : index
    %c0_202 = arith.constant 0 : index
    %573 = vector.load %arg6[%c0_198, %c2_199, %c0_200, %c0_201, %c0_202] : memref<1x3x9x8x16xf32, #tpu.memory_space<vmem>>, vector<1x1x1x8x16xf32>
    %574 = vector.shape_cast %573 : vector<1x1x1x8x16xf32> to vector<8x16xf32>
    %575 = vector.shape_cast %572 : vector<8x16xf32> to vector<1x1x1x8x16xf32>
    tpu.vector_store %arg6[%c0_198, %c2_199, %c0_200, %c0_201, %c0_202], %575 {strides = array<i32>} : memref<1x3x9x8x16xf32, #tpu.memory_space<vmem>>, vector<1x1x1x8x16xf32>,
    %576 = arith.mulf %550, %550 : vector<8x16xf32>
    %cst_203 = arith.constant dense<0.000000e+00> : vector<8xf32>
    %577 = vector.multi_reduction <add>, %576, %cst_203 [1] : vector<8x16xf32> to vector<8xf32>
    %578 = vector.shape_cast %577 : vector<8xf32> to vector<8x1xf32>
    %579 = math.sqrt %578 : vector<8x1xf32>
    %cst_204 = arith.constant 9.99999996E-13 : f32
    %580 = vector.broadcast %cst_204 : f32 to vector<8x1xf32>
    %581 = arith.maximumf %579, %580 : vector<8x1xf32>
    %582 = vector.broadcast %581 : vector<8x1xf32> to vector<8x16xf32>
    %583 = arith.divf %550, %582 : vector<8x16xf32>
    %584 = arith.mulf %583, %583 : vector<8x16xf32>
    %585 = vector.shape_cast %584 : vector<8x16xf32> to vector<1x8x16xf32>
    %cst_205 = arith.constant dense<0.000000e+00> : vector<1xf32>
    %586 = vector.multi_reduction <add>, %585, %cst_205 [1, 2] : vector<1x8x16xf32> to vector<1xf32>
    %587 = vector.shape_cast %586 : vector<1xf32> to vector<1x1x1xf32>
    %588 = vector.extract %587[0, 0, 0] : f32 from vector<1x1x1xf32>
    %589 = vector.broadcast %588 : f32 to vector<1x1xf32>
    %590 = math.sqrt %589 : vector<1x1xf32>
    %cst_206 = arith.constant 9.99999996E-13 : f32
    %591 = vector.broadcast %cst_206 : f32 to vector<1x1xf32>
    %592 = arith.maximumf %590, %591 : vector<1x1xf32>
    %593 = vector.broadcast %592 : vector<1x1xf32> to vector<8x16xf32>
    %594 = arith.divf %583, %593 : vector<8x16xf32>
    %c0_207 = arith.constant 0 : index
    %c2_208 = arith.constant 2 : index
    %c1_209 = arith.constant 1 : index
    %c0_210 = arith.constant 0 : index
    %c0_211 = arith.constant 0 : index
    %595 = vector.load %arg6[%c0_207, %c2_208, %c1_209, %c0_210, %c0_211] : memref<1x3x9x8x16xf32, #tpu.memory_space<vmem>>, vector<1x1x1x8x16xf32>
    %596 = vector.shape_cast %595 : vector<1x1x1x8x16xf32> to vector<8x16xf32>
    %597 = vector.shape_cast %594 : vector<8x16xf32> to vector<1x1x1x8x16xf32>
    tpu.vector_store %arg6[%c0_207, %c2_208, %c1_209, %c0_210, %c0_211], %597 {strides = array<i32>} : memref<1x3x9x8x16xf32, #tpu.memory_space<vmem>>, vector<1x1x1x8x16xf32>,
    %598 = arith.mulf %551, %551 : vector<8x16xf32>
    %cst_212 = arith.constant dense<0.000000e+00> : vector<8xf32>
    %599 = vector.multi_reduction <add>, %598, %cst_212 [1] : vector<8x16xf32> to vector<8xf32>
    %600 = vector.shape_cast %599 : vector<8xf32> to vector<8x1xf32>
    %601 = math.sqrt %600 : vector<8x1xf32>
    %cst_213 = arith.constant 9.99999996E-13 : f32
    %602 = vector.broadcast %cst_213 : f32 to vector<8x1xf32>
    %603 = arith.maximumf %601, %602 : vector<8x1xf32>
    %604 = vector.broadcast %603 : vector<8x1xf32> to vector<8x16xf32>
    %605 = arith.divf %551, %604 : vector<8x16xf32>
    %606 = arith.mulf %605, %605 : vector<8x16xf32>
    %607 = vector.shape_cast %606 : vector<8x16xf32> to vector<1x8x16xf32>
    %cst_214 = arith.constant dense<0.000000e+00> : vector<1xf32>
    %608 = vector.multi_reduction <add>, %607, %cst_214 [1, 2] : vector<1x8x16xf32> to vector<1xf32>
    %609 = vector.shape_cast %608 : vector<1xf32> to vector<1x1x1xf32>
    %610 = vector.extract %609[0, 0, 0] : f32 from vector<1x1x1xf32>
    %611 = vector.broadcast %610 : f32 to vector<1x1xf32>
    %612 = math.sqrt %611 : vector<1x1xf32>
    %cst_215 = arith.constant 9.99999996E-13 : f32
    %613 = vector.broadcast %cst_215 : f32 to vector<1x1xf32>
    %614 = arith.maximumf %612, %613 : vector<1x1xf32>
    %615 = vector.broadcast %614 : vector<1x1xf32> to vector<8x16xf32>
    %616 = arith.divf %605, %615 : vector<8x16xf32>
    %c0_216 = arith.constant 0 : index
    %c2_217 = arith.constant 2 : index
    %c2_218 = arith.constant 2 : index
    %c0_219 = arith.constant 0 : index
    %c0_220 = arith.constant 0 : index
    %617 = vector.load %arg6[%c0_216, %c2_217, %c2_218, %c0_219, %c0_220] : memref<1x3x9x8x16xf32, #tpu.memory_space<vmem>>, vector<1x1x1x8x16xf32>
    %618 = vector.shape_cast %617 : vector<1x1x1x8x16xf32> to vector<8x16xf32>
    %619 = vector.shape_cast %616 : vector<8x16xf32> to vector<1x1x1x8x16xf32>
    tpu.vector_store %arg6[%c0_216, %c2_217, %c2_218, %c0_219, %c0_220], %619 {strides = array<i32>} : memref<1x3x9x8x16xf32, #tpu.memory_space<vmem>>, vector<1x1x1x8x16xf32>,
    %620 = arith.mulf %552, %552 : vector<8x16xf32>
    %cst_221 = arith.constant dense<0.000000e+00> : vector<8xf32>
    %621 = vector.multi_reduction <add>, %620, %cst_221 [1] : vector<8x16xf32> to vector<8xf32>
    %622 = vector.shape_cast %621 : vector<8xf32> to vector<8x1xf32>
    %623 = math.sqrt %622 : vector<8x1xf32>
    %cst_222 = arith.constant 9.99999996E-13 : f32
    %624 = vector.broadcast %cst_222 : f32 to vector<8x1xf32>
    %625 = arith.maximumf %623, %624 : vector<8x1xf32>
    %626 = vector.broadcast %625 : vector<8x1xf32> to vector<8x16xf32>
    %627 = arith.divf %552, %626 : vector<8x16xf32>
    %628 = arith.mulf %627, %627 : vector<8x16xf32>
    %629 = vector.shape_cast %628 : vector<8x16xf32> to vector<1x8x16xf32>
    %cst_223 = arith.constant dense<0.000000e+00> : vector<1xf32>
    %630 = vector.multi_reduction <add>, %629, %cst_223 [1, 2] : vector<1x8x16xf32> to vector<1xf32>
    %631 = vector.shape_cast %630 : vector<1xf32> to vector<1x1x1xf32>
    %632 = vector.extract %631[0, 0, 0] : f32 from vector<1x1x1xf32>
    %633 = vector.broadcast %632 : f32 to vector<1x1xf32>
    %634 = math.sqrt %633 : vector<1x1xf32>
    %cst_224 = arith.constant 9.99999996E-13 : f32
    %635 = vector.broadcast %cst_224 : f32 to vector<1x1xf32>
    %636 = arith.maximumf %634, %635 : vector<1x1xf32>
    %637 = vector.broadcast %636 : vector<1x1xf32> to vector<8x16xf32>
    %638 = arith.divf %627, %637 : vector<8x16xf32>
    %c0_225 = arith.constant 0 : index
    %c2_226 = arith.constant 2 : index
    %c3_227 = arith.constant 3 : index
    %c0_228 = arith.constant 0 : index
    %c0_229 = arith.constant 0 : index
    %639 = vector.load %arg6[%c0_225, %c2_226, %c3_227, %c0_228, %c0_229] : memref<1x3x9x8x16xf32, #tpu.memory_space<vmem>>, vector<1x1x1x8x16xf32>
    %640 = vector.shape_cast %639 : vector<1x1x1x8x16xf32> to vector<8x16xf32>
    %641 = vector.shape_cast %638 : vector<8x16xf32> to vector<1x1x1x8x16xf32>
    tpu.vector_store %arg6[%c0_225, %c2_226, %c3_227, %c0_228, %c0_229], %641 {strides = array<i32>} : memref<1x3x9x8x16xf32, #tpu.memory_space<vmem>>, vector<1x1x1x8x16xf32>,
    %642 = arith.mulf %553, %553 : vector<8x16xf32>
    %cst_230 = arith.constant dense<0.000000e+00> : vector<8xf32>
    %643 = vector.multi_reduction <add>, %642, %cst_230 [1] : vector<8x16xf32> to vector<8xf32>
    %644 = vector.shape_cast %643 : vector<8xf32> to vector<8x1xf32>
    %645 = math.sqrt %644 : vector<8x1xf32>
    %cst_231 = arith.constant 9.99999996E-13 : f32
    %646 = vector.broadcast %cst_231 : f32 to vector<8x1xf32>
    %647 = arith.maximumf %645, %646 : vector<8x1xf32>
    %648 = vector.broadcast %647 : vector<8x1xf32> to vector<8x16xf32>
    %649 = arith.divf %553, %648 : vector<8x16xf32>
    %650 = arith.mulf %649, %649 : vector<8x16xf32>
    %651 = vector.shape_cast %650 : vector<8x16xf32> to vector<1x8x16xf32>
    %cst_232 = arith.constant dense<0.000000e+00> : vector<1xf32>
    %652 = vector.multi_reduction <add>, %651, %cst_232 [1, 2] : vector<1x8x16xf32> to vector<1xf32>
    %653 = vector.shape_cast %652 : vector<1xf32> to vector<1x1x1xf32>
    %654 = vector.extract %653[0, 0, 0] : f32 from vector<1x1x1xf32>
    %655 = vector.broadcast %654 : f32 to vector<1x1xf32>
    %656 = math.sqrt %655 : vector<1x1xf32>
    %cst_233 = arith.constant 9.99999996E-13 : f32
    %657 = vector.broadcast %cst_233 : f32 to vector<1x1xf32>
    %658 = arith.maximumf %656, %657 : vector<1x1xf32>
    %659 = vector.broadcast %658 : vector<1x1xf32> to vector<8x16xf32>
    %660 = arith.divf %649, %659 : vector<8x16xf32>
    %c0_234 = arith.constant 0 : index
    %c2_235 = arith.constant 2 : index
    %c4_236 = arith.constant 4 : index
    %c0_237 = arith.constant 0 : index
    %c0_238 = arith.constant 0 : index
    %661 = vector.load %arg6[%c0_234, %c2_235, %c4_236, %c0_237, %c0_238] : memref<1x3x9x8x16xf32, #tpu.memory_space<vmem>>, vector<1x1x1x8x16xf32>
    %662 = vector.shape_cast %661 : vector<1x1x1x8x16xf32> to vector<8x16xf32>
    %663 = vector.shape_cast %660 : vector<8x16xf32> to vector<1x1x1x8x16xf32>
    tpu.vector_store %arg6[%c0_234, %c2_235, %c4_236, %c0_237, %c0_238], %663 {strides = array<i32>} : memref<1x3x9x8x16xf32, #tpu.memory_space<vmem>>, vector<1x1x1x8x16xf32>,
    %664 = arith.mulf %109, %109 : vector<8x16xf32>
    %cst_239 = arith.constant dense<0.000000e+00> : vector<8xf32>
    %665 = vector.multi_reduction <add>, %664, %cst_239 [1] : vector<8x16xf32> to vector<8xf32>
    %666 = vector.shape_cast %665 : vector<8xf32> to vector<8x1xf32>
    %667 = math.sqrt %666 : vector<8x1xf32>
    %cst_240 = arith.constant 9.99999996E-13 : f32
    %668 = vector.broadcast %cst_240 : f32 to vector<8x1xf32>
    %669 = arith.maximumf %667, %668 : vector<8x1xf32>
    %670 = vector.broadcast %669 : vector<8x1xf32> to vector<8x16xf32>
    %671 = arith.divf %109, %670 : vector<8x16xf32>
    %672 = arith.mulf %671, %671 : vector<8x16xf32>
    %673 = vector.shape_cast %672 : vector<8x16xf32> to vector<1x8x16xf32>
    %cst_241 = arith.constant dense<0.000000e+00> : vector<1xf32>
    %674 = vector.multi_reduction <add>, %673, %cst_241 [1, 2] : vector<1x8x16xf32> to vector<1xf32>
    %675 = vector.shape_cast %674 : vector<1xf32> to vector<1x1x1xf32>
    %676 = vector.extract %675[0, 0, 0] : f32 from vector<1x1x1xf32>
    %677 = vector.broadcast %676 : f32 to vector<1x1xf32>
    %678 = math.sqrt %677 : vector<1x1xf32>
    %cst_242 = arith.constant 9.99999996E-13 : f32
    %679 = vector.broadcast %cst_242 : f32 to vector<1x1xf32>
    %680 = arith.maximumf %678, %679 : vector<1x1xf32>
    %681 = vector.broadcast %680 : vector<1x1xf32> to vector<8x16xf32>
    %682 = arith.divf %671, %681 : vector<8x16xf32>
    %c0_243 = arith.constant 0 : index
    %c2_244 = arith.constant 2 : index
    %c5_245 = arith.constant 5 : index
    %c0_246 = arith.constant 0 : index
    %c0_247 = arith.constant 0 : index
    %683 = vector.load %arg6[%c0_243, %c2_244, %c5_245, %c0_246, %c0_247] : memref<1x3x9x8x16xf32, #tpu.memory_space<vmem>>, vector<1x1x1x8x16xf32>
    %684 = vector.shape_cast %683 : vector<1x1x1x8x16xf32> to vector<8x16xf32>
    %685 = vector.shape_cast %682 : vector<8x16xf32> to vector<1x1x1x8x16xf32>
    tpu.vector_store %arg6[%c0_243, %c2_244, %c5_245, %c0_246, %c0_247], %685 {strides = array<i32>} : memref<1x3x9x8x16xf32, #tpu.memory_space<vmem>>, vector<1x1x1x8x16xf32>,
    %686 = arith.mulf %118, %118 : vector<8x16xf32>
    %cst_248 = arith.constant dense<0.000000e+00> : vector<8xf32>
    %687 = vector.multi_reduction <add>, %686, %cst_248 [1] : vector<8x16xf32> to vector<8xf32>
    %688 = vector.shape_cast %687 : vector<8xf32> to vector<8x1xf32>
    %689 = math.sqrt %688 : vector<8x1xf32>
    %cst_249 = arith.constant 9.99999996E-13 : f32
    %690 = vector.broadcast %cst_249 : f32 to vector<8x1xf32>
    %691 = arith.maximumf %689, %690 : vector<8x1xf32>
    %692 = vector.broadcast %691 : vector<8x1xf32> to vector<8x16xf32>
    %693 = arith.divf %118, %692 : vector<8x16xf32>
    %694 = arith.mulf %693, %693 : vector<8x16xf32>
    %695 = vector.shape_cast %694 : vector<8x16xf32> to vector<1x8x16xf32>
    %cst_250 = arith.constant dense<0.000000e+00> : vector<1xf32>
    %696 = vector.multi_reduction <add>, %695, %cst_250 [1, 2] : vector<1x8x16xf32> to vector<1xf32>
    %697 = vector.shape_cast %696 : vector<1xf32> to vector<1x1x1xf32>
    %698 = vector.extract %697[0, 0, 0] : f32 from vector<1x1x1xf32>
    %699 = vector.broadcast %698 : f32 to vector<1x1xf32>
    %700 = math.sqrt %699 : vector<1x1xf32>
    %cst_251 = arith.constant 9.99999996E-13 : f32
    %701 = vector.broadcast %cst_251 : f32 to vector<1x1xf32>
    %702 = arith.maximumf %700, %701 : vector<1x1xf32>
    %703 = vector.broadcast %702 : vector<1x1xf32> to vector<8x16xf32>
    %704 = arith.divf %693, %703 : vector<8x16xf32>
    %c0_252 = arith.constant 0 : index
    %c2_253 = arith.constant 2 : index
    %c6_254 = arith.constant 6 : index
    %c0_255 = arith.constant 0 : index
    %c0_256 = arith.constant 0 : index
    %705 = vector.load %arg6[%c0_252, %c2_253, %c6_254, %c0_255, %c0_256] : memref<1x3x9x8x16xf32, #tpu.memory_space<vmem>>, vector<1x1x1x8x16xf32>
    %706 = vector.shape_cast %705 : vector<1x1x1x8x16xf32> to vector<8x16xf32>
    %707 = vector.shape_cast %704 : vector<8x16xf32> to vector<1x1x1x8x16xf32>
    tpu.vector_store %arg6[%c0_252, %c2_253, %c6_254, %c0_255, %c0_256], %707 {strides = array<i32>} : memref<1x3x9x8x16xf32, #tpu.memory_space<vmem>>, vector<1x1x1x8x16xf32>,
    %708 = arith.mulf %127, %127 : vector<8x16xf32>
    %cst_257 = arith.constant dense<0.000000e+00> : vector<8xf32>
    %709 = vector.multi_reduction <add>, %708, %cst_257 [1] : vector<8x16xf32> to vector<8xf32>
    %710 = vector.shape_cast %709 : vector<8xf32> to vector<8x1xf32>
    %711 = math.sqrt %710 : vector<8x1xf32>
    %cst_258 = arith.constant 9.99999996E-13 : f32
    %712 = vector.broadcast %cst_258 : f32 to vector<8x1xf32>
    %713 = arith.maximumf %711, %712 : vector<8x1xf32>
    %714 = vector.broadcast %713 : vector<8x1xf32> to vector<8x16xf32>
    %715 = arith.divf %127, %714 : vector<8x16xf32>
    %716 = arith.mulf %715, %715 : vector<8x16xf32>
    %717 = vector.shape_cast %716 : vector<8x16xf32> to vector<1x8x16xf32>
    %cst_259 = arith.constant dense<0.000000e+00> : vector<1xf32>
    %718 = vector.multi_reduction <add>, %717, %cst_259 [1, 2] : vector<1x8x16xf32> to vector<1xf32>
    %719 = vector.shape_cast %718 : vector<1xf32> to vector<1x1x1xf32>
    %720 = vector.extract %719[0, 0, 0] : f32 from vector<1x1x1xf32>
    %721 = vector.broadcast %720 : f32 to vector<1x1xf32>
    %722 = math.sqrt %721 : vector<1x1xf32>
    %cst_260 = arith.constant 9.99999996E-13 : f32
    %723 = vector.broadcast %cst_260 : f32 to vector<1x1xf32>
    %724 = arith.maximumf %722, %723 : vector<1x1xf32>
    %725 = vector.broadcast %724 : vector<1x1xf32> to vector<8x16xf32>
    %726 = arith.divf %715, %725 : vector<8x16xf32>
    %c0_261 = arith.constant 0 : index
    %c2_262 = arith.constant 2 : index
    %c7_263 = arith.constant 7 : index
    %c0_264 = arith.constant 0 : index
    %c0_265 = arith.constant 0 : index
    %727 = vector.load %arg6[%c0_261, %c2_262, %c7_263, %c0_264, %c0_265] : memref<1x3x9x8x16xf32, #tpu.memory_space<vmem>>, vector<1x1x1x8x16xf32>
    %728 = vector.shape_cast %727 : vector<1x1x1x8x16xf32> to vector<8x16xf32>
    %729 = vector.shape_cast %726 : vector<8x16xf32> to vector<1x1x1x8x16xf32>
    tpu.vector_store %arg6[%c0_261, %c2_262, %c7_263, %c0_264, %c0_265], %729 {strides = array<i32>} : memref<1x3x9x8x16xf32, #tpu.memory_space<vmem>>, vector<1x1x1x8x16xf32>,
    %730 = arith.mulf %136, %136 : vector<8x16xf32>
    %cst_266 = arith.constant dense<0.000000e+00> : vector<8xf32>
    %731 = vector.multi_reduction <add>, %730, %cst_266 [1] : vector<8x16xf32> to vector<8xf32>
    %732 = vector.shape_cast %731 : vector<8xf32> to vector<8x1xf32>
    %733 = math.sqrt %732 : vector<8x1xf32>
    %cst_267 = arith.constant 9.99999996E-13 : f32
    %734 = vector.broadcast %cst_267 : f32 to vector<8x1xf32>
    %735 = arith.maximumf %733, %734 : vector<8x1xf32>
    %736 = vector.broadcast %735 : vector<8x1xf32> to vector<8x16xf32>
    %737 = arith.divf %136, %736 : vector<8x16xf32>
    %738 = arith.mulf %737, %737 : vector<8x16xf32>
    %739 = vector.shape_cast %738 : vector<8x16xf32> to vector<1x8x16xf32>
    %cst_268 = arith.constant dense<0.000000e+00> : vector<1xf32>
    %740 = vector.multi_reduction <add>, %739, %cst_268 [1, 2] : vector<1x8x16xf32> to vector<1xf32>
    %741 = vector.shape_cast %740 : vector<1xf32> to vector<1x1x1xf32>
    %742 = vector.extract %741[0, 0, 0] : f32 from vector<1x1x1xf32>
    %743 = vector.broadcast %742 : f32 to vector<1x1xf32>
    %744 = math.sqrt %743 : vector<1x1xf32>
    %cst_269 = arith.constant 9.99999996E-13 : f32
    %745 = vector.broadcast %cst_269 : f32 to vector<1x1xf32>
    %746 = arith.maximumf %744, %745 : vector<1x1xf32>
    %747 = vector.broadcast %746 : vector<1x1xf32> to vector<8x16xf32>
    %748 = arith.divf %737, %747 : vector<8x16xf32>
    %c0_270 = arith.constant 0 : index
    %c2_271 = arith.constant 2 : index
    %c8_272 = arith.constant 8 : index
    %c0_273 = arith.constant 0 : index
    %c0_274 = arith.constant 0 : index
    %749 = vector.load %arg6[%c0_270, %c2_271, %c8_272, %c0_273, %c0_274] : memref<1x3x9x8x16xf32, #tpu.memory_space<vmem>>, vector<1x1x1x8x16xf32>
    %750 = vector.shape_cast %749 : vector<1x1x1x8x16xf32> to vector<8x16xf32>
    %751 = vector.shape_cast %748 : vector<8x16xf32> to vector<1x1x1x8x16xf32>
    tpu.vector_store %arg6[%c0_270, %c2_271, %c8_272, %c0_273, %c0_274], %751 {strides = array<i32>} : memref<1x3x9x8x16xf32, #tpu.memory_space<vmem>>, vector<1x1x1x8x16xf32>,
    return
  }
  func.func @transform_0(%arg0: i32) -> (i32, i32, i32) {
    %c0_i32 = arith.constant 0 : i32
    %c0_i32_0 = arith.constant 0 : i32
    %c0_i32_1 = arith.constant 0 : i32
    return %arg0, %c0_i32, %c0_i32_0 : i32, i32, i32
  }
  func.func @transform_1(%arg0: i32) -> (i32, i32) {
    %c0_i32 = arith.constant 0 : i32
    %c0_i32_0 = arith.constant 0 : i32
    %c0_i32_1 = arith.constant 0 : i32
    return %c0_i32, %c0_i32_0 : i32, i32
  }
  func.func @transform_2(%arg0: i32) -> (i32, i32) {
    %c0_i32 = arith.constant 0 : i32
    %c0_i32_0 = arith.constant 0 : i32
    %c0_i32_1 = arith.constant 0 : i32
    return %c0_i32, %c0_i32_0 : i32, i32
  }
  func.func @transform_3(%arg0: i32) -> (i32, i32) {
    %c0_i32 = arith.constant 0 : i32
    %c0_i32_0 = arith.constant 0 : i32
    %c0_i32_1 = arith.constant 0 : i32
    return %c0_i32, %c0_i32_0 : i32, i32
  }
  func.func @transform_4(%arg0: i32) -> (i32, i32) {
    %c0_i32 = arith.constant 0 : i32
    %c0_i32_0 = arith.constant 0 : i32
    %c0_i32_1 = arith.constant 0 : i32
    return %c0_i32, %c0_i32_0 : i32, i32
  }
  func.func @transform_5(%arg0: i32) -> (i32, i32, i32, i32, i32) {
    %c0_i32 = arith.constant 0 : i32
    %c0_i32_0 = arith.constant 0 : i32
    %c0_i32_1 = arith.constant 0 : i32
    %c0_i32_2 = arith.constant 0 : i32
    %c0_i32_3 = arith.constant 0 : i32
    return %arg0, %c0_i32, %c0_i32_0, %c0_i32_1, %c0_i32_2 : i32, i32, i32, i32, i32
  }
}

module attributes {stable_mosaic.version = 11 : i64} {
  func.func @kernel(%arg0: i32, %arg1: memref<1x3x9x128xf32, #tpu.memory_space<vmem>>, %arg2: memref<1x2x9x9xf32, #tpu.memory_space<vmem>>) attributes {dimension_semantics = [#tpu.dimension_semantics<parallel>], iteration_bounds = array<i64: 2>, scalar_prefetch = 0 : i64, scratch_operands = 0 : i64, tpu.core_type = #tpu.core_type<tc>, window_params = [{transform_indices = @transform_0, window_bounds = array<i64: 1, 3, 9, 128>}, {transform_indices = @transform_1, window_bounds = array<i64: 1, 2, 9, 9>}]} {
    %c0 = arith.constant 0 : index
    %c0_0 = arith.constant 0 : index
    %c0_1 = arith.constant 0 : index
    %c0_2 = arith.constant 0 : index
    %0 = vector.load %arg1[%c0, %c0_0, %c0_1, %c0_2] : memref<1x3x9x128xf32, #tpu.memory_space<vmem>>, vector<1x1x9x128xf32>
    %1 = vector.shape_cast %0 : vector<1x1x9x128xf32> to vector<9x128xf32>
    %c0_3 = arith.constant 0 : index
    %c1 = arith.constant 1 : index
    %c0_4 = arith.constant 0 : index
    %c0_5 = arith.constant 0 : index
    %2 = vector.load %arg1[%c0_3, %c1, %c0_4, %c0_5] : memref<1x3x9x128xf32, #tpu.memory_space<vmem>>, vector<1x1x9x128xf32>
    %3 = vector.shape_cast %2 : vector<1x1x9x128xf32> to vector<9x128xf32>
    %cst = arith.constant dense<0.000000e+00> : vector<9x9xf32>
    %4 = tpu.matmul %1, %3, %cst {dimension_numbers = #tpu.dot_dimension_numbers<[1], [1], [0], [0], [0, 0, 1, 0], [], []>} : vector<9x128xf32>, vector<9x128xf32>, vector<9x9xf32> -> vector<9x9xf32>
    %c0_6 = arith.constant 0 : index
    %c0_7 = arith.constant 0 : index
    %c0_8 = arith.constant 0 : index
    %c0_9 = arith.constant 0 : index
    %5 = vector.load %arg2[%c0_6, %c0_7, %c0_8, %c0_9] : memref<1x2x9x9xf32, #tpu.memory_space<vmem>>, vector<1x1x9x9xf32>
    %6 = vector.shape_cast %5 : vector<1x1x9x9xf32> to vector<9x9xf32>
    %7 = vector.shape_cast %4 : vector<9x9xf32> to vector<1x1x9x9xf32>
    tpu.vector_store %arg2[%c0_6, %c0_7, %c0_8, %c0_9], %7 {strides = array<i32>} : memref<1x2x9x9xf32, #tpu.memory_space<vmem>>, vector<1x1x9x9xf32>,
    %c0_10 = arith.constant 0 : index
    %c2 = arith.constant 2 : index
    %c0_11 = arith.constant 0 : index
    %c0_12 = arith.constant 0 : index
    %8 = vector.load %arg1[%c0_10, %c2, %c0_11, %c0_12] : memref<1x3x9x128xf32, #tpu.memory_space<vmem>>, vector<1x1x9x128xf32>
    %9 = vector.shape_cast %8 : vector<1x1x9x128xf32> to vector<9x128xf32>
    %cst_13 = arith.constant dense<0.000000e+00> : vector<9x9xf32>
    %10 = tpu.matmul %1, %9, %cst_13 {dimension_numbers = #tpu.dot_dimension_numbers<[1], [1], [0], [0], [0, 0, 1, 0], [], []>} : vector<9x128xf32>, vector<9x128xf32>, vector<9x9xf32> -> vector<9x9xf32>
    %c0_14 = arith.constant 0 : index
    %c1_15 = arith.constant 1 : index
    %c0_16 = arith.constant 0 : index
    %c0_17 = arith.constant 0 : index
    %11 = vector.load %arg2[%c0_14, %c1_15, %c0_16, %c0_17] : memref<1x2x9x9xf32, #tpu.memory_space<vmem>>, vector<1x1x9x9xf32>
    %12 = vector.shape_cast %11 : vector<1x1x9x9xf32> to vector<9x9xf32>
    %13 = vector.shape_cast %10 : vector<9x9xf32> to vector<1x1x9x9xf32>
    tpu.vector_store %arg2[%c0_14, %c1_15, %c0_16, %c0_17], %13 {strides = array<i32>} : memref<1x2x9x9xf32, #tpu.memory_space<vmem>>, vector<1x1x9x9xf32>,
    return
  }
  func.func @transform_0(%arg0: i32) -> (i32, i32, i32, i32) {
    %c0_i32 = arith.constant 0 : i32
    %c0_i32_0 = arith.constant 0 : i32
    %c0_i32_1 = arith.constant 0 : i32
    %c0_i32_2 = arith.constant 0 : i32
    return %arg0, %c0_i32, %c0_i32_0, %c0_i32_1 : i32, i32, i32, i32
  }
  func.func @transform_1(%arg0: i32) -> (i32, i32, i32, i32) {
    %c0_i32 = arith.constant 0 : i32
    %c0_i32_0 = arith.constant 0 : i32
    %c0_i32_1 = arith.constant 0 : i32
    %c0_i32_2 = arith.constant 0 : i32
    return %arg0, %c0_i32, %c0_i32_0, %c0_i32_1 : i32, i32, i32, i32
  }
}

</mosaic_0001>

<bundles_post_ra>
// kernel: embed_region_forward.3
= control target key start
LH: loop header
LB: loop body
LE: loop exit
PB: predicated region body
PF: predicated region fallthrough
CT: control target
= control target key end

     0   :  { %s411_s6 = smov 0   ;;  %s428_s0 = inlined_call_operand.vmem [shape: f32[2,3,9,128], index: 0, kind: input, shape index: {}]   ;;  %s429_s1 = inlined_call_operand.vmem [shape: f32[2,2,9,9], index: 1, kind: output, shape index: {}]  }
   0x1 LB: > { %s337_s7 = sadd.s32 4294967295, %s399_s6   ;;  %p341_p0 = scmp.ge.s32.totalorder %s399_s6, 1  ;;  %s399_s6 = sphi %s411_s6, %s11_s6  }
   0x2   : > { %p87_p1 = scmp.lt.s32.totalorder %s399_s6, 3 }
   0x4   : > { %p88_p2 = pnand %p341_p0, %p87_p1 }
   0x5   : > { %p107_p3 = scmp.lt.s32.totalorder (!%p88_p2), %s337_s7, 1  ;;  %vm199_vm0 = vcmask (!%p88_p2), 65536   ;;  %vm197_vm1 = vcmask (!%p88_p2), 72704  }
   0x6   : > { %91 = sbr.rel (%p88_p2) target bundleno = 243 (0xf3), region = 24 }
   0xd   : > { %s431_s7 = smov (!%p107_p3, %s337_s7), 1 }
   0xe   : > { %s384_s8 = smul.u32 48, %s431_s7  ;;  %s353_s12 = sshll.u32 %s431_s7, 5 }
   0xf   : > { %s116_s15 = scalar_lea.vmem %s429_s1, %s353_s12 }
  0x10   : > { %s111_s11 = scalar_lea.vmem %s428_s0, %s384_s8 }
  0x11   : > { %v345_v0 = vld [vmem:[%s111_s11 + $0x10] sm:$0xff]  ;;  %v346_v1 = vld [vmem:[%s111_s11 + $0x18] sm:$0x1]  ;;  %v347_v2 = vld [vmem:[%s111_s11 + $0x20] sm:$0xff] }
  0x12   : > { %v376_v3 = vpack.c.bf16 %v346_v1, %v345_v0  ;;  %v348_v4 = vld [vmem:[%s111_s11 + $0x28] sm:$0x1]  ;;  %v117_v5 = vld [vmem:[%s111_s11] sm:$0xff] }
  0x13   : > { %v380_v6 = vpack.c.bf16 %v348_v4, %v347_v2  ;;  %366 = vmatprep.mubr.f32.mxu0 %v117_v5  ;;  %373 = vmatprep.mubr.f32.mxu1 %v117_v5  ;;  %v118_v7 = vld [vmem:[%s111_s11 + $0x8] sm:$0x1] }
  0x14   : > { %377 = vmatprep.subr.bf16.mxu0 %v376_v3 }
  0x15   : > { %381 = vmatprep.subr.bf16.mxu1 %v380_v6  ;;  %379 = vmatpush3.bf16.xpose.msra.mxu0 %v376_v3 }
  0x16   : > { %383 = vmatpush3.bf16.xpose.msra.mxu1 %v380_v6 }
  0x1c   : > { %367 = vmatmul.mubr.f32.vlgmr.msra.gmra.mrb[0].mxu0 %v118_v7 }
  0x1d   : > { %374 = vmatmul.mubr.f32.vlgmr.msra.gmra.mrb[0].mxu1 %v118_v7 }
  0xef   : > { %v368_v8 = vpop.f32.mrb[0].mxu0 }
  0xf0   : > { %200 = vst.msk [vmem:[%s116_s15 + $0x8] sm:$0x1] %vm199_vm0, %v368_v8  ;;  %v375_v9 = vpop.f32.mrb[0].mxu1  ;;  %v188_v10 = vpop.f32.mrb[1].mxu0 }
  0xf1   : > { %350 = vst.msk [vmem:[%s116_s15 + $0x18] sm:$0x1] %vm199_vm0, %v375_v9  ;;  %v270_v11 = vpop.f32.mrb[1].mxu1 }
  0xf2   : > { %198 = vst.msk [vmem:[%s116_s15] sm:$0xff] %vm197_vm1, %v188_v10  ;;  %349 = vst.msk [vmem:[%s116_s15 + $0x10] sm:$0xff] %vm197_vm1, %v270_v11 }
  0xf3 PF: > { %s11_s6 = sadd.s32 1, %s399_s6  }
  0xf4   : > { %p8_p4 = scmp.ge.s32.totalorder %s11_s6, 4  }
  0xf6   :  { %10 = sbr.rel (!%p8_p4) target bundleno = 1 (0x1), region = 57 }

// kernel: embed_region_forward.2
= control target key start
LH: loop header
LB: loop body
LE: loop exit
PB: predicated region body
PF: predicated region fallthrough
CT: control target
= control target key end

     0   :  { %s5245_s18 = smov 0   ;;  %s7229_s0 = inlined_call_operand.vmem [shape: f32[2,192,4], index: 0, kind: input, shape index: {}]   ;;  %s7230_s1 = inlined_call_operand.vmem [shape: f32[4,16], index: 1, kind: input, shape index: {}]   ;;  %s7231_s2 = inlined_call_operand.vmem [shape: f32[1,16], index: 2, kind: input, shape index: {}]   ;;  %s7232_s3 = inlined_call_operand.vmem [shape: f32[16,8], index: 3, kind: input, shape index: {}]   ;;  %s7233_s4 = inlined_call_operand.vmem [shape: f32[8,16], index: 4, kind: input, shape index: {}]   ;;  %s7234_s5 = inlined_call_operand.vmem [shape: f32[2,3,9,8,16], index: 5, kind: output, shape index: {}]  }
   0x1 LB: > { %s4339_s19 = sadd.s32 4294967295, %s5209_s18   ;;  %p4343_p0 = scmp.ge.s32.totalorder %s5209_s18, 1  ;;  %s5209_s18 = sphi %s5245_s18, %s15_s18  }
   0x2   : > { %p187_p1 = scmp.lt.s32.totalorder %s5209_s18, 3 }
   0x4   : > { %p188_p2 = pnand %p4343_p0, %p187_p1 }
   0x6   : > { %191 = sbr.rel (%p188_p2) target bundleno = 1817 (0x719), region = 40 }
   0xd   : > { %v249_v0 = vld [vmem:[%s7230_s1] sm:$0xf]  ;;  %vm330_vm0 = vcmask 1043456   ;;  %p215_p3 = scmp.lt.s32.totalorder %s4339_s19, 1  ;;  %vm257_vm1 = vcmask 31744   ;;  %vm567_vm2 = vcmask 130048  }
   0xe   : > { %4523 = vmatprep.subr.msk.mxu0 %vm330_vm0, %v249_v0  ;;  %v5315_v25 = vld [vmem:[%s7231_s2] ss:$0 sm:$0xff] }
   0xf   : > { %4524 = vmatpush3.msk.msra.mxu0 %vm330_vm0, %v249_v0  ;;  %s7249_s19 = smov (!%p215_p3, %s4339_s19), 1 }
  0x10   : > { %s4725_s22 = smul.u32 192, %s7249_s19 }
  0x11   : > { %s4726_s23 = smul.u32 216, %s7249_s19 }
  0x12   : > { %s5262_s25 = scalar_lea.vmem %s7229_s0, %s4725_s22 }
  0x13   : > { %v225_v1 = vld [vmem:[%s5262_s25] sm:$0xff]  ;;  %v226_v2 = vld [vmem:[%s5262_s25 + $0x8] sm:$0xff]  ;;  %v227_v3 = vld [vmem:[%s5262_s25 + $0x10] sm:$0xff]  ;;  %s6968_s26 = scalar_lea.vmem %s7234_s5, %s4726_s23 }
  0x14   : > { %4525 = vmatprep.mubr.msk.f32.mxu0 %vm257_vm1, %v225_v1  ;;  %v228_v4 = vld [vmem:[%s5262_s25 + $0x18] sm:$0xff]  ;;  %v229_v5 = vld [vmem:[%s5262_s25 + $0x20] sm:$0xff]  ;;  %v230_v6 = vld [vmem:[%s5262_s25 + $0x28] sm:$0xff] }
  0x15   : > { %4526 = vmatmul.mubr.msk.f32.vlgmr.msra.gmra.mrb[0].mxu0 %vm257_vm1, %v226_v2  ;;  %v231_v7 = vld [vmem:[%s5262_s25 + $0x30] sm:$0xff]  ;;  %v232_v8 = vld [vmem:[%s5262_s25 + $0x38] sm:$0xff]  ;;  %v233_v9 = vld [vmem:[%s5262_s25 + $0x40] sm:$0xff] }
  0x16   : > { %4528 = vmatprep.mubr.msk.f32.mxu0 %vm257_vm1, %v227_v3  ;;  %v234_v10 = vld [vmem:[%s5262_s25 + $0x48] sm:$0xff]  ;;  %v235_v11 = vld [vmem:[%s5262_s25 + $0x50] sm:$0xff]  ;;  %v236_v12 = vld [vmem:[%s5262_s25 + $0x58] sm:$0xff] }
  0x17   : > { %v237_v13 = vld [vmem:[%s5262_s25 + $0x60] sm:$0xff]  ;;  %v238_v14 = vld [vmem:[%s5262_s25 + $0x68] sm:$0xff]  ;;  %v239_v15 = vld [vmem:[%s5262_s25 + $0x70] sm:$0xff] }
  0x18   : > { %v240_v16 = vld [vmem:[%s5262_s25 + $0x78] sm:$0xff]  ;;  %v241_v17 = vld [vmem:[%s5262_s25 + $0x80] sm:$0xff]  ;;  %v242_v18 = vld [vmem:[%s5262_s25 + $0x88] sm:$0xff] }
  0x19   : > { %4529 = vmatmul.mubr.msk.f32.gmra.mrb[2].mxu0 %vm257_vm1, %v228_v4  ;;  %v243_v19 = vld [vmem:[%s5262_s25 + $0x90] sm:$0xff]  ;;  %v244_v20 = vld [vmem:[%s5262_s25 + $0x98] sm:$0xff]  ;;  %v245_v21 = vld [vmem:[%s5262_s25 + $0xa0] sm:$0xff] }
  0x1a   : > { %4531 = vmatprep.mubr.msk.f32.mxu0 %vm257_vm1, %v229_v5  ;;  %v246_v22 = vld [vmem:[%s5262_s25 + $0xa8] sm:$0xff]  ;;  %v247_v23 = vld [vmem:[%s5262_s25 + $0xb0] sm:$0xff]  ;;  %v248_v24 = vld [vmem:[%s5262_s25 + $0xb8] sm:$0xff] }
  0x1d   : > { %4532 = vmatmul.mubr.msk.f32.gmra.mrb[4].mxu0 %vm257_vm1, %v230_v6 }
  0x1e   : > { %4534 = vmatprep.mubr.msk.f32.mxu0 %vm257_vm1, %v231_v7 }
  0x21   : > { %4535 = vmatmul.mubr.msk.f32.gmra.mrb[6].mxu0 %vm257_vm1, %v232_v8 }
  0x22   : > { %4537 = vmatprep.mubr.msk.f32.mxu0 %vm257_vm1, %v233_v9 }
  0x25   : > { %4538 = vmatmul.mubr.msk.f32.gmra.mrb[8].mxu0 %vm257_vm1, %v234_v10 }
  0x26   : > { %4540 = vmatprep.mubr.msk.f32.mxu0 %vm257_vm1, %v235_v11 }
  0x29   : > { %4541 = vmatmul.mubr.msk.f32.gmra.mrb[10].mxu0 %vm257_vm1, %v236_v12 }
  0x2a   : > { %4543 = vmatprep.mubr.msk.f32.mxu0 %vm257_vm1, %v237_v13 }
  0x2d   : > { %4544 = vmatmul.mubr.msk.f32.gmra.mrb[12].mxu0 %vm257_vm1, %v238_v14 }
  0x2e   : > { %4546 = vmatprep.mubr.msk.f32.mxu0 %vm257_vm1, %v239_v15 }
  0x31   : > { %4547 = vmatmul.mubr.msk.f32.gmra.mrb[14].mxu0 %vm257_vm1, %v240_v16 }
  0x32   : > { %4549 = vmatprep.mubr.msk.f32.mxu0 %vm257_vm1, %v241_v17 }
  0x35   : > { %4550 = vmatmul.mubr.msk.f32.gmra.mrb[16].mxu0 %vm257_vm1, %v242_v18 }
  0x36   : > { %4552 = vmatprep.mubr.msk.f32.mxu0 %vm257_vm1, %v243_v19 }
  0x39   : > { %4553 = vmatmul.mubr.msk.f32.gmra.mrb[18].mxu0 %vm257_vm1, %v244_v20 }
  0x3a   : > { %4555 = vmatprep.mubr.msk.f32.mxu0 %vm257_vm1, %v245_v21 }
  0x3d   : > { %4556 = vmatmul.mubr.msk.f32.gmra.mrb[20].mxu0 %vm257_vm1, %v246_v22 }
  0x3e   : > { %4558 = vmatprep.mubr.msk.f32.mxu0 %vm257_vm1, %v247_v23 }
  0x41   : > { %4559 = vmatmul.mubr.msk.f32.gmra.mrb[22].mxu0 %vm257_vm1, %v248_v24 }
  0xe8   : > { %v4527_v26 = vpop.f32.mrb[0].mxu0 }
  0xe9   : > { %v406_v27 = vadd.f32 %v4527_v26, %v5315_v25  ;;  %v400_v28 = vpop.f32.mrb[1].mxu0 }
  0xea   : > { %v401_v29 = vadd.f32 %v5315_v25, %v400_v28 }
  0xeb   : > { %v5319_v30 = vmax.f32 %v406_v27, 0.0 }
  0xec   : > { %v5321_v31 = vmax.f32 %v401_v29, 0.0  ;;  %v4530_v32 = vpop.f32.mrb[2].mxu0 }
  0xed   : > { %v416_v33 = vadd.f32 %v4530_v32, %v5315_v25  ;;  %v410_v34 = vpop.f32.mrb[3].mxu0  ;;  %v544_v41 = vmul.f32 %v5319_v30, %v5319_v30 }
  0xee   : > { %v411_v35 = vadd.f32 %v5315_v25, %v410_v34  ;;  %v543_v36 = vmul.f32 %v5321_v31, %v5321_v31 }
  0xef   : > { %v5327_v37 = vmax.f32 %v416_v33, 0.0  ;;  %v571_v50 = vsel %vm567_vm2, %v544_v41, 0.0 }
  0xf0   : > { %v5329_v38 = vmax.f32 %v411_v35, 0.0  ;;  %v4533_v39 = vpop.f32.mrb[4].mxu0  ;;  %v568_v40 = vsel %vm567_vm2, %v543_v36, 0.0 }
  0xf1   : > { %v426_v42 = vadd.f32 %v4533_v39, %v5315_v25  ;;  %v420_v43 = vpop.f32.mrb[5].mxu0  ;;  %569 = vadd.xlane.f32.xlu0 %v568_v40  ;;  %v546_v51 = vmul.f32 %v5327_v37, %v5327_v37 }
  0xf2   : > { %v421_v44 = vadd.f32 %v5315_v25, %v420_v43  ;;  %v545_v45 = vmul.f32 %v5329_v38, %v5329_v38 }
  0xf3   : > { %v5338_v46 = vmax.f32 %v426_v42, 0.0  ;;  %v577_v60 = vsel %vm567_vm2, %v546_v51, 0.0 }
  0xf4   : > { %v5340_v47 = vmax.f32 %v421_v44, 0.0  ;;  %v4536_v48 = vpop.f32.mrb[6].mxu0  ;;  %v574_v49 = vsel %vm567_vm2, %v545_v45, 0.0 }
  0xf5   : > { %v436_v52 = vadd.f32 %v4536_v48, %v5315_v25  ;;  %v430_v53 = vpop.f32.mrb[7].mxu0  ;;  %575 = vadd.xlane.f32.xlu1 %v574_v49  ;;  %572 = vadd.xlane.f32.xlu0 %v571_v50  ;;  %v548_v56 = vmul.f32 %v5338_v46, %v5338_v46 }
  0xf6   : > { %v431_v54 = vadd.f32 %v5315_v25, %v430_v53  ;;  %v547_v55 = vmul.f32 %v5340_v47, %v5340_v47 }
  0xf7   : > { %v5352_v57 = vmax.f32 %v436_v52, 0.0  ;;  %v583_v1 = vsel %vm567_vm2, %v548_v56, 0.0 }
  0xf8   : > { %v5354_v58 = vmax.f32 %v431_v54, 0.0  ;;  %v4539_v59 = vpop.f32.mrb[8].mxu0  ;;  %v580_v61 = vsel %vm567_vm2, %v547_v55, 0.0 }
  0xf9   : > { %v446_v62 = vadd.f32 %v4539_v59, %v5315_v25  ;;  %v440_v63 = vpop.f32.mrb[9].mxu0  ;;  %578 = vadd.xlane.f32.xlu1 %v577_v60  ;;  %581 = vadd.xlane.f32.xlu0 %v580_v61  ;;  %v550_v3 = vmul.f32 %v5352_v57, %v5352_v57 }
  0xfa   : > { %v441_v0 = vadd.f32 %v5315_v25, %v440_v63  ;;  %v549_v2 = vmul.f32 %v5354_v58, %v5354_v58 }
  0xfb   : > { %v5365_v4 = vmax.f32 %v446_v62, 0.0  ;;  %v589_v11 = vsel %vm567_vm2, %v550_v3, 0.0 }
  0xfc   : > { %v5367_v5 = vmax.f32 %v441_v0, 0.0  ;;  %v4542_v6 = vpop.f32.mrb[10].mxu0  ;;  %v586_v7 = vsel %vm567_vm2, %v549_v2, 0.0 }
  0xfd   : > { %v456_v8 = vadd.f32 %v4542_v6, %v5315_v25  ;;  %v450_v9 = vpop.f32.mrb[11].mxu0  ;;  %584 = vadd.xlane.f32.xlu1 %v583_v1  ;;  %587 = vadd.xlane.f32.xlu0 %v586_v7  ;;  %v552_v13 = vmul.f32 %v5365_v4, %v5365_v4 }
  0xfe   : > { %v451_v10 = vadd.f32 %v5315_v25, %v450_v9  ;;  %v551_v12 = vmul.f32 %v5367_v5, %v5367_v5 }
  0xff   : > { %v5377_v14 = vmax.f32 %v456_v8, 0.0  ;;  %v595_v21 = vsel %vm567_vm2, %v552_v13, 0.0 }
 0x100   : > { %v5379_v15 = vmax.f32 %v451_v10, 0.0  ;;  %v4545_v16 = vpop.f32.mrb[12].mxu0  ;;  %v592_v17 = vsel %vm567_vm2, %v551_v12, 0.0 }
 0x101   : > { %v466_v18 = vadd.f32 %v4545_v16, %v5315_v25  ;;  %v460_v19 = vpop.f32.mrb[13].mxu0  ;;  %590 = vadd.xlane.f32.xlu1 %v589_v11  ;;  %593 = vadd.xlane.f32.xlu0 %v592_v17  ;;  %v554_v23 = vmul.f32 %v5377_v14, %v5377_v14 }
 0x102   : > { %v461_v20 = vadd.f32 %v5315_v25, %v460_v19  ;;  %v553_v22 = vmul.f32 %v5379_v15, %v5379_v15 }
 0x103   : > { %v5389_v24 = vmax.f32 %v466_v18, 0.0  ;;  %v601_v34 = vsel %vm567_vm2, %v554_v23, 0.0 }
 0x104   : > { %v5391_v26 = vmax.f32 %v461_v20, 0.0  ;;  %v4548_v27 = vpop.f32.mrb[14].mxu0  ;;  %v598_v28 = vsel %vm567_vm2, %v553_v22, 0.0 }
 0x105   : > { %v476_v29 = vadd.f32 %v4548_v27, %v5315_v25  ;;  %v470_v32 = vpop.f32.mrb[15].mxu0  ;;  %596 = vadd.xlane.f32.xlu1 %v595_v21  ;;  %599 = vadd.xlane.f32.xlu0 %v598_v28  ;;  %v556_v36 = vmul.f32 %v5389_v24, %v5389_v24 }
 0x106   : > { %v471_v33 = vadd.f32 %v5315_v25, %v470_v32  ;;  %v555_v35 = vmul.f32 %v5391_v26, %v5391_v26 }
 0x107   : > { %v5401_v39 = vmax.f32 %v476_v29, 0.0  ;;  %v607_v48 = vsel %vm567_vm2, %v556_v36, 0.0 }
 0x108   : > { %v5403_v40 = vmax.f32 %v471_v33, 0.0  ;;  %v4551_v41 = vpop.f32.mrb[16].mxu0  ;;  %v604_v42 = vsel %vm567_vm2, %v555_v35, 0.0  ;;  %v880_v33 = vld [vmem:[%s7232_s3] sm:$0xff] }
 0x109   : > { %v486_v43 = vadd.f32 %v4551_v41, %v5315_v25  ;;  %v480_v44 = vpop.f32.mrb[17].mxu0  ;;  %602 = vadd.xlane.f32.xlu1 %v601_v34  ;;  %605 = vadd.xlane.f32.xlu0 %v604_v42  ;;  %v558_v50 = vmul.f32 %v5401_v39, %v5401_v39  ;;  %v881_v34 = vld [vmem:[%s7232_s3 + $0x8] sm:$0xff]  ;;  %v5211_v42 = vmov 0.0|0.0  }
 0x10a   : > { %v481_v45 = vadd.f32 %v5315_v25, %v480_v44  ;;  %v557_v49 = vmul.f32 %v5403_v40, %v5403_v40  ;;  %v4685_v36 = vpack.c.bf16 %v881_v34, %v880_v33  ;;  %4689 = vmatprep.subr.bf16.mxu0 %v5211_v42 }
 0x10b   : > { %v5413_v51 = vmax.f32 %v486_v43, 0.0  ;;  %v613_v60 = vsel %vm567_vm2, %v558_v50, 0.0 }
 0x10c   : > { %v5415_v52 = vmax.f32 %v481_v45, 0.0  ;;  %v4554_v53 = vpop.f32.mrb[18].mxu0  ;;  %v610_v54 = vsel %vm567_vm2, %v557_v49, 0.0  ;;  %4686 = vmatprep.subr.bf16.mxu1 %v4685_v36 }
 0x10d   : > { %v496_v55 = vadd.f32 %v4554_v53, %v5315_v25  ;;  %v490_v56 = vpop.f32.mrb[19].mxu0  ;;  %608 = vadd.xlane.f32.xlu1 %v607_v48  ;;  %611 = vadd.xlane.f32.xlu0 %v610_v54  ;;  %v560_v62 = vmul.f32 %v5413_v51, %v5413_v51 }
 0x10e   : > { %v491_v59 = vadd.f32 %v5315_v25, %v490_v56  ;;  %v559_v61 = vmul.f32 %v5415_v52, %v5415_v52  ;;  %4688 = vmatpush3.bf16.msra.mxu1 %v4685_v36 }
 0x10f   : > { %v5425_v63 = vmax.f32 %v496_v55, 0.0  ;;  %v619_v8 = vsel %vm567_vm2, %v560_v62, 0.0  ;;  %4692 = vmatprep.subr.bf16.mxu1 %v5211_v42 }
 0x110   : > { %v5427_v0 = vmax.f32 %v491_v59, 0.0  ;;  %v4557_v1 = vpop.f32.mrb[20].mxu0  ;;  %v616_v2 = vsel %vm567_vm2, %v559_v61, 0.0 }
 0x111   : > { %v506_v3 = vadd.f32 %v4557_v1, %v5315_v25  ;;  %v500_v6 = vpop.f32.mrb[21].mxu0  ;;  %614 = vadd.xlane.f32.xlu1 %v613_v60  ;;  %617 = vadd.xlane.f32.xlu0 %v616_v2  ;;  %v562_v10 = vmul.f32 %v5425_v63, %v5425_v63 }
 0x112   : > { %v501_v7 = vadd.f32 %v5315_v25, %v500_v6  ;;  %v561_v9 = vmul.f32 %v5427_v0, %v5427_v0 }
 0x113   : > { %v5437_v11 = vmax.f32 %v506_v3, 0.0  ;;  %v625_v20 = vsel %vm567_vm2, %v562_v10, 0.0 }
 0x114   : > { %v5439_v12 = vmax.f32 %v501_v7, 0.0  ;;  %v4560_v13 = vpop.f32.mrb[22].mxu0  ;;  %v622_v16 = vsel %vm567_vm2, %v561_v9, 0.0 }
 0x115   : > { %v516_v17 = vadd.f32 %v4560_v13, %v5315_v25  ;;  %v510_v18 = vpop.f32.mrb[23].mxu0  ;;  %620 = vadd.xlane.f32.xlu1 %v619_v8  ;;  %623 = vadd.xlane.f32.xlu0 %v622_v16  ;;  %v564_v22 = vmul.f32 %v5437_v11, %v5437_v11 }
 0x116   : > { %v511_v19 = vadd.f32 %v5315_v25, %v510_v18  ;;  %v563_v21 = vmul.f32 %v5439_v12, %v5439_v12 }
 0x117   : > { %v5449_v23 = vmax.f32 %v516_v17, 0.0  ;;  %v631_v29 = vsel %vm567_vm2, %v564_v22, 0.0 }
 0x118   : > { %v5451_v27 = vmax.f32 %v511_v19, 0.0  ;;  %v628_v28 = vsel %vm567_vm2, %v563_v21, 0.0 }
 0x119   : > { %626 = vadd.xlane.f32.xlu1 %v625_v20  ;;  %629 = vadd.xlane.f32.xlu0 %v628_v28  ;;  %v566_v32 = vmul.f32 %v5449_v23, %v5449_v23 }
 0x11a   : > { %v565_v25 = vmul.f32 %v5451_v27, %v5451_v27 }
 0x11b   : > { %v637_v41 = vsel %vm567_vm2, %v566_v32, 0.0 }
 0x11c   : > { %v634_v35 = vsel %vm567_vm2, %v565_v25, 0.0 }
 0x11d   : > { %632 = vadd.xlane.f32.xlu1 %v631_v29  ;;  %635 = vadd.xlane.f32.xlu0 %v634_v35 }
 0x121   : > { %638 = vadd.xlane.f32.xlu1 %v637_v41 }
 0x17e   : > { %v570_v43 = vpop.xlane.xlu0 %569 }
 0x17f   : > { %4795 = vrsqrt.f32 %v570_v43  ;;  %vm642_vm3 = vcmp.eq.f32.partialorder %v570_v43, inf  ;;  %v645_v59 = vand.u32 2147483648, %v570_v43  ;;  %vm644_vm5 = vcmp.eq.f32.partialorder %v570_v43, 0.0 }
 0x182   : > { %v576_v44 = vpop.xlane.xlu1 %575  ;;  %v5469_v45 = vpop.xlane.xlu0 %572 }
 0x183   : > { %4797 = vrsqrt.f32 %v576_v44  ;;  %vm656_vm4 = vcmp.eq.f32.partialorder %v576_v44, inf  ;;  %vm658_vm6 = vcmp.eq.f32.partialorder %v576_v44, 0.0  ;;  %v659_v2 = vand.u32 2147483648, %v576_v44 }
 0x184   : > { %4799 = vrsqrt.f32 %v5469_v45  ;;  %vm649_vm7 = vcmp.eq.f32.partialorder %v5469_v45, inf  ;;  %vm651_vm8 = vcmp.eq.f32.partialorder %v5469_v45, 0.0  ;;  %v652_v3 = vand.u32 2147483648, %v5469_v45 }
 0x186   : > { %v5472_v48 = vpop.xlane.xlu1 %578  ;;  %v5474_v49 = vpop.xlane.xlu0 %581 }
 0x187   : > { %4801 = vrsqrt.f32 %v5472_v48  ;;  %vm663_vm9 = vcmp.eq.f32.partialorder %v5472_v48, inf  ;;  %vm665_vm10 = vcmp.eq.f32.partialorder %v5472_v48, 0.0  ;;  %v666_v7 = vand.u32 2147483648, %v5472_v48 }
 0x188   : > { %4803 = vrsqrt.f32 %v5474_v49  ;;  %vm670_vm11 = vcmp.eq.f32.partialorder %v5474_v49, inf  ;;  %vm672_vm12 = vcmp.eq.f32.partialorder %v5474_v49, 0.0  ;;  %v673_v10 = vand.u32 2147483648, %v5474_v49 }
 0x189   : > { %v4796_v54 = vpop.eup %4795 }
 0x18a   : > { %v5478_v50 = vpop.xlane.xlu1 %584  ;;  %v5480_v53 = vpop.xlane.xlu0 %587  ;;  %v641_v56 = vmul.f32 %v4796_v54, %v570_v43 }
 0x18b   : > { %4805 = vrsqrt.f32 %v5478_v50  ;;  %vm677_vm13 = vcmp.eq.f32.partialorder %v5478_v50, inf  ;;  %vm679_vm14 = vcmp.eq.f32.partialorder %v5478_v50, 0.0  ;;  %v680_v21 = vand.u32 2147483648, %v5478_v50 }
 0x18c   : > { %4807 = vrsqrt.f32 %v5480_v53  ;;  %v643_v17 = vsel %vm642_vm3, %v570_v43, %v641_v56  ;;  %vm684_vm15 = vcmp.eq.f32.partialorder %v5480_v53, inf  ;;  %vm686_vm0 = vcmp.eq.f32.partialorder %v5480_v53, 0.0 }
 0x18d   : > { %v4798_v55 = vpop.eup %4797  ;;  %v687_v28 = vand.u32 2147483648, %v5480_v53  ;;  %v646_v29 = vsel %vm644_vm5, %v645_v59, %v643_v17 }
 0x18e   : > { %v5484_v60 = vpop.xlane.xlu1 %590  ;;  %v5486_v61 = vpop.xlane.xlu0 %593  ;;  %v655_v1 = vmul.f32 %v4798_v55, %v576_v44 }
 0x18f   : > { %v4800_v62 = vpop.eup %4799  ;;  %4809 = vrsqrt.f32 %v5484_v60  ;;  %vm691_vm1 = vcmp.eq.f32.partialorder %v5484_v60, inf  ;;  %vm693_vm3 = vcmp.eq.f32.partialorder %v5484_v60, 0.0  ;;  %v694_v54 = vand.u32 2147483648, %v5484_v60 }
 0x190   : > { %4811 = vrsqrt.f32 %v5486_v61  ;;  %v648_v9 = vmul.f32 %v4800_v62, %v5469_v45  ;;  %v657_v18 = vsel %vm656_vm4, %v576_v44, %v655_v1  ;;  %vm698_vm4 = vcmp.eq.f32.partialorder %v5486_v61, inf }
 0x191   : > { %v4802_v6 = vpop.eup %4801  ;;  %v5518_v32 = vsel %vm658_vm6, %v659_v2, %v657_v18  ;;  %v701_v55 = vand.u32 2147483648, %v5486_v61  ;;  %v808_v1 = vmax.f32 %v646_v29, 1e-12  ;;  %vm700_vm6 = vcmp.eq.f32.partialorder %v5486_v61, 0.0 }
 0x192   : > { %v4804_v8 = vpop.eup %4803  ;;  %v5500_v13 = vpop.xlane.xlu1 %596  ;;  %v662_v19 = vmul.f32 %v4802_v6, %v5472_v48  ;;  %v650_v33 = vsel %vm649_vm7, %v5469_v45, %v648_v9  ;;  %v810_v59 = vmax.f32 %v5518_v32, 1e-12 }
 0x193   : > { %v5502_v16 = vpop.xlane.xlu0 %599  ;;  %v669_v20 = vmul.f32 %v4804_v8, %v5474_v49  ;;  %4813 = vrsqrt.f32 %v5500_v13  ;;  %vm705_vm5 = vcmp.eq.f32.partialorder %v5500_v13, inf  ;;  %v653_v62 = vsel %vm651_vm8, %v652_v3, %v650_v33 }
 0x194   : > { %4815 = vrsqrt.f32 %v5502_v16  ;;  %v664_v41 = vsel %vm663_vm9, %v5472_v48, %v662_v19  ;;  %vm707_vm7 = vcmp.eq.f32.partialorder %v5500_v13, 0.0  ;;  %vm712_vm8 = vcmp.eq.f32.partialorder %v5502_v16, inf }
 0x195   : > { %v4806_v22 = vpop.eup %4805  ;;  %v671_v43 = vsel %vm670_vm11, %v5474_v49, %v669_v20  ;;  %v5548_v6 = vsel %vm665_vm10, %v666_v7, %v664_v41  ;;  %v708_v49 = vand.u32 2147483648, %v5500_v13  ;;  %vm714_vm9 = vcmp.eq.f32.partialorder %v5502_v16, 0.0 }
 0x196   : > { %v4808_v25 = vpop.eup %4807  ;;  %v676_v34 = vmul.f32 %v4806_v22, %v5478_v50  ;;  %v5525_v35 = vpop.xlane.xlu1 %602  ;;  %v5552_v8 = vsel %vm672_vm12, %v673_v10, %v671_v43  ;;  %v715_v10 = vand.u32 2147483648, %v5502_v16  ;;  %v809_v18 = vmax.f32 %v653_v62, 1e-12 }
 0x197   : > { %v5527_v36 = vpop.xlane.xlu0 %605  ;;  %v683_v44 = vmul.f32 %v4808_v25, %v5480_v53  ;;  %4817 = vrsqrt.f32 %v5525_v35  ;;  %v811_v20 = vmax.f32 %v5548_v6, 1e-12  ;;  %v812_v22 = vmax.f32 %v5552_v8, 1e-12 }
 0x198   : > { %4819 = vrsqrt.f32 %v5527_v36  ;;  %v678_v9 = vsel %vm677_vm13, %v5478_v50, %v676_v34  ;;  %vm719_vm10 = vcmp.eq.f32.partialorder %v5525_v35, inf  ;;  %v722_v43 = vand.u32 2147483648, %v5525_v35 }
 0x199   : > { %v4810_v56 = vpop.eup %4809  ;;  %v685_v48 = vsel %vm684_vm15, %v5480_v53, %v683_v44  ;;  %v5578_v29 = vsel %vm679_vm14, %v680_v21, %v678_v9  ;;  %vm721_vm11 = vcmp.eq.f32.partialorder %v5525_v35, 0.0  ;;  %vm726_vm12 = vcmp.eq.f32.partialorder %v5527_v36, inf }
 0x19a   : > { %v4812_v2 = vpop.eup %4811  ;;  %v690_v17 = vmul.f32 %v4810_v56, %v5484_v60  ;;  %v5559_v45 = vpop.xlane.xlu1 %608  ;;  %v5583_v33 = vsel %vm686_vm0, %v687_v28, %v685_v48  ;;  %vm728_vm13 = vcmp.eq.f32.partialorder %v5527_v36, 0.0  ;;  %v813_v53 = vmax.f32 %v5578_v29, 1e-12 }
 0x19b   : > { %v5561_v3 = vpop.xlane.xlu0 %611  ;;  %4821 = vrsqrt.f32 %v5559_v45  ;;  %v697_v7 = vmul.f32 %v4812_v2, %v5486_v61  ;;  %v729_v56 = vand.u32 2147483648, %v5527_v36  ;;  %v814_v2 = vmax.f32 %v5583_v33, 1e-12 }
 0x19c   : > { %4823 = vrsqrt.f32 %v5561_v3  ;;  %v692_v34 = vsel %vm691_vm1, %v5484_v60, %v690_v17  ;;  %vm733_vm14 = vcmp.eq.f32.partialorder %v5559_v45, inf  ;;  %vm735_vm15 = vcmp.eq.f32.partialorder %v5559_v45, 0.0 }
 0x19d   : > { %v4814_v19 = vpop.eup %4813  ;;  %4825 = vrcp.f32 %v808_v1  ;;  %v699_v28 = vsel %vm698_vm4, %v5486_v61, %v697_v7  ;;  %v5606_v6 = vsel %vm693_vm3, %v694_v54, %v692_v34  ;;  %vm740_vm0 = vcmp.eq.f32.partialorder %v5561_v3, inf }
 0x19e   : > { %v4816_v25 = vpop.eup %4815  ;;  %v704_v41 = vmul.f32 %v4814_v19, %v5500_v13  ;;  %v5590_v44 = vpop.xlane.xlu1 %614  ;;  %4827 = vrcp.f32 %v809_v18  ;;  %v5624_v7 = vsel %vm700_vm6, %v701_v55, %v699_v28  ;;  %v736_v19 = vand.u32 2147483648, %v5559_v45 }
 0x19f   : > { %v5592_v50 = vpop.xlane.xlu0 %617  ;;  %v711_v21 = vmul.f32 %v4816_v25, %v5502_v16  ;;  %4829 = vrsqrt.f32 %v5590_v44  ;;  %v815_v25 = vmax.f32 %v5606_v6, 1e-12  ;;  %vm742_vm1 = vcmp.eq.f32.partialorder %v5561_v3, 0.0 }
 0x1a0   : > { %v706_v1 = vsel %vm705_vm5, %v5500_v13, %v704_v41  ;;  %4831 = vrsqrt.f32 %v5592_v50  ;;  %v743_v61 = vand.u32 2147483648, %v5561_v3  ;;  %v816_v28 = vmax.f32 %v5624_v7, 1e-12 }
 0x1a1   : > { %v4818_v62 = vpop.eup %4817  ;;  %v713_v17 = vsel %vm712_vm8, %v5502_v16, %v711_v21  ;;  %v5633_v34 = vsel %vm707_vm7, %v708_v49, %v706_v1  ;;  %vm747_vm3 = vcmp.eq.f32.partialorder %v5590_v44, inf  ;;  %vm754_vm4 = vcmp.eq.f32.partialorder %v5592_v50, inf }
 0x1a2   : > { %v4820_v9 = vpop.eup %4819  ;;  %v718_v48 = vmul.f32 %v4818_v62, %v5525_v35  ;;  %v5618_v60 = vpop.xlane.xlu1 %620  ;;  %v5640_v41 = vsel %vm714_vm9, %v715_v10, %v713_v17  ;;  %vm749_vm5 = vcmp.eq.f32.partialorder %v5590_v44, 0.0  ;;  %vm756_vm6 = vcmp.eq.f32.partialorder %v5592_v50, 0.0 }
 0x1a3   : > { %v5620_v54 = vpop.xlane.xlu0 %623  ;;  %v725_v18 = vmul.f32 %v4820_v9, %v5527_v36  ;;  %4833 = vrsqrt.f32 %v5618_v60  ;;  %v750_v9 = vand.u32 2147483648, %v5590_v44  ;;  %vm761_vm7 = vcmp.eq.f32.partialorder %v5618_v60, inf }
 0x1a4   : > { %v720_v21 = vsel %vm719_vm10, %v5525_v35, %v718_v48  ;;  %4835 = vrcp.f32 %v810_v59  ;;  %vm763_vm8 = vcmp.eq.f32.partialorder %v5618_v60, 0.0  ;;  %vm768_vm9 = vcmp.eq.f32.partialorder %v5620_v54, inf }
 0x1a5   : > { %v4822_v55 = vpop.eup %4821  ;;  %v727_v13 = vsel %vm726_vm12, %v5527_v36, %v725_v18  ;;  %4837 = vrsqrt.f32 %v5620_v54  ;;  %v5665_v17 = vsel %vm721_vm11, %v722_v43, %v720_v21  ;;  %vm770_vm11 = vcmp.eq.f32.partialorder %v5620_v54, 0.0 }
 0x1a6   : > { %v4824_v49 = vpop.eup %4823  ;;  %v732_v62 = vmul.f32 %v4822_v55, %v5559_v45  ;;  %v5654_v16 = vpop.xlane.xlu1 %626  ;;  %v5669_v48 = vsel %vm728_vm13, %v729_v56, %v727_v13  ;;  %4839 = vrcp.f32 %v811_v20  ;;  %v764_v20 = vand.u32 2147483648, %v5618_v60 }
 0x1a7   : > { %v739_v1 = vmul.f32 %v4824_v49, %v5561_v3  ;;  %v5660_v32 = vpop.xlane.xlu0 %629  ;;  %v4826_v18 = vpop.eup %4825  ;;  %v757_v49 = vand.u32 2147483648, %v5592_v50  ;;  %4841 = vrsqrt.f32 %v5654_v16  ;;  %v819_v13 = vmax.f32 %v5665_v17, 1e-12 }
 0x1a8   : > { %v734_v55 = vsel %vm733_vm14, %v5559_v45, %v732_v62  ;;  %v4828_v35 = vpop.eup %4827  ;;  %v833_v43 = vmul.f32 %v4826_v18, %v5321_v31  ;;  %v820_v62 = vmax.f32 %v5669_v48, 1e-12  ;;  %4843 = vrcp.f32 %v812_v22 }
 0x1a9   : > { %v741_v36 = vsel %vm740_vm0, %v5561_v3, %v739_v1  ;;  %v4830_v21 = vpop.eup %4829  ;;  %v835_v59 = vmul.f32 %v4828_v35, %v5319_v30  ;;  %v5693_v31 = vsel %vm735_vm15, %v736_v19, %v734_v55  ;;  %4845 = vrsqrt.f32 %v5660_v32 }
 0x1aa   : > { %v5684_v56 = vpop.xlane.xlu1 %632  ;;  %v4832_v10 = vpop.eup %4831  ;;  %4565 = vmatprep.mubr.msk.f32.mxu1 %vm567_vm2, %v833_v43  ;;  %v746_v1 = vmul.f32 %v4830_v21, %v5590_v44  ;;  %v5702_v30 = vsel %vm742_vm1, %v743_v61, %v741_v36  ;;  %4847 = vrcp.f32 %v813_v53  ;;  %v771_v55 = vand.u32 2147483648, %v5620_v54 }
 0x1ab   : > { %v4690_v8 = vpack.c.bf16 %v835_v59, %v833_v43  ;;  %v753_v22 = vmul.f32 %v4832_v10, %v5592_v50  ;;  %4566 = vmatmul.mubr.msk.f32.vlgmr.msra.gmra.mrb[0].mxu1 %vm567_vm2, %v835_v59  ;;  %v5708_v45 = vpop.xlane.xlu0 %635  ;;  %vm775_vm10 = vcmp.eq.f32.partialorder %v5654_v16, inf  ;;  %4849 = vrsqrt.f32 %v5684_v56 }
 0x1ac   : > { %v748_v18 = vsel %vm747_vm3, %v5590_v44, %v746_v1  ;;  %v821_v61 = vmax.f32 %v5693_v31, 1e-12  ;;  %4851 = vrcp.f32 %v814_v2  ;;  %v822_v59 = vmax.f32 %v5702_v30, 1e-12 }
 0x1ad   : > { %v4834_v19 = vpop.eup %4833  ;;  %v755_v29 = vsel %vm754_vm4, %v5592_v50, %v753_v22  ;;  %4691 = vmatpush3.bf16.msra.mxu0 %v4690_v8  ;;  %vm777_vm12 = vcmp.eq.f32.partialorder %v5654_v16, 0.0  ;;  %v778_v36 = vand.u32 2147483648, %v5654_v16  ;;  %4853 = vrsqrt.f32 %v5708_v45 }
 0x1ae   : > { %v4836_v3 = vpop.eup %4835  ;;  %v760_v53 = vmul.f32 %v4834_v19, %v5618_v60  ;;  %v5729_v43 = vpop.xlane.xlu1 %638  ;;  %4695 = vmatprep.subr.bf16.mxu0 %v5211_v42  ;;  %v5734_v21 = vsel %vm749_vm5, %v750_v9, %v748_v18  ;;  %v5738_v33 = vsel %vm756_vm6, %v757_v49, %v755_v29  ;;  %vm782_vm13 = vcmp.eq.f32.partialorder %v5660_v32, inf }
 0x1af   : > { %v4838_v10 = vpop.eup %4837  ;;  %v837_v35 = vmul.f32 %v4836_v3, %v5329_v38  ;;  %vm784_vm14 = vcmp.eq.f32.partialorder %v5660_v32, 0.0  ;;  %v785_v44 = vand.u32 2147483648, %v5660_v32  ;;  %4855 = vrcp.f32 %v815_v25 }
 0x1b0   : > { %v767_v38 = vmul.f32 %v4838_v10, %v5620_v54  ;;  %v4840_v2 = vpop.eup %4839  ;;  %v762_v1 = vsel %vm761_vm7, %v5618_v60, %v760_v53  ;;  %vm789_vm15 = vcmp.eq.f32.partialorder %v5684_v56, inf  ;;  %vm791_vm0 = vcmp.eq.f32.partialorder %v5684_v56, 0.0 }
 0x1b1   : > { %4568 = vmatprep.mubr.msk.f32.mxu1 %vm567_vm2, %v837_v35  ;;  %v4842_v50 = vpop.eup %4841  ;;  %v839_v9 = vmul.f32 %v4840_v2, %v5327_v37  ;;  %4857 = vrsqrt.f32 %v5729_v43  ;;  %v823_v49 = vmax.f32 %v5734_v21, 1e-12  ;;  %v824_v8 = vmax.f32 %v5738_v33, 1e-12 }
 0x1b2   : > { %v774_v22 = vmul.f32 %v4842_v50, %v5654_v16  ;;  %v792_v19 = vand.u32 2147483648, %v5684_v56  ;;  %v4844_v18 = vpop.eup %4843  ;;  %v765_v6 = vsel %vm763_vm8, %v764_v20, %v762_v1  ;;  %v769_v37 = vsel %vm768_vm9, %v5620_v54, %v767_v38 }
 0x1b3   : > { %4569 = vmatmul.mubr.msk.f32.gmra.mrb[2].mxu1 %vm567_vm2, %v839_v9  ;;  %v4693_v25 = vpack.c.bf16 %v839_v9, %v837_v35  ;;  %4859 = vrcp.f32 %v816_v28  ;;  %v4846_v3 = vpop.eup %4845  ;;  %v5770_v53 = vmul.f32 %v4844_v18, %v5340_v47  ;;  %vm796_vm1 = vcmp.eq.f32.partialorder %v5708_v45, inf }
 0x1b4   : > { %v776_v29 = vsel %vm775_vm10, %v5654_v16, %v774_v22  ;;  %v7236_v60 = vmax.f32 %v5633_v34, 1e-12  ;;  %v4848_v20 = vpop.eup %4847  ;;  %v781_v10 = vmul.f32 %v4846_v3, %v5660_v32  ;;  %vm798_vm3 = vcmp.eq.f32.partialorder %v5708_v45, 0.0 }
 0x1b5   : > { %4694 = vmatpush3.bf16.msra.mxu1 %v4693_v25  ;;  %v799_v7 = vand.u32 2147483648, %v5708_v45  ;;  %v7237_v28 = vmax.f32 %v5640_v41, 1e-12  ;;  %v4850_v35 = vpop.eup %4849  ;;  %v825_v21 = vmax.f32 %v765_v6, 1e-12  ;;  %v772_v47 = vsel %vm770_vm11, %v771_v55, %v769_v37  ;;  %4571 = vmatprep.mubr.msk.f32.mxu1 %vm567_vm2, %v5770_v53 }
 0x1b6   : > { %4861 = vrcp.f32 %v7236_v60  ;;  %v5785_v34 = vmul.f32 %v4848_v20, %v5338_v46  ;;  %4698 = vmatprep.subr.bf16.mxu1 %v5211_v42  ;;  %v4852_v33 = vpop.eup %4851  ;;  %v779_v41 = vsel %vm777_vm12, %v778_v36, %v776_v29  ;;  %v783_v54 = vsel %vm782_vm13, %v5660_v32, %v781_v10 }
 0x1b7   : > { %4863 = vrcp.f32 %v7237_v28  ;;  %v788_v55 = vmul.f32 %v4850_v35, %v5684_v56  ;;  %v4854_v46 = vpop.eup %4853  ;;  %v786_v17 = vsel %vm784_vm14, %v785_v44, %v783_v54  ;;  %v826_v36 = vmax.f32 %v772_v47, 1e-12 }
 0x1b8   : > { %4865 = vrcp.f32 %v819_v13  ;;  %4572 = vmatmul.mubr.msk.f32.gmra.mrb[4].mxu1 %vm567_vm2, %v5785_v34  ;;  %v5803_v13 = vmul.f32 %v4852_v33, %v5354_v58  ;;  %v4696_v16 = vpack.c.bf16 %v5785_v34, %v5770_v53  ;;  %v795_v32 = vmul.f32 %v4854_v46, %v5708_v45 }
 0x1b9   : > { %4867 = vrcp.f32 %v820_v62  ;;  %v790_v48 = vsel %vm789_vm15, %v5684_v56, %v788_v55  ;;  %v4856_v62 = vpop.eup %4855  ;;  %v827_v38 = vmax.f32 %v779_v41, 1e-12  ;;  %vm803_vm4 = vcmp.eq.f32.partialorder %v5729_v43, inf }
 0x1ba   : > { %4869 = vrcp.f32 %v821_v61  ;;  %v793_v58 = vsel %vm791_vm0, %v792_v19, %v790_v48  ;;  %4574 = vmatprep.mubr.msk.f32.mxu1 %vm567_vm2, %v5803_v13  ;;  %v828_v61 = vmax.f32 %v786_v17, 1e-12  ;;  %v797_v2 = vsel %vm796_vm1, %v5708_v45, %v795_v32 }
 0x1bb   : > { %4871 = vrcp.f32 %v822_v59  ;;  %v4858_v31 = vpop.eup %4857  ;;  %v5824_v30 = vmul.f32 %v4856_v62, %v5352_v57  ;;  %v829_v59 = vmax.f32 %v793_v58, 1e-12  ;;  %v800_v56 = vsel %vm798_vm3, %v799_v7, %v797_v2 }
 0x1bc   : > { %4873 = vrcp.f32 %v823_v49  ;;  %v802_v1 = vmul.f32 %v4858_v31, %v5729_v43  ;;  %v830_v50 = vmax.f32 %v800_v56, 1e-12  ;;  %v806_v9 = vand.u32 2147483648, %v5729_v43 }
 0x1bd   : > { %4875 = vrcp.f32 %v824_v8  ;;  %v4860_v44 = vpop.eup %4859  ;;  %4575 = vmatmul.mubr.msk.f32.gmra.mrb[6].mxu1 %vm567_vm2, %v5824_v30  ;;  %v4699_v57 = vpack.c.bf16 %v5824_v30, %v5803_v13  ;;  %vm805_vm5 = vcmp.eq.f32.partialorder %v5729_v43, 0.0  ;;  %vm1139_vm6 = vcmask 64512  }
 0x1be   : > { %4877 = vrcp.f32 %v825_v21  ;;  %v804_v45 = vsel %vm803_vm4, %v5729_v43, %v802_v1  ;;  %v5839_v8 = vmul.f32 %v4860_v44, %v5367_v5  ;;  %vm5212_vm7 = vmmov 0  }
 0x1bf   : > { %4879 = vrcp.f32 %v826_v36  ;;  %v807_v19 = vsel %vm805_vm5, %v806_v9, %v804_v45 }
 0x1c0   : > { %v4862_v49 = vpop.eup %4861  ;;  %4881 = vrcp.f32 %v827_v38  ;;  %v831_v37 = vmax.f32 %v807_v19, 1e-12  ;;  %4577 = vmatprep.mubr.msk.f32.mxu1 %vm567_vm2, %v5839_v8 }
 0x1c1   : > { %v4864_v22 = vpop.eup %4863  ;;  %v5842_v18 = vmul.f32 %v4862_v49, %v5365_v4  ;;  %4883 = vrcp.f32 %v828_v61 }
 0x1c2   : > { %v4866_v6 = vpop.eup %4865  ;;  %v5847_v25 = vmul.f32 %v4864_v22, %v5379_v15  ;;  %4885 = vrcp.f32 %v829_v59 }
 0x1c3   : > { %v4868_v43 = vpop.eup %4867  ;;  %4578 = vmatmul.mubr.msk.f32.gmra.mrb[8].mxu1 %vm567_vm2, %v5842_v18  ;;  %v5852_v5 = vmul.f32 %v4866_v6, %v5377_v14  ;;  %4887 = vrcp.f32 %v830_v50  ;;  %v7238_v53 = vpack.c.bf16 %v5842_v18, %v5839_v8 }
 0x1c4   : > { %v4870_v3 = vpop.eup %4869  ;;  %4580 = vmatprep.mubr.msk.f32.mxu1 %vm567_vm2, %v5847_v25  ;;  %v5859_v29 = vmul.f32 %v4868_v43, %v5391_v26  ;;  %4889 = vrcp.f32 %v831_v37 }
 0x1c5   : > { %v4872_v15 = vpop.eup %4871  ;;  %v5862_v60 = vmul.f32 %v4870_v3, %v5389_v24  ;;  %v7239_v30 = vpack.c.bf16 %v5852_v5, %v5847_v25 }
 0x1c6   : > { %v4874_v20 = vpop.eup %4873  ;;  %v5869_v7 = vmul.f32 %v4872_v15, %v5403_v40 }
 0x1c7   : > { %v4876_v10 = vpop.eup %4875  ;;  %4581 = vmatmul.mubr.msk.f32.gmra.mrb[10].mxu1 %vm567_vm2, %v5852_v5  ;;  %v5872_v28 = vmul.f32 %v4874_v20, %v5401_v39 }
 0x1c8   : > { %v4878_v35 = vpop.eup %4877  ;;  %4583 = vmatprep.mubr.msk.f32.mxu1 %vm567_vm2, %v5859_v29  ;;  %v5879_v21 = vmul.f32 %v4876_v10, %v5415_v52 }
 0x1c9   : > { %v4880_v24 = vpop.eup %4879  ;;  %v5882_v47 = vmul.f32 %v4878_v35, %v5413_v51  ;;  %v7241_v25 = vpack.c.bf16 %v5872_v28, %v5869_v7 }
 0x1ca   : > { %v4882_v33 = vpop.eup %4881  ;;  %v5889_v41 = vmul.f32 %v4880_v24, %v5427_v0 }
 0x1cb   : > { %v4884_v39 = vpop.eup %4883  ;;  %4584 = vmatmul.mubr.msk.f32.gmra.mrb[12].mxu1 %vm567_vm2, %v5862_v60  ;;  %v5892_v54 = vmul.f32 %v4882_v33, %v5425_v63 }
 0x1cc   : > { %v4886_v55 = vpop.eup %4885  ;;  %4586 = vmatprep.mubr.msk.f32.mxu1 %vm567_vm2, %v5869_v7  ;;  %v5899_v46 = vmul.f32 %v4884_v39, %v5439_v12 }
 0x1cd   : > { %v4888_v51 = vpop.eup %4887  ;;  %v5902_v17 = vmul.f32 %v4886_v55, %v5437_v11  ;;  %v7243_v7 = vpack.c.bf16 %v5892_v54, %v5889_v41 }
 0x1ce   : > { %v4890_v36 = vpop.eup %4889  ;;  %v5909_v63 = vmul.f32 %v4888_v51, %v5451_v27 }
 0x1cf   : > { %4587 = vmatmul.mubr.msk.f32.gmra.mrb[14].mxu1 %vm567_vm2, %v5872_v28  ;;  %v5912_v48 = vmul.f32 %v4890_v36, %v5449_v23 }
 0x1d0   : > { %4589 = vmatprep.mubr.msk.f32.mxu1 %vm567_vm2, %v5879_v21 }
 0x1d3   : > { %4590 = vmatmul.mubr.msk.f32.gmra.mrb[16].mxu1 %vm567_vm2, %v5882_v47 }
 0x1d4   : > { %4592 = vmatprep.mubr.msk.f32.mxu1 %vm567_vm2, %v5889_v41  ;;  %v7245_v41 = vpack.c.bf16 %v5912_v48, %v5909_v63 }
 0x1d7   : > { %4593 = vmatmul.mubr.msk.f32.gmra.mrb[18].mxu1 %vm567_vm2, %v5892_v54 }
 0x1d8   : > { %4595 = vmatprep.mubr.msk.f32.mxu1 %vm567_vm2, %v5899_v46 }
 0x1db   : > { %4596 = vmatmul.mubr.msk.f32.gmra.mrb[20].mxu1 %vm567_vm2, %v5902_v17 }
 0x1dc   : > { %4598 = vmatprep.mubr.msk.f32.mxu1 %vm567_vm2, %v5909_v63 }
 0x1df   : > { %4599 = vmatmul.mubr.msk.f32.gmra.mrb[22].mxu1 %vm567_vm2, %v5912_v48 }
 0x27e   : > { %v5934_v23 = vpop.f32.mrb[0].mxu1 }
 0x27f   : > { %v5936_v27 = vpop.f32.mrb[1].mxu1  ;;  %v1143_v32 = vsel %vm1139_vm6, %v5934_v23, -inf }
 0x280   : > { %1144 = vmax.xlane.f32.xlu1 %v1143_v32  ;;  %v1140_v62 = vsel %vm1139_vm6, %v5936_v27, -inf }
 0x281   : > { %1141 = vmax.xlane.f32.xlu0 %v1140_v62 }
 0x286   : > { %v5942_v38 = vpop.f32.mrb[2].mxu1 }
 0x287   : > { %v5944_v58 = vpop.f32.mrb[3].mxu1  ;;  %v1149_v31 = vsel %vm1139_vm6, %v5942_v38, -inf }
 0x288   : > { %1150 = vmax.xlane.f32.xlu1 %v1149_v31  ;;  %v1146_v61 = vsel %vm1139_vm6, %v5944_v58, -inf }
 0x289   : > { %1147 = vmax.xlane.f32.xlu0 %v1146_v61 }
 0x28b   : > { %v5950_v2 = vpop.f32.mrb[4].mxu1 }
 0x28c   : > { %v5952_v59 = vpop.f32.mrb[5].mxu1  ;;  %v1155_v56 = vsel %vm1139_vm6, %v5950_v2, -inf }
 0x28d   : > { %1156 = vmax.xlane.f32.xlu1 %v1155_v56  ;;  %v1152_v1 = vsel %vm1139_vm6, %v5952_v59, -inf }
 0x28e   : > { %1153 = vmax.xlane.f32.xlu0 %v1152_v1 }
 0x290   : > { %v5958_v44 = vpop.f32.mrb[6].mxu1 }
 0x291   : > { %v5960_v50 = vpop.f32.mrb[7].mxu1  ;;  %v1161_v9 = vsel %vm1139_vm6, %v5958_v44, -inf }
 0x292   : > { %1162 = vmax.xlane.f32.xlu1 %v1161_v9  ;;  %v1158_v49 = vsel %vm1139_vm6, %v5960_v50, -inf }
 0x293   : > { %1159 = vmax.xlane.f32.xlu0 %v1158_v49 }
 0x296   : > { %v5966_v45 = vpop.f32.mrb[8].mxu1 }
 0x297   : > { %v5968_v22 = vpop.f32.mrb[9].mxu1  ;;  %v1167_v19 = vsel %vm1139_vm6, %v5966_v45, -inf }
 0x298   : > { %1168 = vmax.xlane.f32.xlu1 %v1167_v19  ;;  %v1164_v6 = vsel %vm1139_vm6, %v5968_v22, -inf }
 0x299   : > { %1165 = vmax.xlane.f32.xlu0 %v1164_v6 }
 0x29a   : > { %v5974_v37 = vpop.f32.mrb[10].mxu1 }
 0x29b   : > { %v5976_v43 = vpop.f32.mrb[11].mxu1  ;;  %v1173_v3 = vsel %vm1139_vm6, %v5974_v37, -inf }
 0x29c   : > { %1174 = vmax.xlane.f32.xlu1 %v1173_v3  ;;  %v1170_v15 = vsel %vm1139_vm6, %v5976_v43, -inf }
 0x29d   : > { %1171 = vmax.xlane.f32.xlu0 %v1170_v15 }
 0x29e   : > { %v5982_v20 = vpop.f32.mrb[12].mxu1 }
 0x29f   : > { %v5984_v10 = vpop.f32.mrb[13].mxu1  ;;  %v1179_v35 = vsel %vm1139_vm6, %v5982_v20, -inf }
 0x2a0   : > { %1180 = vmax.xlane.f32.xlu1 %v1179_v35  ;;  %v1176_v24 = vsel %vm1139_vm6, %v5984_v10, -inf }
 0x2a1   : > { %1177 = vmax.xlane.f32.xlu0 %v1176_v24 }
 0x2a2   : > { %v5990_v33 = vpop.f32.mrb[14].mxu1 }
 0x2a3   : > { %v5992_v39 = vpop.f32.mrb[15].mxu1  ;;  %v1185_v55 = vsel %vm1139_vm6, %v5990_v33, -inf }
 0x2a4   : > { %1186 = vmax.xlane.f32.xlu1 %v1185_v55  ;;  %v1182_v51 = vsel %vm1139_vm6, %v5992_v39, -inf }
 0x2a5   : > { %1183 = vmax.xlane.f32.xlu0 %v1182_v51 }
 0x2a6   : > { %v5998_v36 = vpop.f32.mrb[16].mxu1 }
 0x2a7   : > { %v6000_v32 = vpop.f32.mrb[17].mxu1  ;;  %v1191_v62 = vsel %vm1139_vm6, %v5998_v36, -inf }
 0x2a8   : > { %1192 = vmax.xlane.f32.xlu1 %v1191_v62  ;;  %v1188_v31 = vsel %vm1139_vm6, %v6000_v32, -inf }
 0x2a9   : > { %1189 = vmax.xlane.f32.xlu0 %v1188_v31 }
 0x2aa   : > { %v6006_v61 = vpop.f32.mrb[18].mxu1 }
 0x2ab   : > { %v6008_v56 = vpop.f32.mrb[19].mxu1  ;;  %v1197_v1 = vsel %vm1139_vm6, %v6006_v61, -inf }
 0x2ac   : > { %1198 = vmax.xlane.f32.xlu1 %v1197_v1  ;;  %v1194_v9 = vsel %vm1139_vm6, %v6008_v56, -inf }
 0x2ad   : > { %1195 = vmax.xlane.f32.xlu0 %v1194_v9 }
 0x2ae   : > { %v6014_v49 = vpop.f32.mrb[20].mxu1 }
 0x2af   : > { %v6016_v19 = vpop.f32.mrb[21].mxu1  ;;  %v1203_v6 = vsel %vm1139_vm6, %v6014_v49, -inf }
 0x2b0   : > { %1204 = vmax.xlane.f32.xlu1 %v1203_v6  ;;  %v1200_v3 = vsel %vm1139_vm6, %v6016_v19, -inf }
 0x2b1   : > { %1201 = vmax.xlane.f32.xlu0 %v1200_v3 }
 0x2b2   : > { %v6022_v15 = vpop.f32.mrb[22].mxu1 }
 0x2b3   : > { %v6024_v35 = vpop.f32.mrb[23].mxu1  ;;  %v1209_v24 = vsel %vm1139_vm6, %v6022_v15, -inf }
 0x2b4   : > { %1210 = vmax.xlane.f32.xlu1 %v1209_v24  ;;  %v1206_v55 = vsel %vm1139_vm6, %v6024_v35, -inf }
 0x2b5   : > { %1207 = vmax.xlane.f32.xlu0 %v1206_v55 }
 0x30d   : > { %v1145_v51 = vpop.xlane.xlu1 %1144 }
 0x30e   : > { %v1213_v62 = vsub.f32 %v5934_v23, %v1145_v51  ;;  %v1142_v31 = vpop.xlane.xlu0 %1141 }
 0x30f   : > { %v1212_v1 = vsub.f32 %v5936_v27, %v1142_v31 }
 0x310   : > { %v1238_v9 = vmul.f32 1.442695, %v1213_v62 }
 0x311   : > { %v1236_v6 = vmul.f32 1.442695, %v1212_v1 }
 0x312   : > { %4891 = vpow2.f32 %v1238_v9 }
 0x313   : > { %4893 = vpow2.f32 %v1236_v6 }
 0x315   : > { %v1151_v3 = vpop.xlane.xlu1 %1150 }
 0x316   : > { %v1215_v11 = vsub.f32 %v5942_v38, %v1151_v3  ;;  %v1148_v12 = vpop.xlane.xlu0 %1147 }
 0x317   : > { %v1214_v24 = vsub.f32 %v5944_v58, %v1148_v12 }
 0x318   : > { %v1242_v0 = vmul.f32 1.442695, %v1215_v11 }
 0x319   : > { %v1240_v52 = vmul.f32 1.442695, %v1214_v24 }
 0x31a   : > { %4895 = vpow2.f32 %v1242_v0  ;;  %v1157_v55 = vpop.xlane.xlu1 %1156 }
 0x31b   : > { %4897 = vpow2.f32 %v1240_v52  ;;  %v1217_v23 = vsub.f32 %v5950_v2, %v1157_v55  ;;  %v1154_v51 = vpop.xlane.xlu0 %1153 }
 0x31c   : > { %v6035_v40 = vpop.eup %4891  ;;  %v1216_v27 = vsub.f32 %v5952_v59, %v1154_v51 }
 0x31d   : > { %v6038_v62 = vpop.eup %4893  ;;  %v1246_v31 = vmul.f32 1.442695, %v1217_v23  ;;  %v1287_v38 = vsel %vm1139_vm6, %v6035_v40, 0.0 }
 0x31e   : > { %v1244_v1 = vmul.f32 1.442695, %v1216_v27  ;;  %1288 = vadd.xlane.f32.xlu1 %v1287_v38  ;;  %v1284_v0 = vsel %vm1139_vm6, %v6038_v62, 0.0 }
 0x31f   : > { %4899 = vpow2.f32 %v1246_v31  ;;  %v1163_v52 = vpop.xlane.xlu1 %1162  ;;  %1285 = vadd.xlane.f32.xlu0 %v1284_v0 }
 0x320   : > { %4901 = vpow2.f32 %v1244_v1  ;;  %v1219_v12 = vsub.f32 %v5958_v44, %v1163_v52  ;;  %v1160_v11 = vpop.xlane.xlu0 %1159 }
 0x321   : > { %v1218_v58 = vsub.f32 %v5960_v50, %v1160_v11 }
 0x322   : > { %v1250_v2 = vmul.f32 1.442695, %v1219_v12 }
 0x323   : > { %v1248_v59 = vmul.f32 1.442695, %v1218_v58 }
 0x324   : > { %v6046_v6 = vpop.eup %4895  ;;  %4903 = vpow2.f32 %v1250_v2 }
 0x325   : > { %v1169_v9 = vpop.xlane.xlu1 %1168  ;;  %v6049_v55 = vpop.eup %4897  ;;  %4905 = vpow2.f32 %v1248_v59  ;;  %v1293_v44 = vsel %vm1139_vm6, %v6046_v6, 0.0 }
 0x326   : > { %v1221_v3 = vsub.f32 %v5966_v45, %v1169_v9  ;;  %v1166_v24 = vpop.xlane.xlu0 %1165  ;;  %1294 = vadd.xlane.f32.xlu1 %v1293_v44  ;;  %v1290_v50 = vsel %vm1139_vm6, %v6049_v55, 0.0 }
 0x327   : > { %v1220_v23 = vsub.f32 %v5968_v22, %v1166_v24  ;;  %1291 = vadd.xlane.f32.xlu0 %v1290_v50 }
 0x328   : > { %v1254_v51 = vmul.f32 1.442695, %v1221_v3 }
 0x329   : > { %v1252_v27 = vmul.f32 1.442695, %v1220_v23  ;;  %v1175_v31 = vpop.xlane.xlu1 %1174  ;;  %v6057_v1 = vpop.eup %4899 }
 0x32a   : > { %4907 = vpow2.f32 %v1254_v51  ;;  %v1223_v45 = vsub.f32 %v5974_v37, %v1175_v31  ;;  %v1172_v38 = vpop.xlane.xlu0 %1171  ;;  %v6060_v0 = vpop.eup %4901  ;;  %v1299_v12 = vsel %vm1139_vm6, %v6057_v1, 0.0 }
 0x32b   : > { %4909 = vpow2.f32 %v1252_v27  ;;  %v1222_v22 = vsub.f32 %v5976_v43, %v1172_v38  ;;  %1300 = vadd.xlane.f32.xlu1 %v1299_v12  ;;  %v1296_v2 = vsel %vm1139_vm6, %v6060_v0, 0.0 }
 0x32c   : > { %v1258_v52 = vmul.f32 1.442695, %v1223_v45  ;;  %1297 = vadd.xlane.f32.xlu0 %v1296_v2 }
 0x32d   : > { %v1256_v11 = vmul.f32 1.442695, %v1222_v22  ;;  %v1181_v58 = vpop.xlane.xlu1 %1180 }
 0x32e   : > { %4911 = vpow2.f32 %v1258_v52  ;;  %v1225_v37 = vsub.f32 %v5982_v20, %v1181_v58  ;;  %v1178_v59 = vpop.xlane.xlu0 %1177  ;;  %v6068_v9 = vpop.eup %4903 }
 0x32f   : > { %4913 = vpow2.f32 %v1256_v11  ;;  %v1224_v43 = vsub.f32 %v5984_v10, %v1178_v59  ;;  %v6070_v24 = vpop.eup %4905  ;;  %v1305_v51 = vsel %vm1139_vm6, %v6068_v9, 0.0 }
 0x330   : > { %v1262_v3 = vmul.f32 1.442695, %v1225_v37  ;;  %1306 = vadd.xlane.f32.xlu1 %v1305_v51  ;;  %v1302_v27 = vsel %vm1139_vm6, %v6070_v24, 0.0 }
 0x331   : > { %v1260_v23 = vmul.f32 1.442695, %v1224_v43  ;;  %v1187_v44 = vpop.xlane.xlu1 %1186  ;;  %1303 = vadd.xlane.f32.xlu0 %v1302_v27 }
 0x332   : > { %4915 = vpow2.f32 %v1262_v3  ;;  %v1227_v50 = vsub.f32 %v5990_v33, %v1187_v44  ;;  %v1184_v20 = vpop.xlane.xlu0 %1183 }
 0x333   : > { %4917 = vpow2.f32 %v1260_v23  ;;  %v1226_v10 = vsub.f32 %v5992_v39, %v1184_v20 }
 0x334   : > { %v6078_v31 = vpop.eup %4907  ;;  %v1266_v45 = vmul.f32 1.442695, %v1227_v50 }
 0x335   : > { %v6080_v38 = vpop.eup %4909  ;;  %v1264_v22 = vmul.f32 1.442695, %v1226_v10  ;;  %v1193_v52 = vpop.xlane.xlu1 %1192  ;;  %v1311_v12 = vsel %vm1139_vm6, %v6078_v31, 0.0 }
 0x336   : > { %4919 = vpow2.f32 %v1266_v45  ;;  %v1229_v33 = vsub.f32 %v5998_v36, %v1193_v52  ;;  %1312 = vadd.xlane.f32.xlu1 %v1311_v12  ;;  %v1190_v11 = vpop.xlane.xlu0 %1189  ;;  %v1308_v58 = vsel %vm1139_vm6, %v6080_v38, 0.0 }
 0x337   : > { %4921 = vpow2.f32 %v1264_v22  ;;  %v1228_v39 = vsub.f32 %v6000_v32, %v1190_v11  ;;  %1309 = vadd.xlane.f32.xlu0 %v1308_v58 }
 0x338   : > { %v6088_v2 = vpop.eup %4911  ;;  %v1270_v37 = vmul.f32 1.442695, %v1229_v33 }
 0x339   : > { %v6090_v59 = vpop.eup %4913  ;;  %v1268_v43 = vmul.f32 1.442695, %v1228_v39  ;;  %v1199_v3 = vpop.xlane.xlu1 %1198  ;;  %v1317_v23 = vsel %vm1139_vm6, %v6088_v2, 0.0 }
 0x33a   : > { %4923 = vpow2.f32 %v1270_v37  ;;  %v1231_v36 = vsub.f32 %v6006_v61, %v1199_v3  ;;  %1318 = vadd.xlane.f32.xlu1 %v1317_v23  ;;  %v1196_v44 = vpop.xlane.xlu0 %1195  ;;  %v1314_v51 = vsel %vm1139_vm6, %v6090_v59, 0.0 }
 0x33b   : > { %4925 = vpow2.f32 %v1268_v43  ;;  %v1230_v32 = vsub.f32 %v6008_v56, %v1196_v44  ;;  %1315 = vadd.xlane.f32.xlu0 %v1314_v51 }
 0x33c   : > { %v6098_v50 = vpop.eup %4915  ;;  %v1274_v20 = vmul.f32 1.442695, %v1231_v36 }
 0x33d   : > { %v6100_v27 = vpop.eup %4917  ;;  %v1272_v10 = vmul.f32 1.442695, %v1230_v32  ;;  %v1205_v45 = vpop.xlane.xlu1 %1204  ;;  %v1323_v22 = vsel %vm1139_vm6, %v6098_v50, 0.0 }
 0x33e   : > { %4927 = vpow2.f32 %v1274_v20  ;;  %v1233_v61 = vsub.f32 %v6014_v49, %v1205_v45  ;;  %1324 = vadd.xlane.f32.xlu1 %v1323_v22  ;;  %v1202_v52 = vpop.xlane.xlu0 %1201  ;;  %v1320_v12 = vsel %vm1139_vm6, %v6100_v27, 0.0 }
 0x33f   : > { %4929 = vpow2.f32 %v1272_v10  ;;  %v1232_v56 = vsub.f32 %v6016_v19, %v1202_v52  ;;  %1321 = vadd.xlane.f32.xlu0 %v1320_v12 }
 0x340   : > { %v6108_v33 = vpop.eup %4919  ;;  %v1278_v11 = vmul.f32 1.442695, %v1233_v61 }
 0x341   : > { %v6110_v58 = vpop.eup %4921  ;;  %v1276_v39 = vmul.f32 1.442695, %v1232_v56  ;;  %v1211_v37 = vpop.xlane.xlu1 %1210  ;;  %v1329_v43 = vsel %vm1139_vm6, %v6108_v33, 0.0 }
 0x342   : > { %4931 = vpow2.f32 %v1278_v11  ;;  %v1235_v49 = vsub.f32 %v6022_v15, %v1211_v37  ;;  %1330 = vadd.xlane.f32.xlu1 %v1329_v43  ;;  %v1208_v3 = vpop.xlane.xlu0 %1207  ;;  %v1326_v23 = vsel %vm1139_vm6, %v6110_v58, 0.0 }
 0x343   : > { %4933 = vpow2.f32 %v1276_v39  ;;  %v1234_v19 = vsub.f32 %v6024_v35, %v1208_v3  ;;  %1327 = vadd.xlane.f32.xlu0 %v1326_v23 }
 0x344   : > { %v6118_v36 = vpop.eup %4923  ;;  %v1282_v44 = vmul.f32 1.442695, %v1235_v49  ;;  %v5213_v49 = vmov 0.0  }
 0x345   : > { %v6120_v51 = vpop.eup %4925  ;;  %v1280_v32 = vmul.f32 1.442695, %v1234_v19  ;;  %v1335_v20 = vsel %vm1139_vm6, %v6118_v36, 0.0  ;;  %4605 = vmatprep.mubr.msk.f32.mxu0 %vm5212_vm7, %v5213_v49  ;;  %4612 = vmatprep.mubr.msk.f32.mxu1 %vm5212_vm7, %v5213_v49 }
 0x346   : > { %4935 = vpow2.f32 %v1282_v44  ;;  %1336 = vadd.xlane.f32.xlu1 %v1335_v20  ;;  %v1332_v15 = vsel %vm1139_vm6, %v6120_v51, 0.0 }
 0x347   : > { %4937 = vpow2.f32 %v1280_v32  ;;  %1333 = vadd.xlane.f32.xlu0 %v1332_v15 }
 0x348   : > { %v6126_v10 = vpop.eup %4927 }
 0x349   : > { %v6128_v35 = vpop.eup %4929  ;;  %v1341_v45 = vsel %vm1139_vm6, %v6126_v10, 0.0 }
 0x34a   : > { %1342 = vadd.xlane.f32.xlu1 %v1341_v45  ;;  %v1338_v22 = vsel %vm1139_vm6, %v6128_v35, 0.0 }
 0x34b   : > { %1339 = vadd.xlane.f32.xlu0 %v1338_v22 }
 0x34c   : > { %v6134_v61 = vpop.eup %4931 }
 0x34d   : > { %v6136_v52 = vpop.eup %4933  ;;  %v1347_v12 = vsel %vm1139_vm6, %v6134_v61, 0.0 }
 0x34e   : > { %1348 = vadd.xlane.f32.xlu1 %v1347_v12  ;;  %v1344_v56 = vsel %vm1139_vm6, %v6136_v52, 0.0 }
 0x34f   : > { %1345 = vadd.xlane.f32.xlu0 %v1344_v56 }
 0x350   : > { %v6142_v11 = vpop.eup %4935 }
 0x351   : > { %v6144_v39 = vpop.eup %4937  ;;  %v1353_v37 = vsel %vm1139_vm6, %v6142_v11, 0.0 }
 0x352   : > { %1354 = vadd.xlane.f32.xlu1 %v1353_v37  ;;  %v1350_v43 = vsel %vm1139_vm6, %v6144_v39, 0.0 }
 0x353   : > { %1351 = vadd.xlane.f32.xlu0 %v1350_v43 }
 0x3ab   : > { %v1289_v3 = vpop.xlane.xlu1 %1288 }
 0x3ac   : > { %4939 = vrcp.f32 %v1289_v3  ;;  %v1286_v23 = vpop.xlane.xlu0 %1285 }
 0x3ad   : > { %4941 = vrcp.f32 %v1286_v23 }
 0x3b3   : > { %v1295_v19 = vpop.xlane.xlu1 %1294 }
 0x3b4   : > { %4943 = vrcp.f32 %v1295_v19  ;;  %v1292_v44 = vpop.xlane.xlu0 %1291 }
 0x3b5   : > { %4945 = vrcp.f32 %v1292_v44 }
 0x3b6   : > { %v4940_v32 = vpop.eup %4939 }
 0x3b7   : > { %v4942_v20 = vpop.eup %4941  ;;  %v1359_v15 = vmul.f32 %v4940_v32, %v6035_v40 }
 0x3b8   : > { %v1301_v45 = vpop.xlane.xlu1 %1300  ;;  %v1357_v22 = vmul.f32 %v4942_v20, %v6038_v62 }
 0x3b9   : > { %v1298_v12 = vpop.xlane.xlu0 %1297  ;;  %v1511_v56 = vsel %vm1139_vm6, %v1359_v15, 0.0 }
 0x3ba   : > { %4947 = vrcp.f32 %v1298_v12  ;;  %1405 = vxpose.xlu0.b32.start [1/2] (short) (narrow) %v1357_v22, 8  ;;  %v1510_v37 = vsel %vm1139_vm6, %v1357_v22, 0.0 }
 0x3bb   : > { %v1512_v43 = vadd.f32 %v1511_v56, %v1510_v37  ;;  %4949 = vrcp.f32 %v1301_v45 }
 0x3bd   : > { %v1307_v3 = vpop.xlane.xlu1 %1306  ;;  %v1513_v23 = vrot.slane %v1512_v43, 4 }
 0x3be   : > { %v4944_v19 = vpop.eup %4943  ;;  %v1304_v44 = vpop.xlane.xlu0 %1303  ;;  %1406 = vxpose.xlu0.b32.end [2/2] (short) (narrow) %v1359_v15, 8 }
 0x3bf   : > { %v4946_v26 = vpop.eup %4945  ;;  %4951 = vrcp.f32 %v1304_v44  ;;  %v1363_v40 = vmul.f32 %v4944_v19, %v6046_v6  ;;  %v1514_v32 = vadd.f32 %v1513_v23, %v1512_v43 }
 0x3c0   : > { %v1361_v62 = vmul.f32 %v4946_v26, %v6049_v55  ;;  %4953 = vrcp.f32 %v1307_v3 }
 0x3c1   : > { %v1664_v12 = vsel %vm1139_vm6, %v1363_v40, 0.0  ;;  %v1515_v14 = vrot.slane %v1514_v32, 2 }
 0x3c2   : > { %1558 = vxpose.xlu1.b32.start [1/2] (short) (narrow) %v1361_v62, 8  ;;  %v1663_v45 = vsel %vm1139_vm6, %v1361_v62, 0.0 }
 0x3c3   : > { %v1313_v20 = vpop.xlane.xlu1 %1312  ;;  %v1665_v56 = vadd.f32 %v1664_v12, %v1663_v45  ;;  %v1516_v37 = vadd.f32 %v1515_v14, %v1514_v32 }
 0x3c4   : > { %v1310_v22 = vpop.xlane.xlu0 %1309  ;;  %v4948_v15 = vpop.eup %4947 }
 0x3c5   : > { %4955 = vrcp.f32 %v1310_v22  ;;  %v1365_v6 = vmul.f32 %v4948_v15, %v6060_v0  ;;  %v1517_v43 = vrot.slane %v1516_v37, 1  ;;  %v1666_v23 = vrot.slane %v1665_v56, 4  ;;  %v4950_v26 = vpop.eup %4949 }
 0x3c6   : > { %4957 = vrcp.f32 %v1313_v20  ;;  %1559 = vxpose.xlu1.b32.end [2/2] (short) (narrow) %v1363_v40, 8  ;;  %v1367_v12 = vmul.f32 %v4950_v26, %v6057_v1 }
 0x3c7   : > { %v1319_v44 = vpop.xlane.xlu1 %1318  ;;  %1711 = vxpose.xlu0.b32.start [1/2] (short) (narrow) %v1365_v6, 8  ;;  %v1518_v19 = vadd.f32 %v1517_v43, %v1516_v37  ;;  %v1667_v3 = vadd.f32 %v1666_v23, %v1665_v56 }
 0x3c8   : > { %v1316_v55 = vpop.xlane.xlu0 %1315  ;;  %4959 = vrcp.f32 %v1319_v44 }
 0x3c9   : > { %v4952_v4 = vpop.eup %4951  ;;  %4961 = vrcp.f32 %v1316_v55  ;;  %v1668_v14 = vrot.slane %v1667_v3, 2  ;;  %v1816_v55 = vsel %vm1139_vm6, %v1365_v6, 0.0 }
 0x3ca   : > { %1519 = vxpose.xlu1.b32.start.end [1/1] (short) (narrow) %v1518_v19, 8  ;;  %v4954_v0 = vpop.eup %4953  ;;  %v1369_v20 = vmul.f32 %v4952_v4, %v6070_v24 }
 0x3cb   : > { %v1325_v62 = vpop.xlane.xlu1 %1324  ;;  %1712 = vxpose.xlu0.b32.end [2/2] (short) (narrow) %v1367_v12, 8  ;;  %v1669_v22 = vadd.f32 %v1668_v14, %v1667_v3  ;;  %v1371_v1 = vmul.f32 %v4954_v0, %v6068_v9 }
 0x3cc   : > { %v1322_v32 = vpop.xlane.xlu0 %1321  ;;  %v1969_v0 = vsel %vm1139_vm6, %v1369_v20, 0.0 }
 0x3cd   : > { %4963 = vrcp.f32 %v1322_v32  ;;  %v1670_v44 = vrot.slane %v1669_v22, 1  ;;  %v1970_v6 = vsel %vm1139_vm6, %v1371_v1, 0.0 }
 0x3ce   : > { %1864 = vxpose.xlu1.b32.start [1/2] (short) (narrow) %v1369_v20, 8  ;;  %4965 = vrcp.f32 %v1325_v62 }
 0x3cf   : > { %v4956_v45 = vpop.eup %4955  ;;  %v1331_v40 = vpop.xlane.xlu1 %1330  ;;  %v1671_v19 = vadd.f32 %v1670_v44, %v1669_v22 }
 0x3d0   : > { %v1328_v15 = vpop.xlane.xlu0 %1327  ;;  %v1373_v56 = vmul.f32 %v4956_v45, %v6080_v38  ;;  %v4958_v37 = vpop.eup %4957  ;;  %v1817_v38 = vsel %vm1139_vm6, %v1367_v12, 0.0 }
 0x3d1   : > { %4967 = vrcp.f32 %v1328_v15  ;;  %v1375_v4 = vmul.f32 %v4958_v37, %v6078_v31  ;;  %v1818_v62 = vadd.f32 %v1817_v38, %v1816_v55 }
 0x3d2   : > { %2017 = vxpose.xlu0.b32.start [1/2] (short) (narrow) %v1373_v56, 8  ;;  %v4960_v23 = vpop.eup %4959  ;;  %1865 = vxpose.xlu1.b32.end [2/2] (short) (narrow) %v1371_v1, 8 }
 0x3d3   : > { %v1337_v43 = vpop.xlane.xlu1 %1336  ;;  %v4962_v24 = vpop.eup %4961  ;;  %v1379_v31 = vmul.f32 %v4960_v23, %v6088_v2  ;;  %v1971_v2 = vadd.f32 %v1970_v6, %v1969_v0  ;;  %v2123_v23 = vsel %vm1139_vm6, %v1375_v4, 0.0 }
 0x3d4   : > { %4969 = vrcp.f32 %v1337_v43  ;;  %v1334_v26 = vpop.xlane.xlu0 %1333  ;;  %v1377_v32 = vmul.f32 %v4962_v24, %v6090_v59  ;;  %v1819_v59 = vrot.slane %v1818_v62, 4 }
 0x3d5   : > { %4971 = vrcp.f32 %v1334_v26  ;;  %v2276_v37 = vsel %vm1139_vm6, %v1379_v31, 0.0 }
 0x3d6   : > { %2018 = vxpose.xlu0.b32.end [2/2] (short) (narrow) %v1375_v4, 8  ;;  %4973 = vrcp.f32 %v1331_v40  ;;  %1672 = vxpose.xlu1.b32.start.end [1/1] (short) (narrow) %v1671_v19, 8  ;;  %v2275_v40 = vsel %vm1139_vm6, %v1377_v32, 0.0 }
 0x3d7   : > { %v4964_v3 = vpop.eup %4963  ;;  %v1343_v9 = vpop.xlane.xlu1 %1342  ;;  %v2277_v26 = vadd.f32 %v2276_v37, %v2275_v40 }
 0x3d8   : > { %4975 = vrcp.f32 %v1343_v9  ;;  %v1340_v14 = vpop.xlane.xlu0 %1339  ;;  %v1381_v12 = vmul.f32 %v4964_v3, %v6100_v27  ;;  %v4966_v22 = vpop.eup %4965  ;;  %v2122_v27 = vsel %vm1139_vm6, %v1373_v56, 0.0  ;;  %v1820_v9 = vadd.f32 %v1819_v59, %v1818_v62 }
 0x3d9   : > { %4977 = vrcp.f32 %v1340_v14  ;;  %v1383_v20 = vmul.f32 %v4966_v22, %v6098_v50  ;;  %v2278_v6 = vrot.slane %v2277_v26, 4 }
 0x3da   : > { %2170 = vxpose.xlu0.b32.start [1/2] (short) (narrow) %v1377_v32, 8  ;;  %2323 = vxpose.xlu1.b32.start [1/2] (short) (narrow) %v1381_v12, 8  ;;  %v1972_v32 = vrot.slane %v1971_v2, 4  ;;  %v1821_v22 = vrot.slane %v1820_v9, 2 }
 0x3db   : > { %v1349_v45 = vpop.xlane.xlu1 %1348  ;;  %v4968_v44 = vpop.eup %4967  ;;  %v2429_v40 = vsel %vm1139_vm6, %v1383_v20, 0.0 }
 0x3dc   : > { %4979 = vrcp.f32 %v1349_v45  ;;  %v1346_v15 = vpop.xlane.xlu0 %1345  ;;  %v1385_v19 = vmul.f32 %v4968_v44, %v6110_v58  ;;  %v2428_v45 = vsel %vm1139_vm6, %v1381_v12, 0.0  ;;  %v1973_v37 = vadd.f32 %v1972_v32, %v1971_v2 }
 0x3dd   : > { %4981 = vrcp.f32 %v1346_v15  ;;  %v1822_v12 = vadd.f32 %v1821_v22, %v1820_v9 }
 0x3de   : > { %v4970_v43 = vpop.eup %4969  ;;  %2171 = vxpose.xlu0.b32.end [2/2] (short) (narrow) %v1379_v31, 8  ;;  %2324 = vxpose.xlu1.b32.end [2/2] (short) (narrow) %v1383_v20, 8  ;;  %v2124_v31 = vadd.f32 %v2123_v23, %v2122_v27  ;;  %v2279_v27 = vadd.f32 %v2278_v6, %v2277_v26  ;;  %v2581_v20 = vsel %vm1139_vm6, %v1385_v19, 0.0 }
 0x3df   : > { %v4972_v1 = vpop.eup %4971  ;;  %v1355_v24 = vpop.xlane.xlu1 %1354  ;;  %v1391_v55 = vmul.f32 %v4970_v43, %v6118_v36 }
 0x3e0   : > { %4983 = vrcp.f32 %v1355_v24  ;;  %v1352_v38 = vpop.xlane.xlu0 %1351  ;;  %v1389_v3 = vmul.f32 %v4972_v1, %v6120_v51  ;;  %v4974_v14 = vpop.eup %4973 }
 0x3e1   : > { %4985 = vrcp.f32 %v1352_v38  ;;  %v2735_v50 = vsel %vm1139_vm6, %v1391_v55, 0.0  ;;  %v1387_v58 = vmul.f32 %v4974_v14, %v6108_v33 }
 0x3e2   : > { %v4976_v56 = vpop.eup %4975  ;;  %2476 = vxpose.xlu0.b32.start [1/2] (short) (narrow) %v1385_v19, 8  ;;  %v2734_v4 = vsel %vm1139_vm6, %v1389_v3, 0.0  ;;  %2629 = vxpose.xlu1.b32.start [1/2] (short) (narrow) %v1389_v3, 8  ;;  %v1974_v3 = vrot.slane %v1973_v37, 2 }
 0x3e3   : > { %v4978_v0 = vpop.eup %4977  ;;  %v1395_v36 = vmul.f32 %v4976_v56, %v6126_v10  ;;  %v2736_v62 = vadd.f32 %v2735_v50, %v2734_v4  ;;  %v2125_v10 = vrot.slane %v2124_v31, 4  ;;  %v2582_v2 = vsel %vm1139_vm6, %v1387_v58, 0.0 }
 0x3e4   : > { %v1393_v51 = vmul.f32 %v4978_v0, %v6128_v35  ;;  %v2430_v35 = vadd.f32 %v2429_v40, %v2428_v45  ;;  %v2583_v9 = vadd.f32 %v2582_v2, %v2581_v20  ;;  %v1975_v22 = vadd.f32 %v1974_v3, %v1973_v37 }
 0x3e5   : > { %v2888_v15 = vsel %vm1139_vm6, %v1395_v36, 0.0  ;;  %v2737_v24 = vrot.slane %v2736_v62, 4  ;;  %v2126_v32 = vadd.f32 %v2125_v10, %v2124_v31 }
 0x3e6   : > { %v4980_v59 = vpop.eup %4979  ;;  %2477 = vxpose.xlu0.b32.end [2/2] (short) (narrow) %v1387_v58, 8  ;;  %v2887_v44 = vsel %vm1139_vm6, %v1393_v51, 0.0  ;;  %2630 = vxpose.xlu1.b32.end [2/2] (short) (narrow) %v1391_v55, 8  ;;  %v2431_v0 = vrot.slane %v2430_v35, 4  ;;  %v1823_v58 = vrot.slane %v1822_v12, 1  ;;  %v2584_v10 = vrot.slane %v2583_v9, 4 }
 0x3e7   : > { %v4982_v43 = vpop.eup %4981  ;;  %v2889_v1 = vadd.f32 %v2888_v15, %v2887_v44  ;;  %v1399_v33 = vmul.f32 %v4980_v59, %v6134_v61  ;;  %v2738_v4 = vadd.f32 %v2737_v24, %v2736_v62  ;;  %v2127_v31 = vrot.slane %v2126_v32, 2 }
 0x3e8   : > { %v1397_v23 = vmul.f32 %v4982_v43, %v6136_v52  ;;  %v2280_v52 = vrot.slane %v2279_v27, 2  ;;  %v2432_v44 = vadd.f32 %v2431_v0, %v2430_v35  ;;  %v1824_v43 = vadd.f32 %v1823_v58, %v1822_v12 }
 0x3e9   : > { %v3041_v38 = vsel %vm1139_vm6, %v1399_v33, 0.0  ;;  %v2890_v61 = vrot.slane %v2889_v1, 4  ;;  %v2739_v59 = vrot.slane %v2738_v4, 2  ;;  %v2128_v62 = vadd.f32 %v2127_v31, %v2126_v32 }
 0x3ea   : > { %v4984_v14 = vpop.eup %4983  ;;  %2782 = vxpose.xlu0.b32.start [1/2] (short) (narrow) %v1393_v51, 8  ;;  %v3040_v50 = vsel %vm1139_vm6, %v1397_v23, 0.0  ;;  %2935 = vxpose.xlu1.b32.start [1/2] (short) (narrow) %v1397_v23, 8  ;;  %v2433_v2 = vrot.slane %v2432_v44, 2 }
 0x3eb   : > { %v4986_v26 = vpop.eup %4985  ;;  %v3042_v56 = vadd.f32 %v3041_v38, %v3040_v50  ;;  %v1403_v55 = vmul.f32 %v4984_v14, %v6142_v11  ;;  %v2891_v45 = vadd.f32 %v2890_v61, %v2889_v1  ;;  %v2281_v11 = vadd.f32 %v2280_v52, %v2279_v27 }
 0x3ec   : > { %v1401_v19 = vmul.f32 %v4986_v26, %v6144_v39  ;;  %v1976_v39 = vrot.slane %v1975_v22, 1  ;;  %v2740_v37 = vadd.f32 %v2739_v59, %v2738_v4  ;;  %v2585_v38 = vadd.f32 %v2584_v10, %v2583_v9 }
 0x3ed   : > { %v3194_v6 = vsel %vm1139_vm6, %v1403_v55, 0.0  ;;  %v3043_v40 = vrot.slane %v3042_v56, 4  ;;  %v2892_v23 = vrot.slane %v2891_v45, 2  ;;  %v2129_v3 = vrot.slane %v2128_v62, 1 }
 0x3ee   : > { %2783 = vxpose.xlu0.b32.end [2/2] (short) (narrow) %v1395_v36, 8  ;;  %v3193_v51 = vsel %vm1139_vm6, %v1401_v19, 0.0  ;;  %2936 = vxpose.xlu1.b32.end [2/2] (short) (narrow) %v1399_v33, 8  ;;  %v2282_v36 = vrot.slane %v2281_v11, 1  ;;  %v1977_v1 = vadd.f32 %v1976_v39, %v1975_v22  ;;  %v2741_v12 = vrot.slane %v2740_v37, 1 }
 0x3ef   : > { %v3195_v15 = vadd.f32 %v3194_v6, %v3193_v51  ;;  %v3044_v24 = vadd.f32 %v3043_v40, %v3042_v56  ;;  %v2893_v33 = vadd.f32 %v2892_v23, %v2891_v45  ;;  %v2434_v50 = vadd.f32 %v2433_v2, %v2432_v44 }
 0x3f0   : > { %v2283_v35 = vadd.f32 %v2282_v36, %v2281_v11  ;;  %v2586_v61 = vrot.slane %v2585_v38, 2  ;;  %v2130_v32 = vadd.f32 %v2129_v3, %v2128_v62 }
 0x3f1   : > { %v3196_v20 = vrot.slane %v3195_v15, 4  ;;  %v3045_v27 = vrot.slane %v3044_v24, 2  ;;  %v2894_v26 = vrot.slane %v2893_v33, 1  ;;  %v2435_v4 = vrot.slane %v2434_v50, 1 }
 0x3f2   : > { %3088 = vxpose.xlu0.b32.start [1/2] (short) (narrow) %v1401_v19, 8  ;;  %1825 = vxpose.xlu1.b32.start.end [1/1] (short) (narrow) %v1824_v43, 8  ;;  %v2742_v19 = vadd.f32 %v2741_v12, %v2740_v37  ;;  %v2587_v9 = vadd.f32 %v2586_v61, %v2585_v38 }
 0x3f3   : > { %v3197_v14 = vadd.f32 %v3196_v20, %v3195_v15  ;;  %v3046_v56 = vadd.f32 %v3045_v27, %v3044_v24  ;;  %v2436_v58 = vadd.f32 %v2435_v4, %v2434_v50  ;;  %v5214_v15 = vmov 0   ;;  %v6275_v24 = vld [vmem:[%s7233_s4] sm:$0xff] }
 0x3f4   : > { %v2588_v22 = vrot.slane %v2587_v9, 1 }
 0x3f5   : > { %v3198_v52 = vrot.slane %v3197_v14, 2  ;;  %v3047_v0 = vrot.slane %v3046_v56, 1 }
 0x3f6   : > { %3089 = vxpose.xlu0.b32.end [2/2] (short) (narrow) %v1403_v55, 8  ;;  %1978 = vxpose.xlu1.b32.start.end [1/1] (short) (narrow) %v1977_v1, 8  ;;  %v2895_v55 = vadd.f32 %v2894_v26, %v2893_v33  ;;  %v2589_v45 = vadd.f32 %v2588_v22, %v2587_v9 }
 0x3f7   : > { %v3199_v6 = vadd.f32 %v3198_v52, %v3197_v14  ;;  %v3048_v51 = vadd.f32 %v3047_v0, %v3046_v56 }
 0x3f9   : > { %v3200_v31 = vrot.slane %v3199_v6, 1 }
 0x3fa   : > { %2284 = vxpose.xlu0.b32.start.end [1/1] (short) (narrow) %v2283_v35, 8  ;;  %2131 = vxpose.xlu1.b32.start.end [1/1] (short) (narrow) %v2130_v32, 8 }
 0x3fb   : > { %v3201_v40 = vadd.f32 %v3200_v31, %v3199_v6 }
 0x3fe   : > { %2743 = vxpose.xlu0.b32.start.end [1/1] (short) (narrow) %v2742_v19, 8  ;;  %2896 = vxpose.xlu1.b32.start.end [1/1] (short) (narrow) %v2895_v55, 8 }
 0x402   : > { %2437 = vxpose.xlu0.b32.start.end [1/1] (short) (narrow) %v2436_v58, 8  ;;  %3049 = vxpose.xlu1.b32.start.end [1/1] (short) (narrow) %v3048_v51, 8 }
 0x406   : > { %2590 = vxpose.xlu0.b32.start.end [1/1] (short) (narrow) %v2589_v45, 8  ;;  %3202 = vxpose.xlu1.b32.start.end [1/1] (short) (narrow) %v3201_v40, 8 }
 0x424   : > { %4794 = vset.pattern.permute.xlu1 %v5214_v15 }
 0x42f   : > { %4793 = vset.pattern.permute.xlu0 %v5214_v15 }
 0x43a   : > { %v1421_v11 = vpop.trf.xlu0 }
 0x43b   : > { %4606 = vmatmul.mubr.msk.f32.vlgmr.msra.gmra.mrb[24].mxu0 %vm567_vm2, %v1421_v11 }
 0x43c   : > { %4697 = vmatpush3.bf16.msra.mxu0 %v4696_v16  ;;  %4619 = vmatprep.mubr.msk.f32.mxu0 %vm5212_vm7, %v5213_v49 }
 0x43d   : > { %4701 = vmatprep.subr.bf16.mxu0 %v5211_v42 }
 0x442   : > { %v1574_v59 = vpop.trf.xlu1 }
 0x443   : > { %4613 = vmatmul.mubr.msk.f32.vlgmr.msra.gmra.mrb[24].mxu1 %vm567_vm2, %v1574_v59 }
 0x444   : > { %4700 = vmatpush3.bf16.msra.mxu1 %v4699_v57  ;;  %4626 = vmatprep.mubr.msk.f32.mxu1 %vm5212_vm7, %v5213_v49  ;;  %v7240_v57 = vpack.c.bf16 %v5862_v60, %v5859_v29  ;;  %v7242_v29 = vpack.c.bf16 %v5882_v47, %v5879_v21  ;;  %v7244_v21 = vpack.c.bf16 %v5902_v17, %v5899_v46 }
 0x445   : > { %4704 = vmatprep.subr.bf16.mxu1 %v5211_v42 }
 0x447   : > { %v1727_v44 = vpop.trf.xlu0 }
 0x448   : > { %4620 = vmatmul.mubr.msk.f32.vlgmr.msra.gmra.mrb[26].mxu0 %vm567_vm2, %v1727_v44 }
 0x449   : > { %4703 = vmatpush3.bf16.msra.mxu0 %v7238_v53  ;;  %4633 = vmatprep.mubr.msk.f32.mxu0 %vm5212_vm7, %v5213_v49 }
 0x44a   : > { %v1535_v34 = vpop.trf.xlu1  ;;  %4707 = vmatprep.subr.bf16.mxu0 %v5211_v42 }
 0x44b   : > { %1553 = vperm.xlu0 %4793, %v1535_v34  }
 0x44e   : > { %v1880_v13 = vpop.trf.xlu1 }
 0x44f   : > { %4627 = vmatmul.mubr.msk.f32.vlgmr.msra.gmra.mrb[26].mxu1 %vm567_vm2, %v1880_v13 }
 0x450   : > { %4706 = vmatpush3.bf16.msra.mxu1 %v7239_v30  ;;  %4640 = vmatprep.mubr.msk.f32.mxu1 %vm5212_vm7, %v5213_v49 }
 0x451   : > { %4710 = vmatprep.subr.bf16.mxu1 %v5211_v42 }
 0x452   : > { %v2033_v16 = vpop.trf.xlu0 }
 0x453   : > { %4634 = vmatmul.mubr.msk.f32.vlgmr.msra.gmra.mrb[28].mxu0 %vm567_vm2, %v2033_v16 }
 0x454   : > { %4709 = vmatpush3.bf16.msra.mxu0 %v7240_v57  ;;  %4647 = vmatprep.mubr.msk.f32.mxu0 %vm5212_vm7, %v5213_v49 }
 0x455   : > { %4713 = vmatprep.subr.bf16.mxu0 %v5211_v42 }
 0x456   : > { %v1688_v8 = vpop.trf.xlu1 }
 0x457   : > { %1706 = vperm.xlu1 %4794, %v1688_v8  }
 0x45a   : > { %v2186_v18 = vpop.trf.xlu0  ;;  %v2339_v5 = vpop.trf.xlu1 }
 0x45b   : > { %4641 = vmatmul.mubr.msk.f32.vlgmr.msra.gmra.mrb[28].mxu1 %vm567_vm2, %v2186_v18  ;;  %4648 = vmatmul.mubr.msk.f32.vlgmr.msra.gmra.mrb[30].mxu0 %vm567_vm2, %v2339_v5 }
 0x45c   : > { %4712 = vmatpush3.bf16.msra.mxu1 %v7241_v25  ;;  %4654 = vmatprep.mubr.msk.f32.mxu1 %vm5212_vm7, %v5213_v49 }
 0x45d   : > { %4716 = vmatprep.subr.bf16.mxu1 %v5211_v42  ;;  %4715 = vmatpush3.bf16.msra.mxu0 %v7242_v29 }
 0x45e   : > { %4661 = vmatprep.mubr.msk.f32.mxu0 %vm5212_vm7, %v5213_v49  ;;  %4719 = vmatprep.subr.bf16.mxu0 %v5211_v42 }
 0x462   : > { %v2492_v60 = vpop.trf.xlu0  ;;  %v2645_v28 = vpop.trf.xlu1 }
 0x463   : > { %4655 = vmatmul.mubr.msk.f32.vlgmr.msra.gmra.mrb[30].mxu1 %vm567_vm2, %v2492_v60  ;;  %4662 = vmatmul.mubr.msk.f32.vlgmr.msra.gmra.mrb[32].mxu0 %vm567_vm2, %v2645_v28 }
 0x464   : > { %4718 = vmatpush3.bf16.msra.mxu1 %v7243_v7  ;;  %4668 = vmatprep.mubr.msk.f32.mxu1 %vm5212_vm7, %v5213_v49 }
 0x465   : > { %4722 = vmatprep.subr.bf16.mxu1 %v5211_v42  ;;  %4721 = vmatpush3.bf16.msra.mxu0 %v7244_v21 }
 0x466   : > { %4675 = vmatprep.mubr.msk.f32.mxu0 %vm5212_vm7, %v5213_v49 }
 0x46a   : > { %v2798_v47 = vpop.trf.xlu0  ;;  %v2951_v54 = vpop.trf.xlu1 }
 0x46b   : > { %4669 = vmatmul.mubr.msk.f32.vlgmr.msra.gmra.mrb[32].mxu1 %vm567_vm2, %v2798_v47  ;;  %4676 = vmatmul.mubr.msk.f32.vlgmr.msra.gmra.mrb[34].mxu0 %vm567_vm2, %v2951_v54 }
 0x46c   : > { %4724 = vmatpush3.bf16.msra.mxu1 %v7245_v41  ;;  %4682 = vmatprep.mubr.msk.f32.mxu1 %vm5212_vm7, %v5213_v49 }
 0x472   : > { %v3104_v42 = vpop.trf.xlu0  ;;  %v1841_v46 = vpop.trf.xlu1 }
 0x473   : > { %4683 = vmatmul.mubr.msk.f32.vlgmr.msra.gmra.mrb[34].mxu1 %vm567_vm2, %v3104_v42  ;;  %1859 = vperm.xlu0 %4793, %v1841_v46  }
 0x476   : > { %v1994_v17 = vpop.trf.xlu1 }
 0x477   : > { %2012 = vperm.xlu1 %4794, %v1994_v17  }
 0x47a   : > { %v2300_v10 = vpop.trf.xlu0  ;;  %v2147_v43 = vpop.trf.xlu1 }
 0x47b   : > { %2165 = vperm.xlu0 %4793, %v2147_v43  }
 0x47e   : > { %v2759_v39 = vpop.trf.xlu0  ;;  %v2912_v48 = vpop.trf.xlu1 }
 0x47f   : > { %2318 = vperm.xlu0 %4793, %v2300_v10  }
 0x482   : > { %v2453_v63 = vpop.trf.xlu0  ;;  %v3065_v49 = vpop.trf.xlu1 }
 0x483   : > { %2471 = vperm.xlu1 %4794, %v2453_v63  }
 0x486   : > { %v2606_v62 = vpop.trf.xlu0  ;;  %v3218_v23 = vpop.trf.xlu1 }
 0x487   : > { %2777 = vperm.xlu1 %4794, %v2759_v39   ;;  %2624 = vperm.xlu0 %4793, %v2606_v62  }
 0x48b   : > { %2930 = vperm.xlu1 %4794, %v2912_v48  }
 0x48f   : > { %3083 = vperm.xlu1 %4794, %v3065_v49  }
 0x493   : > { %3236 = vperm.xlu1 %4794, %v3218_v23  }
 0x4ca   : > { %v1554_v20 = vpop.permute.xlu0 %1553 }
 0x4cb   : > { %v1556_v36 = vmul.f32 %v1554_v20, %v6275_v24 }
 0x4d6   : > { %v1707_v3 = vpop.permute.xlu1 %1706 }
 0x4d7   : > { %v1709_v27 = vmul.f32 %v1707_v3, %v6275_v24 }
 0x4f2   : > { %v1860_v35 = vpop.permute.xlu0 %1859 }
 0x4f3   : > { %v1862_v61 = vmul.f32 %v1860_v35, %v6275_v24 }
 0x4f6   : > { %v2013_v58 = vpop.permute.xlu1 %2012 }
 0x4f7   : > { %v2015_v31 = vmul.f32 %v2013_v58, %v6275_v24 }
 0x4fa   : > { %v2166_v44 = vpop.permute.xlu0 %2165 }
 0x4fb   : > { %v2168_v28 = vmul.f32 %v2166_v44, %v6275_v24 }
 0x4fe   : > { %v2319_v25 = vpop.permute.xlu0 %2318 }
 0x4ff   : > { %v2321_v5 = vmul.f32 %v2319_v25, %v6275_v24 }
 0x502   : > { %v2472_v18 = vpop.permute.xlu1 %2471 }
 0x503   : > { %v2474_v47 = vmul.f32 %v2472_v18, %v6275_v24 }
 0x506   : > { %v2778_v42 = vpop.permute.xlu1 %2777  ;;  %v2625_v62 = vpop.permute.xlu0 %2624 }
 0x507   : > { %v2627_v20 = vmul.f32 %v2625_v62, %v6275_v24 }
 0x50e   : > { %v1506_v37 = vpop.f32.mrb[24].mxu0 }
 0x50f   : > { %v6278_v2 = vsub.f32 %v1506_v37, %v1556_v36  ;;  %v4607_v38 = vpop.f32.mrb[25].mxu0 }
 0x511   : > { %v3436_v1 = vmul.f32 %v6278_v2, %v6278_v2 }
 0x513   : > { %v3437_v33 = vsel %vm567_vm2, %v3436_v1, 0.0  ;;  %v2931_v1 = vpop.permute.xlu1 %2930 }
 0x514   : > { %3438 = vadd.xlane.f32.xlu1 %v3437_v33 }
 0x516   : > { %v1659_v14 = vpop.f32.mrb[24].mxu1 }
 0x517   : > { %v6284_v12 = vsub.f32 %v1659_v14, %v1709_v27  ;;  %v4614_v50 = vpop.f32.mrb[25].mxu1  ;;  %v3084_v58 = vpop.permute.xlu1 %3083 }
 0x519   : > { %v3474_v32 = vmul.f32 %v6284_v12, %v6284_v12  ;;  %v6291_v26 = vadd.f32 %v6284_v12, %v6278_v2 }
 0x51b   : > { %v1812_v56 = vpop.f32.mrb[26].mxu0  ;;  %v3475_v52 = vsel %vm567_vm2, %v3474_v32, 0.0  ;;  %v3284_v19 = vmul.f32 %v6291_v26, %v6291_v26 }
 0x51c   : > { %v6296_v4 = vsub.f32 %v1812_v56, %v1862_v61  ;;  %3476 = vadd.xlane.f32.xlu0 %v3475_v52  ;;  %v4621_v9 = vpop.f32.mrb[27].mxu0 }
 0x51d   : > { %v3285_v6 = vsel %vm567_vm2, %v3284_v19, 0.0 }
 0x51e   : > { %v3512_v55 = vmul.f32 %v6296_v4, %v6296_v4  ;;  %v6302_v0 = vadd.f32 %v6296_v4, %v6278_v2  ;;  %v3242_v59 = vadd.f32 %v6291_v26, %v6296_v4 }
 0x520   : > { %3286 = vadd.xlane.f32.xlu0 %v3285_v6  ;;  %v3513_v22 = vsel %vm567_vm2, %v3512_v55, 0.0  ;;  %v3360_v51 = vmul.f32 %v6302_v0, %v6302_v0  ;;  %v2780_v55 = vmul.f32 %v2778_v42, %v6275_v24  ;;  %v2933_v6 = vmul.f32 %v2931_v1, %v6275_v24 }
 0x521   : > { %3514 = vadd.xlane.f32.xlu1 %v3513_v22 }
 0x522   : > { %v1965_v45 = vpop.f32.mrb[26].mxu1  ;;  %v3361_v40 = vsel %vm567_vm2, %v3360_v51, 0.0 }
 0x523   : > { %v6310_v15 = vsub.f32 %v1965_v45, %v2015_v31  ;;  %v4628_v11 = vpop.f32.mrb[27].mxu1 }
 0x524   : > { %3362 = vadd.xlane.f32.xlu0 %v3361_v40  ;;  %v3086_v40 = vmul.f32 %v3084_v58, %v6275_v24 }
 0x525   : > { %v3550_v34 = vmul.f32 %v6310_v15, %v6310_v15  ;;  %v6317_v13 = vadd.f32 %v3242_v59, %v6310_v15  ;;  %v6324_v8 = vadd.f32 %v6310_v15, %v6296_v4  ;;  %v6332_v7 = vadd.f32 %v6310_v15, %v6284_v12 }
 0x526   : > { %v2118_v53 = vpop.f32.mrb[28].mxu0 }
 0x527   : > { %v4635_v16 = vpop.f32.mrb[29].mxu0  ;;  %v3551_v30 = vsel %vm567_vm2, %v3550_v34, 0.0  ;;  %v3247_v57 = vmul.f32 %v6317_v13, %v6317_v13  ;;  %v3322_v60 = vmul.f32 %v6324_v8, %v6324_v8  ;;  %v6338_v46 = vsub.f32 %v2118_v53, %v2168_v28 }
 0x528   : > { %3552 = vadd.xlane.f32.xlu0 %v3551_v30  ;;  %v3398_v63 = vmul.f32 %v6332_v7, %v6332_v7 }
 0x529   : > { %v3248_v29 = vsel %vm567_vm2, %v3247_v57, 0.0  ;;  %v3323_v39 = vsel %vm567_vm2, %v3322_v60, 0.0  ;;  %v3784_v37 = vmul.f32 %v6338_v46, %v6338_v46 }
 0x52a   : > { %v3399_v36 = vsel %vm567_vm2, %v3398_v63, 0.0 }
 0x52b   : > { %v3785_v50 = vsel %vm567_vm2, %v3784_v37, 0.0 }
 0x52c   : > { %3249 = vadd.xlane.f32.xlu0 %v3248_v29  ;;  %v3237_v29 = vpop.permute.xlu1 %3236 }
 0x52e   : > { %v2271_v21 = vpop.f32.mrb[28].mxu1  ;;  %v2424_v17 = vpop.f32.mrb[30].mxu0 }
 0x52f   : > { %v6336_v41 = vsub.f32 %v2271_v21, %v2321_v5  ;;  %v4642_v54 = vpop.f32.mrb[29].mxu1  ;;  %v6342_v43 = vsub.f32 %v2424_v17, %v2474_v47  ;;  %v4649_v48 = vpop.f32.mrb[31].mxu0  ;;  %v3239_v47 = vmul.f32 %v3237_v29, %v6275_v24 }
 0x530   : > { %3324 = vadd.xlane.f32.xlu0 %v3323_v39 }
 0x531   : > { %v3822_v10 = vmul.f32 %v6336_v41, %v6336_v41  ;;  %v6349_v49 = vadd.f32 %v6336_v41, %v6338_v46  ;;  %v3860_v31 = vmul.f32 %v6342_v43, %v6342_v43  ;;  %v6383_v45 = vadd.f32 %v6342_v43, %v6338_v46 }
 0x533   : > { %v3823_v23 = vsel %vm567_vm2, %v3822_v10, 0.0  ;;  %v3589_v38 = vadd.f32 %v6349_v49, %v6342_v43  ;;  %v3632_v32 = vmul.f32 %v6349_v49, %v6349_v49  ;;  %v3861_v18 = vsel %vm567_vm2, %v3860_v31, 0.0 }
 0x534   : > { %3824 = vadd.xlane.f32.xlu1 %v3823_v23  ;;  %3400 = vadd.xlane.f32.xlu0 %v3399_v36  ;;  %v3708_v5 = vmul.f32 %v6383_v45, %v6383_v45 }
 0x535   : > { %v3633_v51 = vsel %vm567_vm2, %v3632_v32, 0.0 }
 0x536   : > { %v2577_v3 = vpop.f32.mrb[30].mxu1  ;;  %v2730_v14 = vpop.f32.mrb[32].mxu0  ;;  %v3709_v54 = vsel %vm567_vm2, %v3708_v5, 0.0 }
 0x537   : > { %v6358_v33 = vsub.f32 %v2577_v3, %v2627_v20  ;;  %v4656_v27 = vpop.f32.mrb[31].mxu1  ;;  %v4663_v56 = vpop.f32.mrb[33].mxu0  ;;  %v6386_v59 = vsub.f32 %v2730_v14, %v2780_v55 }
 0x538   : > { %3786 = vadd.xlane.f32.xlu0 %v3785_v50 }
 0x539   : > { %v3898_v35 = vmul.f32 %v6358_v33, %v6358_v33  ;;  %v6364_v61 = vadd.f32 %v3589_v38, %v6358_v33  ;;  %v6373_v9 = vadd.f32 %v6358_v33, %v6342_v43  ;;  %v6394_v16 = vadd.f32 %v6358_v33, %v6336_v41 }
 0x53a   : > { %v4132_v62 = vmul.f32 %v6386_v59, %v6386_v59 }
 0x53b   : > { %v3899_v52 = vsel %vm567_vm2, %v3898_v35, 0.0  ;;  %v3594_v19 = vmul.f32 %v6364_v61, %v6364_v61  ;;  %v3670_v53 = vmul.f32 %v6373_v9, %v6373_v9  ;;  %v3746_v28 = vmul.f32 %v6394_v16, %v6394_v16 }
 0x53c   : > { %3900 = vadd.xlane.f32.xlu1 %v3899_v52  ;;  %3634 = vadd.xlane.f32.xlu0 %v3633_v51  ;;  %v4133_v36 = vsel %vm567_vm2, %v4132_v62, 0.0 }
 0x53d   : > { %v3595_v22 = vsel %vm567_vm2, %v3594_v19, 0.0  ;;  %v3671_v60 = vsel %vm567_vm2, %v3670_v53, 0.0  ;;  %v3747_v63 = vsel %vm567_vm2, %v3746_v28, 0.0 }
 0x53e   : > { %v2883_v11 = vpop.f32.mrb[32].mxu1  ;;  %v3036_v30 = vpop.f32.mrb[34].mxu0 }
 0x53f   : > { %v6388_v44 = vsub.f32 %v2883_v11, %v2933_v6  ;;  %v4670_v34 = vpop.f32.mrb[33].mxu1  ;;  %v6396_v57 = vsub.f32 %v3036_v30, %v3086_v40  ;;  %v4677_v25 = vpop.f32.mrb[35].mxu0 }
 0x540   : > { %3596 = vadd.xlane.f32.xlu1 %v3595_v22  ;;  %3862 = vadd.xlane.f32.xlu0 %v3861_v18 }
 0x541   : > { %v6406_v21 = vadd.f32 %v6388_v44, %v6386_v59  ;;  %v4170_v42 = vmul.f32 %v6388_v44, %v6388_v44  ;;  %v6434_v1 = vadd.f32 %v6396_v57, %v6386_v59  ;;  %v4208_v19 = vmul.f32 %v6396_v57, %v6396_v57 }
 0x543   : > { %v3937_v17 = vadd.f32 %v6406_v21, %v6396_v57  ;;  %v4171_v24 = vsel %vm567_vm2, %v4170_v42, 0.0  ;;  %v3980_v37 = vmul.f32 %v6406_v21, %v6406_v21  ;;  %v4056_v50 = vmul.f32 %v6434_v1, %v6434_v1 }
 0x544   : > { %3672 = vadd.xlane.f32.xlu1 %v3671_v60  ;;  %3710 = vadd.xlane.f32.xlu0 %v3709_v54  ;;  %v4209_v58 = vsel %vm567_vm2, %v4208_v19, 0.0 }
 0x545   : > { %v3981_v35 = vsel %vm567_vm2, %v3980_v37, 0.0  ;;  %v4057_v52 = vsel %vm567_vm2, %v4056_v50, 0.0 }
 0x546   : > { %v3189_v10 = vpop.f32.mrb[34].mxu1 }
 0x547   : > { %v6414_v39 = vsub.f32 %v3189_v10, %v3239_v47  ;;  %v4684_v48 = vpop.f32.mrb[35].mxu1 }
 0x548   : > { %3748 = vadd.xlane.f32.xlu1 %v3747_v63  ;;  %4172 = vadd.xlane.f32.xlu0 %v4171_v24 }
 0x549   : > { %v6421_v23 = vadd.f32 %v3937_v17, %v6414_v39  ;;  %v6425_v20 = vadd.f32 %v6414_v39, %v6396_v57  ;;  %v6441_v14 = vadd.f32 %v6414_v39, %v6388_v44  ;;  %v4246_v6 = vmul.f32 %v6414_v39, %v6414_v39 }
 0x54b   : > { %v3942_v38 = vmul.f32 %v6421_v23, %v6421_v23  ;;  %v4018_v27 = vmul.f32 %v6425_v20, %v6425_v20  ;;  %v4094_v56 = vmul.f32 %v6441_v14, %v6441_v14  ;;  %v4247_v22 = vsel %vm567_vm2, %v4246_v6, 0.0 }
 0x54c   : > { %4134 = vadd.xlane.f32.xlu1 %v4133_v36 }
 0x54d   : > { %v3943_v3 = vsel %vm567_vm2, %v3942_v38, 0.0  ;;  %v4019_v32 = vsel %vm567_vm2, %v4018_v27, 0.0  ;;  %v4095_v55 = vsel %vm567_vm2, %v4094_v56, 0.0 }
 0x54e   : > { %3944 = vadd.xlane.f32.xlu0 %v3943_v3 }
 0x550   : > { %3982 = vadd.xlane.f32.xlu1 %v3981_v35 }
 0x552   : > { %4020 = vadd.xlane.f32.xlu0 %v4019_v32 }
 0x554   : > { %4058 = vadd.xlane.f32.xlu1 %v4057_v52 }
 0x556   : > { %4096 = vadd.xlane.f32.xlu0 %v4095_v55 }
 0x558   : > { %4210 = vadd.xlane.f32.xlu1 %v4209_v58 }
 0x55a   : > { %4248 = vadd.xlane.f32.xlu0 %v4247_v22 }
 0x5a1   : > { %v3439_v51 = vpop.xlane.xlu1 %3438 }
 0x5a2   : > { %4987 = vrsqrt.f32 %v3439_v51  ;;  %vm3442_vm8 = vcmp.eq.f32.partialorder %v3439_v51, inf  ;;  %v3445_v34 = vand.u32 2147483648, %v3439_v51  ;;  %vm3444_vm9 = vcmp.eq.f32.partialorder %v3439_v51, 0.0 }
 0x5a9   : > { %v3477_v31 = vpop.xlane.xlu0 %3476 }
 0x5aa   : > { %4989 = vrsqrt.f32 %v3477_v31  ;;  %vm3480_vm10 = vcmp.eq.f32.partialorder %v3477_v31, inf  ;;  %v3483_v54 = vand.u32 2147483648, %v3477_v31  ;;  %vm3482_vm11 = vcmp.eq.f32.partialorder %v3477_v31, 0.0 }
 0x5ac   : > { %v4988_v40 = vpop.eup %4987 }
 0x5ad   : > { %v3441_v11 = vmul.f32 %v4988_v40, %v3439_v51  ;;  %v3287_v53 = vpop.xlane.xlu0 %3286 }
 0x5ae   : > { %v3515_v30 = vpop.xlane.xlu1 %3514  ;;  %4991 = vrsqrt.f32 %v3287_v53  ;;  %vm3290_vm12 = vcmp.eq.f32.partialorder %v3287_v53, inf  ;;  %vm3292_vm13 = vcmp.eq.f32.partialorder %v3287_v53, 0.0  ;;  %v3293_v37 = vand.u32 2147483648, %v3287_v53 }
 0x5af   : > { %v3443_v18 = vsel %vm3442_vm8, %v3439_v51, %v3441_v11  ;;  %4993 = vrsqrt.f32 %v3515_v30  ;;  %vm3518_vm14 = vcmp.eq.f32.partialorder %v3515_v30, inf  ;;  %v3521_v38 = vand.u32 2147483648, %v3515_v30 }
 0x5b0   : > { %v3446_v25 = vsel %vm3444_vm9, %v3445_v34, %v3443_v18  ;;  %vm3520_vm15 = vcmp.eq.f32.partialorder %v3515_v30, 0.0 }
 0x5b1   : > { %v3447_v5 = vmax.f32 %v3446_v25, 1e-12  ;;  %v3363_v29 = vpop.xlane.xlu0 %3362 }
 0x5b2   : > { %4995 = vrsqrt.f32 %v3363_v29  ;;  %vm3366_vm0 = vcmp.eq.f32.partialorder %v3363_v29, inf  ;;  %v3369_v6 = vand.u32 2147483648, %v3363_v29  ;;  %vm3368_vm1 = vcmp.eq.f32.partialorder %v3363_v29, 0.0 }
 0x5b3   : > { %4997 = vrcp.f32 %v3447_v5 }
 0x5b4   : > { %v4990_v60 = vpop.eup %4989 }
 0x5b5   : > { %v3479_v28 = vmul.f32 %v4990_v60, %v3477_v31  ;;  %v6457_v47 = vpop.xlane.xlu0 %3552 }
 0x5b6   : > { %4999 = vrsqrt.f32 %v6457_v47  ;;  %vm3556_vm3 = vcmp.eq.f32.partialorder %v6457_v47, inf  ;;  %vm3558_vm4 = vcmp.eq.f32.partialorder %v6457_v47, 0.0  ;;  %v3559_v5 = vand.u32 2147483648, %v6457_v47 }
 0x5b7   : > { %v3481_v42 = vsel %vm3480_vm10, %v3477_v31, %v3479_v28 }
 0x5b8   : > { %v4992_v17 = vpop.eup %4991  ;;  %v3484_v10 = vsel %vm3482_vm11, %v3483_v54, %v3481_v42 }
 0x5b9   : > { %v4994_v63 = vpop.eup %4993  ;;  %v3485_v48 = vmax.f32 %v3484_v10, 1e-12  ;;  %v3289_v62 = vmul.f32 %v4992_v17, %v3287_v53  ;;  %v3250_v24 = vpop.xlane.xlu0 %3249 }
 0x5ba   : > { %v3517_v36 = vmul.f32 %v4994_v63, %v3515_v30  ;;  %5001 = vrsqrt.f32 %v3250_v24  ;;  %vm3253_vm5 = vcmp.eq.f32.partialorder %v3250_v24, inf  ;;  %vm3255_vm6 = vcmp.eq.f32.partialorder %v3250_v24, 0.0 }
 0x5bb   : > { %5003 = vrcp.f32 %v3485_v48  ;;  %v3291_v3 = vsel %vm3290_vm12, %v3287_v53, %v3289_v62  ;;  %v3256_v28 = vand.u32 2147483648, %v3250_v24 }
 0x5bc   : > { %v4996_v27 = vpop.eup %4995  ;;  %v3519_v35 = vsel %vm3518_vm14, %v3515_v30, %v3517_v36  ;;  %v3294_v50 = vsel %vm3292_vm13, %v3293_v37, %v3291_v3 }
 0x5bd   : > { %v4998_v32 = vpop.eup %4997  ;;  %v3522_v56 = vsel %vm3520_vm15, %v3521_v38, %v3519_v35  ;;  %v3295_v52 = vmax.f32 %v3294_v50, 1e-12  ;;  %v3365_v19 = vmul.f32 %v4996_v27, %v3363_v29  ;;  %v6460_v55 = vpop.xlane.xlu0 %3324 }
 0x5be   : > { %5005 = vrsqrt.f32 %v6460_v55  ;;  %v6466_v51 = vmul.f32 %v4998_v32, %v6278_v2  ;;  %v3523_v40 = vmax.f32 %v3522_v56, 1e-12  ;;  %vm3328_vm7 = vcmp.eq.f32.partialorder %v6460_v55, inf }
 0x5bf   : > { %5007 = vrcp.f32 %v3295_v52  ;;  %v3367_v58 = vsel %vm3366_vm0, %v3363_v29, %v3365_v19  ;;  %vm3330_vm8 = vcmp.eq.f32.partialorder %v6460_v55, 0.0 }
 0x5c0   : > { %v5000_v31 = vpop.eup %4999  ;;  %v3370_v11 = vsel %vm3368_vm1, %v3369_v6, %v3367_v58  ;;  %v3450_v2 = vmul.f32 %v6466_v51, %v6466_v51 }
 0x5c1   : > { %v6463_v22 = vpop.xlane.xlu1 %3824  ;;  %v3371_v53 = vmax.f32 %v3370_v11, 1e-12  ;;  %v3555_v34 = vmul.f32 %v5000_v31, %v6457_v47  ;;  %v6470_v30 = vpop.xlane.xlu0 %3400 }
 0x5c2   : > { %5009 = vrsqrt.f32 %v6463_v22  ;;  %v3451_v54 = vsel %vm567_vm2, %v3450_v2, 0.0  ;;  %vm3828_vm9 = vcmp.eq.f32.partialorder %v6463_v22, inf  ;;  %vm3830_vm10 = vcmp.eq.f32.partialorder %v6463_v22, 0.0 }
 0x5c3   : > { %5011 = vrsqrt.f32 %v6470_v30  ;;  %v3557_v18 = vsel %vm3556_vm3, %v6457_v47, %v3555_v34  ;;  %3452 = vadd.xlane.f32.xlu0 %v3451_v54  ;;  %v3331_v47 = vand.u32 2147483648, %v6460_v55  ;;  %v3831_v37 = vand.u32 2147483648, %v6463_v22 }
 0x5c4   : > { %v5002_v25 = vpop.eup %5001  ;;  %5013 = vrcp.f32 %v3523_v40  ;;  %v3560_v17 = vsel %vm3558_vm4, %v3559_v5, %v3557_v18  ;;  %vm3404_vm11 = vcmp.eq.f32.partialorder %v6470_v30, inf  ;;  %vm3406_vm12 = vcmp.eq.f32.partialorder %v6470_v30, 0.0 }
 0x5c5   : > { %v5004_v29 = vpop.eup %5003  ;;  %5015 = vrcp.f32 %v3371_v53  ;;  %v3252_v60 = vmul.f32 %v5002_v25, %v3250_v24  ;;  %v6480_v42 = vpop.xlane.xlu0 %3786  ;;  %v3561_v3 = vmax.f32 %v3560_v17, 1e-12 }
 0x5c6   : > { %5017 = vrsqrt.f32 %v6480_v42  ;;  %v6490_v48 = vmul.f32 %v5004_v29, %v6284_v12  ;;  %vm3790_vm13 = vcmp.eq.f32.partialorder %v6480_v42, inf  ;;  %vm3792_vm14 = vcmp.eq.f32.partialorder %v6480_v42, 0.0 }
 0x5c7   : > { %v3254_v10 = vsel %vm3253_vm5, %v3250_v24, %v3252_v60  ;;  %v3407_v24 = vand.u32 2147483648, %v6470_v30  ;;  %v3793_v11 = vand.u32 2147483648, %v6480_v42 }
 0x5c8   : > { %v5006_v62 = vpop.eup %5005  ;;  %v3257_v36 = vsel %vm3255_vm6, %v3256_v28, %v3254_v10  ;;  %v3488_v35 = vmul.f32 %v6490_v48, %v6490_v48 }
 0x5c9   : > { %v6487_v63 = vpop.xlane.xlu1 %3900  ;;  %v5008_v38 = vpop.eup %5007  ;;  %v3327_v27 = vmul.f32 %v5006_v62, %v6460_v55  ;;  %v3258_v32 = vmax.f32 %v3257_v36, 1e-12 }
 0x5ca   : > { %5019 = vrsqrt.f32 %v6487_v63  ;;  %v6500_v12 = vpop.xlane.xlu0 %3634  ;;  %v3489_v19 = vsel %vm567_vm2, %v3488_v35, 0.0  ;;  %v6513_v6 = vmul.f32 %v5008_v38, %v6291_v26  ;;  %vm3904_vm15 = vcmp.eq.f32.partialorder %v6487_v63, inf }
 0x5cb   : > { %5021 = vrsqrt.f32 %v6500_v12  ;;  %v3329_v56 = vsel %vm3328_vm7, %v6460_v55, %v3327_v27  ;;  %3490 = vadd.xlane.f32.xlu1 %v3489_v19  ;;  %vm3906_vm0 = vcmp.eq.f32.partialorder %v6487_v63, 0.0  ;;  %v3907_v29 = vand.u32 2147483648, %v6487_v63 }
 0x5cc   : > { %v5010_v50 = vpop.eup %5009  ;;  %v3332_v40 = vsel %vm3330_vm8, %v3331_v47, %v3329_v56  ;;  %v3298_v2 = vmul.f32 %v6513_v6, %v6513_v6  ;;  %vm3638_vm1 = vcmp.eq.f32.partialorder %v6500_v12, inf  ;;  %vm3640_vm3 = vcmp.eq.f32.partialorder %v6500_v12, 0.0 }
 0x5cd   : > { %v6509_v52 = vpop.xlane.xlu1 %3596  ;;  %v5012_v58 = vpop.eup %5011  ;;  %v3827_v31 = vmul.f32 %v5010_v50, %v6463_v22  ;;  %v3333_v18 = vmax.f32 %v3332_v40, 1e-12  ;;  %v3641_v17 = vand.u32 2147483648, %v6500_v12 }
 0x5ce   : > { %5023 = vrsqrt.f32 %v6509_v52  ;;  %v3403_v53 = vmul.f32 %v5012_v58, %v6470_v30  ;;  %v6524_v26 = vpop.xlane.xlu0 %3862  ;;  %v5014_v34 = vpop.eup %5013  ;;  %vm3600_vm4 = vcmp.eq.f32.partialorder %v6509_v52, inf  ;;  %vm3602_vm5 = vcmp.eq.f32.partialorder %v6509_v52, 0.0 }
 0x5cf   : > { %5025 = vrcp.f32 %v3561_v3  ;;  %v3829_v55 = vsel %vm3828_vm9, %v6463_v22, %v3827_v31  ;;  %v5016_v25 = vpop.eup %5015  ;;  %v3603_v47 = vand.u32 2147483648, %v6509_v52  ;;  %v6554_v38 = vmul.f32 %v5014_v34, %v6296_v4 }
 0x5d0   : > { %5027 = vrsqrt.f32 %v6524_v26  ;;  %v3405_v5 = vsel %vm3404_vm11, %v6470_v30, %v3403_v53  ;;  %v5018_v28 = vpop.eup %5017  ;;  %v3832_v54 = vsel %vm3830_vm10, %v3831_v37, %v3829_v55  ;;  %v3299_v37 = vsel %vm567_vm2, %v3298_v2, 0.0 }
 0x5d1   : > { %5029 = vrcp.f32 %v3258_v32  ;;  %v6537_v60 = vpop.xlane.xlu1 %3672  ;;  %v3789_v10 = vmul.f32 %v5018_v28, %v6480_v42  ;;  %v3408_v22 = vsel %vm3406_vm12, %v3407_v24, %v3405_v5  ;;  %v3833_v3 = vmax.f32 %v3832_v54, 1e-12  ;;  %3300 = vadd.xlane.f32.xlu0 %v3299_v37 }
 0x5d2   : > { %5031 = vrsqrt.f32 %v6537_v60  ;;  %v6548_v62 = vpop.xlane.xlu0 %3710  ;;  %v6563_v32 = vmul.f32 %v5016_v25, %v6302_v0  ;;  %vm3676_vm6 = vcmp.eq.f32.partialorder %v6537_v60, inf  ;;  %vm3866_vm7 = vcmp.eq.f32.partialorder %v6524_v26, inf }
 0x5d3   : > { %5033 = vrcp.f32 %v3333_v18  ;;  %v3791_v35 = vsel %vm3790_vm13, %v6480_v42, %v3789_v10  ;;  %vm3868_vm8 = vcmp.eq.f32.partialorder %v6524_v26, 0.0  ;;  %v3409_v4 = vmax.f32 %v3408_v22, 1e-12 }
 0x5d4   : > { %v5020_v36 = vpop.eup %5019  ;;  %v3794_v56 = vsel %vm3792_vm14, %v3793_v11, %v3791_v35  ;;  %v3526_v40 = vmul.f32 %v6554_v38, %v6554_v38  ;;  %v3374_v53 = vmul.f32 %v6563_v32, %v6563_v32  ;;  %vm3678_vm9 = vcmp.eq.f32.partialorder %v6537_v60, 0.0 }
 0x5d5   : > { %v3903_v27 = vmul.f32 %v5020_v36, %v6487_v63  ;;  %v6560_v50 = vpop.xlane.xlu1 %3748  ;;  %v5022_v30 = vpop.eup %5021  ;;  %v3795_v18 = vmax.f32 %v3794_v56, 1e-12  ;;  %v3869_v22 = vand.u32 2147483648, %v6524_v26  ;;  %vm3714_vm12 = vcmp.eq.f32.partialorder %v6548_v62, inf }
 0x5d6   : > { %5035 = vrsqrt.f32 %v6560_v50  ;;  %v3637_v0 = vmul.f32 %v5022_v30, %v6500_v12  ;;  %v6575_v19 = vpop.xlane.xlu0 %4172  ;;  %v3527_v25 = vsel %vm567_vm2, %v3526_v40, 0.0  ;;  %v3375_v5 = vsel %vm567_vm2, %v3374_v53, 0.0 }
 0x5d7   : > { %v3905_v24 = vsel %vm3904_vm15, %v6487_v63, %v3903_v27  ;;  %5037 = vrsqrt.f32 %v6548_v62  ;;  %3528 = vadd.xlane.f32.xlu0 %v3527_v25  ;;  %3376 = vadd.xlane.f32.xlu1 %v3375_v5  ;;  %vm3752_vm10 = vcmp.eq.f32.partialorder %v6560_v50, inf  ;;  %vm3754_vm11 = vcmp.eq.f32.partialorder %v6560_v50, 0.0 }
 0x5d8   : > { %v5024_v58 = vpop.eup %5023  ;;  %v3908_v31 = vsel %vm3906_vm0, %v3907_v29, %v3905_v24  ;;  %5039 = vrcp.f32 %v3833_v3  ;;  %v3639_v11 = vsel %vm3638_vm1, %v6500_v12, %v3637_v0  ;;  %vm3716_vm13 = vcmp.eq.f32.partialorder %v6548_v62, 0.0 }
 0x5d9   : > { %v5026_v34 = vpop.eup %5025  ;;  %v3599_v42 = vmul.f32 %v5024_v58, %v6509_v52  ;;  %v6589_v63 = vpop.xlane.xlu1 %4134  ;;  %v3642_v2 = vsel %vm3640_vm3, %v3641_v17, %v3639_v11  ;;  %5041 = vrcp.f32 %v3409_v4  ;;  %v3909_v28 = vmax.f32 %v3908_v31, 1e-12 }
 0x5da   : > { %v5028_v55 = vpop.eup %5027  ;;  %v3679_v17 = vand.u32 2147483648, %v6537_v60  ;;  %5043 = vrsqrt.f32 %v6589_v63  ;;  %v3643_v37 = vmax.f32 %v3642_v2, 1e-12  ;;  %v3717_v31 = vand.u32 2147483648, %v6548_v62 }
 0x5db   : > { %v6595_v29 = vpop.eup %5029  ;;  %v3601_v54 = vsel %vm3600_vm4, %v6509_v52, %v3599_v42  ;;  %v3865_v10 = vmul.f32 %v5028_v55, %v6524_v26  ;;  %v6613_v30 = vpop.xlane.xlu0 %3944  ;;  %5045 = vrcp.f32 %v3795_v18  ;;  %vm4138_vm14 = vcmp.eq.f32.partialorder %v6589_v63, inf }
 0x5dc   : > { %v5032_v36 = vpop.eup %5031  ;;  %v3604_v12 = vsel %vm3602_vm5, %v3603_v47, %v3601_v54  ;;  %v3755_v47 = vand.u32 2147483648, %v6560_v50  ;;  %5047 = vrcp.f32 %v3909_v28  ;;  %vm4140_vm15 = vcmp.eq.f32.partialorder %v6589_v63, 0.0 }
 0x5dd   : > { %v3675_v3 = vmul.f32 %v5032_v36, %v6537_v60  ;;  %v3867_v27 = vsel %vm3866_vm7, %v6524_v26, %v3865_v10  ;;  %v6611_v35 = vpop.xlane.xlu1 %3982  ;;  %v6615_v52 = vpop.eup %5033  ;;  %v3605_v4 = vmax.f32 %v3604_v12, 1e-12  ;;  %5049 = vrsqrt.f32 %v6575_v19 }
 0x5de   : > { %v3870_v56 = vsel %vm3868_vm8, %v3869_v22, %v3867_v27  ;;  %5051 = vrcp.f32 %v3643_v37  ;;  %v6638_v11 = vmul.f32 %v5026_v34, %v6310_v15  ;;  %vm4176_vm0 = vcmp.eq.f32.partialorder %v6575_v19, inf }
 0x5df   : > { %v3677_v24 = vsel %vm3676_vm6, %v6537_v60, %v3675_v3  ;;  %v3871_v42 = vmax.f32 %v3870_v56, 1e-12  ;;  %v4141_v60 = vand.u32 2147483648, %v6589_v63  ;;  %5053 = vrsqrt.f32 %v6611_v35  ;;  %v6644_v5 = vpop.xlane.xlu0 %4020 }
 0x5e0   : > { %v5036_v0 = vpop.eup %5035  ;;  %v3680_v58 = vsel %vm3678_vm9, %v3679_v17, %v3677_v24  ;;  %5055 = vrcp.f32 %v3605_v4  ;;  %v3564_v15 = vmul.f32 %v6638_v11, %v6638_v11  ;;  %vm4178_vm1 = vcmp.eq.f32.partialorder %v6575_v19, 0.0 }
 0x5e1   : > { %v3751_v40 = vmul.f32 %v5036_v0, %v6560_v50  ;;  %v6633_v53 = vpop.xlane.xlu1 %4058  ;;  %v5038_v26 = vpop.eup %5037  ;;  %v3681_v18 = vmax.f32 %v3680_v58, 1e-12  ;;  %5057 = vrsqrt.f32 %v6613_v30  ;;  %v4179_v10 = vand.u32 2147483648, %v6575_v19 }
 0x5e2   : > { %v5040_v55 = vpop.eup %5039  ;;  %v3713_v25 = vmul.f32 %v5038_v26, %v6548_v62  ;;  %5059 = vrsqrt.f32 %v6633_v53  ;;  %vm3986_vm3 = vcmp.eq.f32.partialorder %v6611_v35, inf  ;;  %v3565_v12 = vsel %vm567_vm2, %v3564_v15, 0.0 }
 0x5e3   : > { %v3753_v2 = vsel %vm3752_vm10, %v6560_v50, %v3751_v40  ;;  %v6652_v34 = vpop.eup %5041  ;;  %5061 = vrcp.f32 %v3871_v42  ;;  %vm3988_vm4 = vcmp.eq.f32.partialorder %v6611_v35, 0.0  ;;  %v3989_v37 = vand.u32 2147483648, %v6611_v35  ;;  %3566 = vadd.xlane.f32.xlu1 %v3565_v12  ;;  %v6686_v58 = vpop.xlane.xlu0 %4096 }
 0x5e4   : > { %v3756_v28 = vsel %vm3754_vm11, %v3755_v47, %v3753_v2  ;;  %v3715_v54 = vsel %vm3714_vm12, %v6548_v62, %v3713_v25  ;;  %v5044_v50 = vpop.eup %5043  ;;  %5063 = vrcp.f32 %v3681_v18  ;;  %vm3948_vm5 = vcmp.eq.f32.partialorder %v6613_v30, inf }
 0x5e5   : > { %v3718_v36 = vsel %vm3716_vm13, %v3717_v31, %v3715_v54  ;;  %v3757_v17 = vmax.f32 %v3756_v28, 1e-12  ;;  %v4137_v22 = vmul.f32 %v5044_v50, %v6589_v63  ;;  %v6667_v3 = vpop.xlane.xlu1 %4210  ;;  %v6669_v27 = vpop.eup %5045  ;;  %v6674_v62 = vmul.f32 %v6595_v29, %v6317_v13 }
 0x5e6   : > { %v3719_v47 = vmax.f32 %v3718_v36, 1e-12  ;;  %v6677_v4 = vmul.f32 %v5040_v55, %v6336_v41  ;;  %5065 = vrsqrt.f32 %v6644_v5  ;;  %v5048_v24 = vpop.eup %5047  ;;  %vm3950_vm6 = vcmp.eq.f32.partialorder %v6613_v30, 0.0 }
 0x5e7   : > { %v4139_v56 = vsel %vm4138_vm14, %v6589_v63, %v4137_v22  ;;  %v3951_v0 = vand.u32 2147483648, %v6613_v30  ;;  %vm4062_vm7 = vcmp.eq.f32.partialorder %v6633_v53, inf  ;;  %v5050_v13 = vpop.eup %5049  ;;  %v3261_v29 = vmul.f32 %v6674_v62, %v6674_v62 }
 0x5e8   : > { %v4142_v41 = vsel %vm4140_vm15, %v4141_v60, %v4139_v56  ;;  %v3836_v31 = vmul.f32 %v6677_v4, %v6677_v4  ;;  %5067 = vrsqrt.f32 %v6667_v3  ;;  %v6695_v40 = vpop.eup %5051  ;;  %v4175_v26 = vmul.f32 %v5050_v13, %v6575_v19 }
 0x5e9   : > { %5069 = vrcp.f32 %v3757_v17  ;;  %vm4064_vm8 = vcmp.eq.f32.partialorder %v6633_v53, 0.0  ;;  %v4065_v42 = vand.u32 2147483648, %v6633_v53  ;;  %v5054_v55 = vpop.eup %5053  ;;  %v3262_v63 = vsel %vm567_vm2, %v3261_v29, 0.0 }
 0x5ea   : > { %5071 = vrcp.f32 %v3719_v47  ;;  %v3837_v60 = vsel %vm567_vm2, %v3836_v31, 0.0  ;;  %vm4024_vm9 = vcmp.eq.f32.partialorder %v6644_v5, inf  ;;  %v6705_v18 = vmul.f32 %v6615_v52, %v6324_v8  ;;  %v5056_v2 = vpop.eup %5055  ;;  %3263 = vadd.xlane.f32.xlu1 %v3262_v63 }
 0x5eb   : > { %v4143_v25 = vmax.f32 %v4142_v41, 1e-12  ;;  %v4177_v28 = vsel %vm4176_vm0, %v6575_v19, %v4175_v26  ;;  %v3985_v15 = vmul.f32 %v5054_v55, %v6611_v35  ;;  %3838 = vadd.xlane.f32.xlu0 %v3837_v60  ;;  %vm4026_vm10 = vcmp.eq.f32.partialorder %v6644_v5, 0.0  ;;  %v5058_v50 = vpop.eup %5057 }
 0x5ec   : > { %v4027_v54 = vand.u32 2147483648, %v6644_v5  ;;  %v4180_v36 = vsel %vm4178_vm1, %v4179_v10, %v4177_v28  ;;  %vm4214_vm11 = vcmp.eq.f32.partialorder %v6667_v3, inf  ;;  %v3336_v8 = vmul.f32 %v6705_v18, %v6705_v18  ;;  %v5060_v52 = vpop.eup %5059  ;;  %v6725_v10 = vpop.xlane.xlu0 %4248 }
 0x5ed   : > { %5073 = vrsqrt.f32 %v6686_v58  ;;  %v4181_v12 = vmax.f32 %v4180_v36, 1e-12  ;;  %v3987_v17 = vsel %vm3986_vm3, %v6611_v35, %v3985_v15  ;;  %v3947_v22 = vmul.f32 %v5058_v50, %v6613_v30  ;;  %v5062_v47 = vpop.eup %5061 }
 0x5ee   : > { %vm4216_vm12 = vcmp.eq.f32.partialorder %v6667_v3, 0.0  ;;  %v4217_v19 = vand.u32 2147483648, %v6667_v3  ;;  %v3990_v56 = vsel %vm3988_vm4, %v3989_v37, %v3987_v17  ;;  %v4061_v13 = vmul.f32 %v5060_v52, %v6633_v53  ;;  %v5064_v31 = vpop.eup %5063 }
 0x5ef   : > { %v3337_v41 = vsel %vm567_vm2, %v3336_v8, 0.0  ;;  %v6733_v29 = vmul.f32 %v6652_v34, %v6332_v7  ;;  %5075 = vrcp.f32 %v4143_v25  ;;  %v3991_v26 = vmax.f32 %v3990_v56, 1e-12 }
 0x5f0   : > { %v3949_v55 = vsel %vm3948_vm5, %v6613_v30, %v3947_v22  ;;  %3338 = vadd.xlane.f32.xlu1 %v3337_v41  ;;  %v6739_v63 = vmul.f32 %v5048_v24, %v6358_v33  ;;  %v5066_v35 = vpop.eup %5065  ;;  %v4063_v7 = vsel %vm4062_vm7, %v6633_v53, %v4061_v13  ;;  %5077 = vrsqrt.f32 %v6725_v10 }
 0x5f1   : > { %v3952_v37 = vsel %vm3950_vm6, %v3951_v0, %v3949_v55  ;;  %v3412_v34 = vmul.f32 %v6733_v29, %v6733_v29  ;;  %v4066_v25 = vsel %vm4064_vm8, %v4065_v42, %v4063_v7  ;;  %v4023_v33 = vmul.f32 %v5066_v35, %v6644_v5 }
 0x5f2   : > { %v3953_v60 = vmax.f32 %v3952_v37, 1e-12  ;;  %vm4100_vm13 = vcmp.eq.f32.partialorder %v6686_v58, inf  ;;  %v5068_v24 = vpop.eup %5067  ;;  %5079 = vrcp.f32 %v4181_v12  ;;  %vm4102_vm14 = vcmp.eq.f32.partialorder %v6686_v58, 0.0 }
 0x5f3   : > { %v3413_v30 = vsel %vm567_vm2, %v3412_v34, 0.0  ;;  %v3912_v0 = vmul.f32 %v6739_v63, %v6739_v63  ;;  %v5070_v28 = vpop.eup %5069  ;;  %5081 = vrcp.f32 %v3991_v26  ;;  %v4067_v15 = vmax.f32 %v4066_v25, 1e-12 }
 0x5f4   : > { %v4025_v53 = vsel %vm4024_vm9, %v6644_v5, %v4023_v33  ;;  %v4213_v42 = vmul.f32 %v5068_v24, %v6667_v3  ;;  %3414 = vadd.xlane.f32.xlu1 %v3413_v30  ;;  %v5072_v50 = vpop.eup %5071  ;;  %5083 = vrcp.f32 %v3953_v60  ;;  %v4103_v8 = vand.u32 2147483648, %v6686_v58 }
 0x5f5   : > { %v4028_v36 = vsel %vm4026_vm10, %v4027_v54, %v4025_v53  ;;  %v3913_v52 = vsel %vm567_vm2, %v3912_v0, 0.0  ;;  %v6770_v22 = vmul.f32 %v6669_v27, %v6338_v46  ;;  %v6773_v56 = vmul.f32 %v5056_v2, %v6364_v61 }
 0x5f6   : > { %v4029_v12 = vmax.f32 %v4028_v36, 1e-12  ;;  %v4215_v17 = vsel %vm4214_vm11, %v6667_v3, %v4213_v42  ;;  %3914 = vadd.xlane.f32.xlu0 %v3913_v52  ;;  %v6779_v54 = vmul.f32 %v6695_v40, %v6349_v49  ;;  %v6782_v41 = vmul.f32 %v5064_v31, %v6373_v9 }
 0x5f7   : > { %v5074_v13 = vpop.eup %5073  ;;  %v4218_v5 = vsel %vm4216_vm12, %v4217_v19, %v4215_v17  ;;  %v6785_v26 = vmul.f32 %v5062_v47, %v6342_v43  ;;  %5085 = vrcp.f32 %v4067_v15  ;;  %v3798_v61 = vmul.f32 %v6770_v22, %v6770_v22 }
 0x5f8   : > { %v4219_v46 = vmax.f32 %v4218_v5, 1e-12  ;;  %v4099_v27 = vmul.f32 %v5074_v13, %v6686_v58  ;;  %vm4252_vm15 = vcmp.eq.f32.partialorder %v6725_v10, inf  ;;  %v3608_v3 = vmul.f32 %v6773_v56, %v6773_v56 }
 0x5f9   : > { %v3646_v49 = vmul.f32 %v6779_v54, %v6779_v54  ;;  %v3684_v9 = vmul.f32 %v6782_v41, %v6782_v41  ;;  %v5076_v43 = vpop.eup %5075  ;;  %v4255_v2 = vand.u32 2147483648, %v6725_v10  ;;  %v3799_v19 = vsel %vm567_vm2, %v3798_v61, 0.0 }
 0x5fa   : > { %v4101_v40 = vsel %vm4100_vm13, %v6686_v58, %v4099_v27  ;;  %v6803_v47 = vmul.f32 %v5070_v28, %v6394_v16  ;;  %v5078_v31 = vpop.eup %5077  ;;  %5087 = vrcp.f32 %v4029_v12  ;;  %3800 = vadd.xlane.f32.xlu1 %v3799_v19  ;;  %v3609_v35 = vsel %vm567_vm2, %v3608_v3, 0.0 }
 0x5fb   : > { %v4104_v55 = vsel %vm4102_vm14, %v4103_v8, %v4101_v40  ;;  %v3874_v37 = vmul.f32 %v6785_v26, %v6785_v26  ;;  %5089 = vrcp.f32 %v4219_v46  ;;  %v4251_v34 = vmul.f32 %v5078_v31, %v6725_v10  ;;  %3610 = vadd.xlane.f32.xlu0 %v3609_v35 }
 0x5fc   : > { %v4105_v7 = vmax.f32 %v4104_v55, 1e-12  ;;  %v3647_v60 = vsel %vm567_vm2, %v3646_v49, 0.0  ;;  %v5080_v16 = vpop.eup %5079  ;;  %v3685_v25 = vsel %vm567_vm2, %v3684_v9, 0.0  ;;  %v3760_v58 = vmul.f32 %v6803_v47, %v6803_v47 }
 0x5fd   : > { %v6816_v33 = vmul.f32 %v5072_v50, %v6383_v45  ;;  %v6819_v24 = vmul.f32 %v5076_v43, %v6386_v59  ;;  %v5082_v30 = vpop.eup %5081  ;;  %v4253_v0 = vsel %vm4252_vm15, %v6725_v10, %v4251_v34  ;;  %vm4254_vm0 = vcmp.eq.f32.partialorder %v6725_v10, 0.0 }
 0x5fe   : > { %v5084_v28 = vpop.eup %5083  ;;  %5091 = vrcp.f32 %v4105_v7  ;;  %v4256_v15 = vsel %vm4254_vm0, %v4255_v2, %v4253_v0  ;;  %3648 = vadd.xlane.f32.xlu1 %v3647_v60  ;;  %v3875_v42 = vsel %vm567_vm2, %v3874_v37, 0.0  ;;  %v6829_v59 = vmul.f32 %v5080_v16, %v6388_v44 }
 0x5ff   : > { %v4257_v53 = vmax.f32 %v4256_v15, 1e-12  ;;  %3686 = vadd.xlane.f32.xlu0 %v3685_v25  ;;  %v3722_v45 = vmul.f32 %v6816_v33, %v6816_v33  ;;  %v3761_v50 = vsel %vm567_vm2, %v3760_v58, 0.0  ;;  %v4146_v36 = vmul.f32 %v6819_v24, %v6819_v24 }
 0x600   : > { %v6835_v10 = vmul.f32 %v5082_v30, %v6406_v21  ;;  %v4184_v12 = vmul.f32 %v6829_v59, %v6829_v59  ;;  %v6841_v44 = vmul.f32 %v5084_v28, %v6421_v23 }
 0x601   : > { %v5086_v8 = vpop.eup %5085  ;;  %5093 = vrcp.f32 %v4257_v53  ;;  %v3723_v52 = vsel %vm567_vm2, %v3722_v45, 0.0  ;;  %v4147_v13 = vsel %vm567_vm2, %v4146_v36, 0.0 }
 0x602   : > { %3876 = vadd.xlane.f32.xlu1 %v3875_v42  ;;  %v3994_v5 = vmul.f32 %v6835_v10, %v6835_v10  ;;  %v6847_v21 = vmul.f32 %v5086_v8, %v6434_v1  ;;  %v4185_v27 = vsel %vm567_vm2, %v4184_v12, 0.0  ;;  %v3956_v61 = vmul.f32 %v6841_v44, %v6841_v44 }
 0x603   : > { %3762 = vadd.xlane.f32.xlu0 %v3761_v50 }
 0x604   : > { %v5088_v17 = vpop.eup %5087  ;;  %v3995_v49 = vsel %vm567_vm2, %v3994_v5, 0.0  ;;  %v4070_v9 = vmul.f32 %v6847_v21, %v6847_v21  ;;  %v3957_v43 = vsel %vm567_vm2, %v3956_v61, 0.0 }
 0x605   : > { %v5090_v46 = vpop.eup %5089  ;;  %v6853_v23 = vmul.f32 %v5088_v17, %v6425_v20 }
 0x606   : > { %3724 = vadd.xlane.f32.xlu1 %v3723_v52  ;;  %v6859_v1 = vmul.f32 %v5090_v46, %v6396_v57  ;;  %v4071_v19 = vsel %vm567_vm2, %v4070_v9, 0.0 }
 0x607   : > { %4148 = vadd.xlane.f32.xlu0 %v4147_v13  ;;  %v4032_v40 = vmul.f32 %v6853_v23, %v6853_v23 }
 0x608   : > { %v5092_v3 = vpop.eup %5091  ;;  %v4222_v31 = vmul.f32 %v6859_v1, %v6859_v1 }
 0x609   : > { %v6865_v2 = vmul.f32 %v5092_v3, %v6441_v14  ;;  %v4033_v57 = vsel %vm567_vm2, %v4032_v40, 0.0 }
 0x60a   : > { %4186 = vadd.xlane.f32.xlu1 %v4185_v27  ;;  %v4223_v37 = vsel %vm567_vm2, %v4222_v31, 0.0 }
 0x60b   : > { %3996 = vadd.xlane.f32.xlu0 %v3995_v49  ;;  %v5094_v20 = vpop.eup %5093  ;;  %v4108_v55 = vmul.f32 %v6865_v2, %v6865_v2 }
 0x60c   : > { %v6874_v35 = vmul.f32 %v5094_v20, %v6414_v39 }
 0x60d   : > { %v4109_v14 = vsel %vm567_vm2, %v4108_v55, 0.0 }
 0x60e   : > { %3958 = vadd.xlane.f32.xlu1 %v3957_v43  ;;  %7246 = vst [vmem:[#allocation2_spill] sm:$0xff] %v6874_v35  ;;  %v4260_v7 = vmul.f32 %v6874_v35, %v6874_v35 }
 0x60f   : > { %4072 = vadd.xlane.f32.xlu0 %v4071_v19 }
 0x610   : > { %v4261_v34 = vsel %vm567_vm2, %v4260_v7, 0.0 }
 0x612   : > { %4034 = vadd.xlane.f32.xlu1 %v4033_v57 }
 0x613   : > { %4224 = vadd.xlane.f32.xlu0 %v4223_v37 }
 0x616   : > { %4110 = vadd.xlane.f32.xlu1 %v4109_v14 }
 0x61a   : > { %4262 = vadd.xlane.f32.xlu1 %v4261_v34 }
 0x650   : > { %v3453_v60 = vpop.xlane.xlu0 %3452 }
 0x651   : > { %v3454_v53 = vrot.slane %v3453_v60, 4 }
 0x653   : > { %v3455_v13 = vadd.f32 %v3454_v53, %v3453_v60 }
 0x655   : > { %v3456_v31 = vrot.slane %v3455_v13, 2 }
 0x658   : > { %v3491_v16 = vpop.xlane.xlu1 %3490 }
 0x659   : > { %v3492_v36 = vrot.slane %v3491_v16, 4 }
 0x65b   : > { %v3493_v61 = vadd.f32 %v3492_v36, %v3491_v16 }
 0x65d   : > { %v3494_v14 = vrot.slane %v3493_v61, 2 }
 0x65e   : > { %v3301_v25 = vpop.xlane.xlu0 %3300 }
 0x65f   : > { %v3302_v30 = vrot.slane %v3301_v25, 4  ;;  %v3495_v36 = vadd.f32 %v3494_v14, %v3493_v61 }
 0x661   : > { %v3303_v0 = vadd.f32 %v3302_v30, %v3301_v25 }
 0x663   : > { %v3304_v42 = vrot.slane %v3303_v0, 2 }
 0x664   : > { %v3377_v58 = vpop.xlane.xlu1 %3376  ;;  %v3529_v15 = vpop.xlane.xlu0 %3528 }
 0x665   : > { %v3378_v28 = vrot.slane %v3377_v58, 4  ;;  %v3530_v52 = vrot.slane %v3529_v15, 4  ;;  %v3305_v27 = vadd.f32 %v3304_v42, %v3303_v0  ;;  %v3457_v42 = vadd.f32 %v3456_v31, %v3455_v13 }
 0x667   : > { %v3379_v45 = vadd.f32 %v3378_v28, %v3377_v58  ;;  %v3531_v9 = vadd.f32 %v3530_v52, %v3529_v15  ;;  %v3306_v55 = vrot.slane %v3305_v27, 1 }
 0x669   : > { %v3380_v5 = vrot.slane %v3379_v45, 2  ;;  %v3532_v25 = vrot.slane %v3531_v9, 2  ;;  %v3307_v15 = vadd.f32 %v3306_v55, %v3305_v27 }
 0x66b   : > { %v3381_v37 = vadd.f32 %v3380_v5, %v3379_v45 }
 0x66d   : > { %v3382_v53 = vrot.slane %v3381_v37, 1 }
 0x670   : > { %v3567_v39 = vpop.xlane.xlu1 %3566 }
 0x671   : > { %v3568_v12 = vrot.slane %v3567_v39, 4 }
 0x673   : > { %v3569_v40 = vadd.f32 %v3568_v12, %v3567_v39 }
 0x675   : > { %v3570_v30 = vrot.slane %v3569_v40, 2 }
 0x677   : > { %v3264_v50 = vpop.xlane.xlu1 %3263 }
 0x678   : > { %v3265_v8 = vrot.slane %v3264_v50, 4  ;;  %v6881_v43 = vpop.xlane.xlu0 %3838 }
 0x67a   : > { %v3266_v17 = vadd.f32 %v3265_v8, %v3264_v50  ;;  %v3533_v8 = vadd.f32 %v3532_v25, %v3531_v9 }
 0x67c   : > { %v3267_v3 = vrot.slane %v3266_v17, 2  ;;  %v3534_v27 = vrot.slane %v3533_v8, 1 }
 0x67d   : > { %v3339_v46 = vpop.xlane.xlu1 %3338 }
 0x67e   : > { %v3340_v49 = vrot.slane %v3339_v46, 4  ;;  %v3268_v19 = vadd.f32 %v3267_v3, %v3266_v17  ;;  %v3571_v17 = vadd.f32 %v3570_v30, %v3569_v40  ;;  %v3458_v3 = vrot.slane %v3457_v42, 1 }
 0x680   : > { %v3341_v20 = vadd.f32 %v3340_v49, %v3339_v46  ;;  %v3269_v60 = vrot.slane %v3268_v19, 1  ;;  %v3383_v46 = vadd.f32 %v3382_v53, %v3381_v37  ;;  %v3572_v55 = vrot.slane %v3571_v17, 1 }
 0x681   : > { %v3415_v57 = vpop.xlane.xlu1 %3414 }
 0x682   : > { %v3342_v7 = vrot.slane %v3341_v20, 2  ;;  %v3416_v34 = vrot.slane %v3415_v57, 4  ;;  %v3270_v0 = vadd.f32 %v3269_v60, %v3268_v19 }
 0x683   : > { %v3915_v58 = vpop.xlane.xlu0 %3914 }
 0x684   : > { %v3417_v16 = vadd.f32 %v3416_v34, %v3415_v57  ;;  %v3343_v28 = vadd.f32 %v3342_v7, %v3341_v20  ;;  %4727 = vpush %v3270_v0  ;;  %v3496_v20 = vrot.slane %v3495_v36, 1  ;;  %v3459_v7 = vadd.f32 %v3458_v3, %v3457_v42 }
 0x685   : > { %4729 = vpush %v3307_v15  ;;  %v3840_v34 = vrot.slane %v6881_v43, 4  ;;  %v3916_v25 = vrot.slane %v3915_v58, 4  ;;  %v3573_v15 = vadd.f32 %v3572_v55, %v3571_v17 }
 0x686   : > { %v3418_v39 = vrot.slane %v3417_v16, 2  ;;  %v3344_v50 = vrot.slane %v3343_v28, 1  ;;  %v3497_v37 = vadd.f32 %v3496_v20, %v3495_v36 }
 0x687   : > { %v3801_v45 = vpop.xlane.xlu1 %3800  ;;  %v3917_v3 = vadd.f32 %v3916_v25, %v3915_v58 }
 0x688   : > { %v3345_v52 = vadd.f32 %v3344_v50, %v3343_v28  ;;  %v3419_v12 = vadd.f32 %v3418_v39, %v3417_v16  ;;  %v3611_v5 = vpop.xlane.xlu0 %3610  ;;  %v3802_v61 = vrot.slane %v3801_v45, 4  ;;  %v3535_v16 = vadd.f32 %v3534_v27, %v3533_v8 }
 0x689   : > { %v3612_v49 = vrot.slane %v3611_v5, 4 }
 0x68a   : > { %4731 = vpush %v3345_v52  ;;  %v3420_v19 = vrot.slane %v3419_v12, 1  ;;  %v3803_v39 = vadd.f32 %v3802_v61, %v3801_v45 }
 0x68b   : > { %4733 = vpush %v3383_v46  ;;  %v3613_v13 = vadd.f32 %v3612_v49, %v3611_v5  ;;  %v3649_v31 = vpop.xlane.xlu1 %3648 }
 0x68c   : > { %v3421_v57 = vadd.f32 %v3420_v19, %v3419_v12  ;;  %v3650_v14 = vrot.slane %v3649_v31, 4  ;;  %v3687_v9 = vpop.xlane.xlu0 %3686  ;;  %v3841_v12 = vadd.f32 %v3840_v34, %v6881_v43  ;;  %v3804_v17 = vrot.slane %v3803_v39, 2 }
 0x68d   : > { %v3614_v40 = vrot.slane %v3613_v13, 2  ;;  %v3688_v60 = vrot.slane %v3687_v9, 4  ;;  %v3918_v43 = vrot.slane %v3917_v3, 2 }
 0x68e   : > { %4735 = vpush %v3421_v57  ;;  %v3651_v30 = vadd.f32 %v3650_v14, %v3649_v31  ;;  %v3842_v55 = vrot.slane %v3841_v12, 2 }
 0x68f   : > { %4737 = vpush %v3459_v7  ;;  %v3689_v0 = vadd.f32 %v3688_v60, %v3687_v9  ;;  %v3877_v28 = vpop.xlane.xlu1 %3876  ;;  %v3615_v53 = vadd.f32 %v3614_v40, %v3613_v13 }
 0x690   : > { %4739 = vpush %v3497_v37  ;;  %v3652_v50 = vrot.slane %v3651_v30, 2  ;;  %v3878_v52 = vrot.slane %v3877_v28, 4  ;;  %v3763_v42 = vpop.xlane.xlu0 %3762 }
 0x691   : > { %4741 = vpush %v3535_v16  ;;  %v3690_v5 = vrot.slane %v3689_v0, 2  ;;  %v3764_v46 = vrot.slane %v3763_v42, 4  ;;  %v3616_v36 = vrot.slane %v3615_v53, 1 }
 0x692   : > { %4743 = vpush %v3573_v15  ;;  %v3879_v49 = vadd.f32 %v3878_v52, %v3877_v28  ;;  %v3653_v19 = vadd.f32 %v3652_v50, %v3651_v30  ;;  %v3805_v30 = vadd.f32 %v3804_v17, %v3803_v39 }
 0x693   : > { %v3765_v8 = vadd.f32 %v3764_v46, %v3763_v42  ;;  %v3725_v20 = vpop.xlane.xlu1 %3724  ;;  %v3617_v27 = vadd.f32 %v3616_v36, %v3615_v53  ;;  %v3691_v31 = vadd.f32 %v3690_v5, %v3689_v0  ;;  %v3843_v0 = vadd.f32 %v3842_v55, %v3841_v12 }
 0x694   : > { %v3726_v13 = vrot.slane %v3725_v20, 4  ;;  %v4149_v45 = vpop.xlane.xlu0 %4148  ;;  %v3654_v57 = vrot.slane %v3653_v19, 1  ;;  %v3880_v9 = vrot.slane %v3879_v49, 2  ;;  %v3919_v53 = vadd.f32 %v3918_v43, %v3917_v3 }
 0x695   : > { %v3766_v61 = vrot.slane %v3765_v8, 2  ;;  %4745 = vpush %v3617_v27  ;;  %v3692_v14 = vrot.slane %v3691_v31, 1  ;;  %v4150_v50 = vrot.slane %v4149_v45, 4  ;;  %v3806_v27 = vrot.slane %v3805_v30, 1 }
 0x696   : > { %v3727_v7 = vadd.f32 %v3726_v13, %v3725_v20  ;;  %v3655_v34 = vadd.f32 %v3654_v57, %v3653_v19  ;;  %v3881_v15 = vadd.f32 %v3880_v9, %v3879_v49  ;;  %v3844_v13 = vrot.slane %v3843_v0, 1 }
 0x697   : > { %v4187_v40 = vpop.xlane.xlu1 %4186  ;;  %v3693_v58 = vadd.f32 %v3692_v14, %v3691_v31  ;;  %v3767_v60 = vadd.f32 %v3766_v61, %v3765_v8  ;;  %v3920_v61 = vrot.slane %v3919_v53, 1  ;;  %v4151_v12 = vadd.f32 %v4150_v50, %v4149_v45 }
 0x698   : > { %v3728_v37 = vrot.slane %v3727_v7, 2  ;;  %4747 = vpush %v3655_v34  ;;  %v3997_v25 = vpop.xlane.xlu0 %3996  ;;  %v4188_v46 = vrot.slane %v4187_v40, 4  ;;  %v3882_v17 = vrot.slane %v3881_v15, 1  ;;  %v3807_v34 = vadd.f32 %v3806_v27, %v3805_v30 }
 0x699   : > { %v3998_v16 = vrot.slane %v3997_v25, 4  ;;  %4749 = vpush %v3693_v58  ;;  %v3768_v5 = vrot.slane %v3767_v60, 1  ;;  %v4152_v45 = vrot.slane %v4151_v12, 2 }
 0x69a   : > { %v3729_v28 = vadd.f32 %v3728_v37, %v3727_v7  ;;  %v4189_v43 = vadd.f32 %v4188_v46, %v4187_v40 }
 0x69b   : > { %v3999_v52 = vadd.f32 %v3998_v16, %v3997_v25  ;;  %v3959_v42 = vpop.xlane.xlu1 %3958  ;;  %v3769_v3 = vadd.f32 %v3768_v5, %v3767_v60  ;;  %v3845_v25 = vadd.f32 %v3844_v13, %v3843_v0  ;;  %v4153_v13 = vadd.f32 %v4152_v45, %v4151_v12 }
 0x69c   : > { %v3960_v36 = vrot.slane %v3959_v42, 4  ;;  %v4073_v19 = vpop.xlane.xlu0 %4072  ;;  %v3730_v20 = vrot.slane %v3729_v28, 1  ;;  %v4190_v5 = vrot.slane %v4189_v43, 2 }
 0x69d   : > { %v4000_v8 = vrot.slane %v3999_v52, 2  ;;  %v4074_v31 = vrot.slane %v4073_v19, 4 }
 0x69e   : > { %v3961_v57 = vadd.f32 %v3960_v36, %v3959_v42  ;;  %v3731_v39 = vadd.f32 %v3730_v20, %v3729_v28  ;;  %v3883_v28 = vadd.f32 %v3882_v17, %v3881_v15  ;;  %v3921_v42 = vadd.f32 %v3920_v61, %v3919_v53 }
 0x69f   : > { %v4075_v55 = vadd.f32 %v4074_v31, %v4073_v19  ;;  %v4035_v49 = vpop.xlane.xlu1 %4034  ;;  %v4001_v14 = vadd.f32 %v4000_v8, %v3999_v52  ;;  %v4191_v61 = vadd.f32 %v4190_v5, %v4189_v43 }
 0x6a0   : > { %v3962_v9 = vrot.slane %v3961_v57, 2  ;;  %v4036_v7 = vrot.slane %v4035_v49, 4  ;;  %4751 = vpush %v3731_v39  ;;  %v4225_v58 = vpop.xlane.xlu0 %4224 }
 0x6a1   : > { %v4076_v37 = vrot.slane %v4075_v55, 2  ;;  %4753 = vpush %v3769_v3  ;;  %v4226_v16 = vrot.slane %v4225_v58, 4  ;;  %v4002_v52 = vrot.slane %v4001_v14, 1 }
 0x6a2   : > { %v4037_v35 = vadd.f32 %v4036_v7, %v4035_v49  ;;  %4755 = vpush %v3807_v34  ;;  %v3963_v36 = vadd.f32 %v3962_v9, %v3961_v57  ;;  %v4154_v34 = vrot.slane %v4153_v13, 1 }
 0x6a3   : > { %4757 = vpush %v3845_v25  ;;  %v4227_v50 = vadd.f32 %v4226_v16, %v4225_v58  ;;  %v4111_v60 = vpop.xlane.xlu1 %4110  ;;  %v4077_v40 = vadd.f32 %v4076_v37, %v4075_v55  ;;  %v4003_v15 = vadd.f32 %v4002_v52, %v4001_v14 }
 0x6a4   : > { %v4038_v46 = vrot.slane %v4037_v35, 2  ;;  %4759 = vpush %v3883_v28  ;;  %v4112_v30 = vrot.slane %v4111_v60, 4  ;;  %v3964_v19 = vrot.slane %v3963_v36, 1  ;;  %v4155_v16 = vadd.f32 %v4154_v34, %v4153_v13 }
 0x6a5   : > { %4761 = vpush %v3921_v42  ;;  %v4228_v20 = vrot.slane %v4227_v50, 2  ;;  %v4078_v53 = vrot.slane %v4077_v40, 1 }
 0x6a6   : > { %v4113_v0 = vadd.f32 %v4112_v30, %v4111_v60  ;;  %v3965_v27 = vadd.f32 %v3964_v19, %v3963_v36  ;;  %v4039_v8 = vadd.f32 %v4038_v46, %v4037_v35  ;;  %v4192_v35 = vrot.slane %v4191_v61, 1 }
 0x6a7   : > { %v4263_v31 = vpop.xlane.xlu1 %4262  ;;  %v4229_v55 = vadd.f32 %v4228_v20, %v4227_v50  ;;  %v4079_v7 = vadd.f32 %v4078_v53, %v4077_v40 }
 0x6a8   : > { %v4114_v57 = vrot.slane %v4113_v0, 2  ;;  %v4264_v39 = vrot.slane %v4263_v31, 4  ;;  %4763 = vpush %v3965_v27  ;;  %v4040_v17 = vrot.slane %v4039_v8, 1  ;;  %v4193_v28 = vadd.f32 %v4192_v35, %v4191_v61 }
 0x6a9   : > { %4765 = vpush %v4003_v15  ;;  %v4230_v14 = vrot.slane %v4229_v55, 1 }
 0x6aa   : > { %v4265_v49 = vadd.f32 %v4264_v39, %v4263_v31  ;;  %v4041_v3 = vadd.f32 %v4040_v17, %v4039_v8  ;;  %v4115_v9 = vadd.f32 %v4114_v57, %v4113_v0 }
 0x6ab   : > { %v4231_v43 = vadd.f32 %v4230_v14, %v4229_v55 }
 0x6ac   : > { %v4266_v58 = vrot.slane %v4265_v49, 2  ;;  %4767 = vpush %v4041_v3  ;;  %v4116_v37 = vrot.slane %v4115_v9, 1 }
 0x6ad   : > { %4769 = vpush %v4079_v7 }
 0x6ae   : > { %v4267_v25 = vadd.f32 %v4266_v58, %v4265_v49  ;;  %v4117_v12 = vadd.f32 %v4116_v37, %v4115_v9 }
 0x6b0   : > { %4771 = vpush %v4117_v12  ;;  %v4268_v42 = vrot.slane %v4267_v25, 1 }
 0x6b1   : > { %4773 = vpush %v4155_v16 }
 0x6b2   : > { %4775 = vpush %v4193_v28  ;;  %v4269_v36 = vadd.f32 %v4268_v42, %v4267_v25 }
 0x6b3   : > { %4777 = vpush %v4231_v43 }
 0x6b4   : > { %4779 = vpush %v4269_v36 }
 0x6b5   : > { %s4728_s9 = spop %4727 }
 0x6b6   : > { %v3272_v45 = vstv %s4728_s9  ;;  %s4730_s10 = spop %4729 }
 0x6b7   : > { %5095 = vrsqrt.f32 %v3272_v45  ;;  %v3309_v50 = vstv %s4730_s10  ;;  %vm3275_vm1 = vcmp.eq.f32.partialorder %v3272_v45, inf  ;;  %vm3277_vm3 = vcmp.eq.f32.partialorder %v3272_v45, 0.0 }
 0x6b8   : > { %5097 = vrsqrt.f32 %v3309_v50  ;;  %v3278_v5 = vand.u32 2147483648, %v3272_v45  ;;  %vm3312_vm4 = vcmp.eq.f32.partialorder %v3309_v50, inf  ;;  %vm3314_vm5 = vcmp.eq.f32.partialorder %v3309_v50, 0.0 }
 0x6b9   : > { %v3315_v46 = vand.u32 2147483648, %v3309_v50 }
 0x6bb   : > { %s4732_s11 = spop %4731 }
 0x6bc   : > { %v3347_v60 = vstv %s4732_s11  ;;  %s4734_s12 = spop %4733 }
 0x6bd   : > { %5099 = vrsqrt.f32 %v3347_v60  ;;  %v6885_v52 = vstv %s4734_s12  ;;  %vm3350_vm6 = vcmp.eq.f32.partialorder %v3347_v60, inf  ;;  %vm3352_vm7 = vcmp.eq.f32.partialorder %v3347_v60, 0.0 }
 0x6be   : > { %5101 = vrsqrt.f32 %v6885_v52  ;;  %v3353_v0 = vand.u32 2147483648, %v3347_v60  ;;  %vm3388_vm8 = vcmp.eq.f32.partialorder %v6885_v52, inf  ;;  %vm3390_vm9 = vcmp.eq.f32.partialorder %v6885_v52, 0.0 }
 0x6bf   : > { %s4736_s13 = spop %4735  ;;  %v3391_v31 = vand.u32 2147483648, %v6885_v52 }
 0x6c0   : > { %v6888_v40 = vstv %s4736_s13  ;;  %s4738_s14 = spop %4737 }
 0x6c1   : > { %5103 = vrsqrt.f32 %v6888_v40  ;;  %s4740_s15 = spop %4739  ;;  %v6891_v30 = vstv %s4738_s14  ;;  %v5096_v20 = vpop.eup %5095  ;;  %vm3426_vm10 = vcmp.eq.f32.partialorder %v6888_v40, inf  ;;  %vm3428_vm11 = vcmp.eq.f32.partialorder %v6888_v40, 0.0 }
 0x6c2   : > { %v6893_v19 = vstv %s4740_s15  ;;  %s4742_s16 = spop %4741  ;;  %5105 = vrsqrt.f32 %v6891_v30  ;;  %v3274_v27 = vmul.f32 %v5096_v20, %v3272_v45  ;;  %v5098_v8 = vpop.eup %5097  ;;  %v3429_v61 = vand.u32 2147483648, %v6888_v40 }
 0x6c3   : > { %s4744_s17 = spop %4743  ;;  %5107 = vrsqrt.f32 %v6893_v19  ;;  %v6901_v15 = vstv %s4742_s16  ;;  %v3311_v57 = vmul.f32 %v5098_v8, %v3309_v50  ;;  %vm3464_vm12 = vcmp.eq.f32.partialorder %v6891_v30, inf }
 0x6c4   : > { %v6903_v53 = vstv %s4744_s17  ;;  %v3276_v13 = vsel %vm3275_vm1, %v3272_v45, %v3274_v27  ;;  %5109 = vrsqrt.f32 %v6901_v15  ;;  %vm3466_vm13 = vcmp.eq.f32.partialorder %v6891_v30, 0.0 }
 0x6c5   : > { %v3279_v17 = vsel %vm3277_vm3, %v3278_v5, %v3276_v13  ;;  %5111 = vrsqrt.f32 %v6903_v53  ;;  %v3313_v49 = vsel %vm3312_vm4, %v3309_v50, %v3311_v57  ;;  %v3467_v34 = vand.u32 2147483648, %v6891_v30 }
 0x6c6   : > { %s4746_s20 = spop %4745  ;;  %v3280_v55 = vmax.f32 %v3279_v17, 1e-12  ;;  %v3316_v7 = vsel %vm3314_vm5, %v3315_v46, %v3313_v49  ;;  %vm3502_vm14 = vcmp.eq.f32.partialorder %v6893_v19, inf  ;;  %vm3504_vm15 = vcmp.eq.f32.partialorder %v6893_v19, 0.0 }
 0x6c7   : > { %v5100_v39 = vpop.eup %5099  ;;  %v6917_v58 = vstv %s4746_s20  ;;  %v3317_v37 = vmax.f32 %v3316_v7, 1e-12  ;;  %v3505_v16 = vand.u32 2147483648, %v6893_v19  ;;  %vm3540_vm0 = vcmp.eq.f32.partialorder %v6901_v15, inf }
 0x6c8   : > { %v3349_v3 = vmul.f32 %v5100_v39, %v3347_v60  ;;  %v5102_v9 = vpop.eup %5101  ;;  %5113 = vrcp.f32 %v3280_v55  ;;  %vm3542_vm1 = vcmp.eq.f32.partialorder %v6901_v15, 0.0  ;;  %v3543_v27 = vand.u32 2147483648, %v6901_v15 }
 0x6c9   : > { %v3387_v14 = vmul.f32 %v5102_v9, %v6885_v52  ;;  %s4748_s21 = spop %4747  ;;  %5115 = vrsqrt.f32 %v6917_v58  ;;  %vm3578_vm3 = vcmp.eq.f32.partialorder %v6903_v53, inf  ;;  %v3581_v7 = vand.u32 2147483648, %v6903_v53 }
 0x6ca   : > { %v3351_v35 = vsel %vm3350_vm6, %v3347_v60, %v3349_v3  ;;  %5117 = vrcp.f32 %v3317_v37  ;;  %v6933_v50 = vstv %s4748_s21  ;;  %s4750_s22 = spop %4749  ;;  %vm3580_vm4 = vcmp.eq.f32.partialorder %v6903_v53, 0.0 }
 0x6cb   : > { %v5104_v25 = vpop.eup %5103  ;;  %v3354_v12 = vsel %vm3352_vm7, %v3353_v0, %v3351_v35  ;;  %v3389_v42 = vsel %vm3388_vm8, %v6885_v52, %v3387_v14  ;;  %v6948_v57 = vstv %s4750_s22  ;;  %vm3622_vm5 = vcmp.eq.f32.partialorder %v6917_v58, inf }
 0x6cc   : > { %v3355_v28 = vmax.f32 %v3354_v12, 1e-12  ;;  %v3425_v43 = vmul.f32 %v5104_v25, %v6888_v40  ;;  %v5106_v36 = vpop.eup %5105  ;;  %v3392_v45 = vsel %vm3390_vm9, %v3391_v31, %v3389_v42  ;;  %vm3624_vm6 = vcmp.eq.f32.partialorder %v6917_v58, 0.0 }
 0x6cd   : > { %v5108_v60 = vpop.eup %5107  ;;  %v3393_v5 = vmax.f32 %v3392_v45, 1e-12  ;;  %v3463_v20 = vmul.f32 %v5106_v36, %v6891_v30  ;;  %vm3660_vm7 = vcmp.eq.f32.partialorder %v6933_v50, inf  ;;  %vm3662_vm8 = vcmp.eq.f32.partialorder %v6933_v50, 0.0 }
 0x6ce   : > { %5119 = vrcp.f32 %v3355_v28  ;;  %v3427_v46 = vsel %vm3426_vm10, %v6888_v40, %v3425_v43  ;;  %v3501_v0 = vmul.f32 %v5108_v60, %v6893_v19  ;;  %v5110_v8 = vpop.eup %5109  ;;  %vm3698_vm9 = vcmp.eq.f32.partialorder %v6948_v57, inf }
 0x6cf   : > { %v3430_v52 = vsel %vm3428_vm11, %v3429_v61, %v3427_v46  ;;  %5121 = vrsqrt.f32 %v6933_v50  ;;  %v3465_v13 = vsel %vm3464_vm12, %v6891_v30, %v3463_v20  ;;  %v5112_v39 = vpop.eup %5111  ;;  %v3539_v61 = vmul.f32 %v5110_v8, %v6901_v15 }
 0x6d0   : > { %5123 = vrcp.f32 %v3393_v5  ;;  %v3431_v31 = vmax.f32 %v3430_v52, 1e-12  ;;  %v3468_v40 = vsel %vm3466_vm13, %v3467_v34, %v3465_v13  ;;  %v3503_v17 = vsel %vm3502_vm14, %v6893_v19, %v3501_v0 }
 0x6d1   : > { %v3469_v55 = vmax.f32 %v3468_v40, 1e-12  ;;  %v3506_v49 = vsel %vm3504_vm15, %v3505_v16, %v3503_v17  ;;  %v3577_v3 = vmul.f32 %v5112_v39, %v6903_v53  ;;  %s4752_s19 = spop %4751  ;;  %v3541_v30 = vsel %vm3540_vm0, %v6901_v15, %v3539_v61 }
 0x6d2   : > { %5125 = vrcp.f32 %v3431_v31  ;;  %v3507_v9 = vmax.f32 %v3506_v49, 1e-12  ;;  %v5114_v34 = vpop.eup %5113  ;;  %v3544_v19 = vsel %vm3542_vm1, %v3543_v27, %v3541_v30  ;;  %s4754_s27 = spop %4753  ;;  %v6976_v43 = vstv %s4752_s19 }
 0x6d3   : > { %5127 = vrsqrt.f32 %v6948_v57  ;;  %v3579_v37 = vsel %vm3578_vm3, %v6903_v53, %v3577_v3  ;;  %v5116_v35 = vpop.eup %5115  ;;  %v3282_v14 = vmul.f32 %v5114_v34, %v6674_v62  ;;  %v3545_v25 = vmax.f32 %v3544_v19, 1e-12  ;;  %s4756_s28 = spop %4755 }
 0x6d4   : > { %5129 = vrcp.f32 %v3469_v55  ;;  %v3582_v12 = vsel %vm3580_vm4, %v3581_v7, %v3579_v37  ;;  %v5118_v16 = vpop.eup %5117  ;;  %v3621_v42 = vmul.f32 %v5116_v35, %v6917_v58  ;;  %v3625_v62 = vand.u32 2147483648, %v6917_v58  ;;  %s4758_s29 = spop %4757 }
 0x6d5   : > { %5131 = vrcp.f32 %v3507_v9  ;;  %v3583_v28 = vmax.f32 %v3582_v12, 1e-12  ;;  %3283 = vst.msk [vmem:[%s6968_s26] sm:$0xff] %vm567_vm2, %v3282_v14  ;;  %v3319_v15 = vmul.f32 %v5118_v16, %v6513_v6  ;;  %v6985_v45 = vstv %s4754_s27  ;;  %s4760_s30 = spop %4759 }
 0x6d6   : > { %5133 = vrcp.f32 %v3545_v25  ;;  %v3623_v36 = vsel %vm3622_vm5, %v6917_v58, %v3621_v42  ;;  %v3663_v0 = vand.u32 2147483648, %v6933_v50  ;;  %v6998_v27 = vstv %s4756_s28  ;;  %s4762_s6 = spop %4761 }
 0x6d7   : > { %5135 = vrcp.f32 %v3583_v28  ;;  %4408 = vst.msk [vmem:[%s6968_s26 + $0x8] sm:$0xff] %vm567_vm2, %v3319_v15  ;;  %v3626_v5 = vsel %vm3624_vm6, %v3625_v62, %v3623_v36  ;;  %vm3700_vm10 = vcmp.eq.f32.partialorder %v6948_v57, 0.0  ;;  %vm3736_vm11 = vcmp.eq.f32.partialorder %v6976_v43, inf }
 0x6d8   : > { %v5120_v53 = vpop.eup %5119  ;;  %5137 = vrsqrt.f32 %v6976_v43  ;;  %v3627_v20 = vmax.f32 %v3626_v5, 1e-12  ;;  %vm3738_vm12 = vcmp.eq.f32.partialorder %v6976_v43, 0.0  ;;  %v7018_v49 = vstv %s4760_s30 }
 0x6d9   : > { %v5122_v60 = vpop.eup %5121  ;;  %v3357_v6 = vmul.f32 %v5120_v53, %v6705_v18  ;;  %5139 = vrsqrt.f32 %v6985_v45  ;;  %v7000_v18 = vstv %s4758_s29  ;;  %s4764_s7 = spop %4763  ;;  %v3739_v30 = vand.u32 2147483648, %v6976_v43 }
 0x6da   : > { %v5124_v46 = vpop.eup %5123  ;;  %v3659_v52 = vmul.f32 %v5122_v60, %v6933_v50  ;;  %5141 = vrcp.f32 %v3627_v20  ;;  %vm3774_vm13 = vcmp.eq.f32.partialorder %v6985_v45, inf  ;;  %vm3776_vm14 = vcmp.eq.f32.partialorder %v6985_v45, 0.0  ;;  %s4766_s8 = spop %4765 }
 0x6db   : > { %4409 = vst.msk [vmem:[%s6968_s26 + $0x10] sm:$0xff] %vm567_vm2, %v3357_v6  ;;  %v3395_v58 = vmul.f32 %v5124_v46, %v6563_v32  ;;  %5143 = vrsqrt.f32 %v6998_v27  ;;  %v7035_v37 = vstv %s4762_s6  ;;  %v7037_v35 = vstv %s4764_s7 }
 0x6dc   : > { %v5126_v8 = vpop.eup %5125  ;;  %v3661_v31 = vsel %vm3660_vm7, %v6933_v50, %v3659_v52  ;;  %v3701_v50 = vand.u32 2147483648, %v6948_v57  ;;  %5145 = vrsqrt.f32 %v7000_v18  ;;  %v3777_v25 = vand.u32 2147483648, %v6985_v45 }
 0x6dd   : > { %v5128_v13 = vpop.eup %5127  ;;  %4410 = vst.msk [vmem:[%s6968_s26 + $0x18] sm:$0xff] %vm567_vm2, %v3395_v58  ;;  %v3433_v32 = vmul.f32 %v5126_v8, %v6733_v29  ;;  %v3664_v39 = vsel %vm3662_vm8, %v3663_v0, %v3661_v31  ;;  %vm3812_vm15 = vcmp.eq.f32.partialorder %v6998_v27, inf  ;;  %vm3814_vm0 = vcmp.eq.f32.partialorder %v6998_v27, 0.0  ;;  %s4768_s9 = spop %4767 }
 0x6de   : > { %v5130_v40 = vpop.eup %5129  ;;  %v3665_v17 = vmax.f32 %v3664_v39, 1e-12  ;;  %v3697_v61 = vmul.f32 %v5128_v13, %v6948_v57  ;;  %v3815_v16 = vand.u32 2147483648, %v6998_v27  ;;  %vm3850_vm1 = vcmp.eq.f32.partialorder %v7000_v18, inf  ;;  %s4770_s10 = spop %4769 }
 0x6df   : > { %v5132_v55 = vpop.eup %5131  ;;  %4411 = vst.msk [vmem:[%s6968_s26 + $0x20] sm:$0xff] %vm567_vm2, %v3433_v32  ;;  %v3471_v29 = vmul.f32 %v5130_v40, %v6466_v51  ;;  %vm3852_vm3 = vcmp.eq.f32.partialorder %v7000_v18, 0.0  ;;  %v3853_v15 = vand.u32 2147483648, %v7000_v18  ;;  %vm3888_vm4 = vcmp.eq.f32.partialorder %v7018_v49, inf }
 0x6e0   : > { %v3509_v3 = vmul.f32 %v5132_v55, %v6490_v48  ;;  %5147 = vrcp.f32 %v3665_v17  ;;  %v3699_v9 = vsel %vm3698_vm9, %v6948_v57, %v3697_v61  ;;  %v5134_v7 = vpop.eup %5133  ;;  %v7059_v62 = vstv %s4766_s8 }
 0x6e1   : > { %4412 = vst.msk [vmem:[%s6968_s26 + $0x28] sm:$0xff] %vm567_vm2, %v3471_v29  ;;  %v3702_v51 = vsel %vm3700_vm10, %v3701_v50, %v3699_v9  ;;  %5149 = vrsqrt.f32 %v7018_v49  ;;  %v5136_v48 = vpop.eup %5135  ;;  %v3547_v34 = vmul.f32 %v5134_v7, %v6554_v38  ;;  %vm3890_vm5 = vcmp.eq.f32.partialorder %v7018_v49, 0.0  ;;  %s4772_s11 = spop %4771 }
 0x6e2   : > { %4413 = vst.msk [vmem:[%s6968_s26 + $0x30] sm:$0xff] %vm567_vm2, %v3509_v3  ;;  %v3703_v19 = vmax.f32 %v3702_v51, 1e-12  ;;  %v5138_v57 = vpop.eup %5137  ;;  %v3585_v14 = vmul.f32 %v5136_v48, %v6638_v11  ;;  %5151 = vrsqrt.f32 %v7035_v37  ;;  %v3891_v58 = vand.u32 2147483648, %v7018_v49  ;;  %s4774_s12 = spop %4773 }
 0x6e3   : > { %v5140_v12 = vpop.eup %5139  ;;  %4414 = vst.msk [vmem:[%s6968_s26 + $0x38] sm:$0xff] %vm567_vm2, %v3547_v34  ;;  %v3735_v38 = vmul.f32 %v5138_v57, %v6976_v43  ;;  %v7076_v0 = vstv %s4768_s9  ;;  %vm3926_vm6 = vcmp.eq.f32.partialorder %v7035_v37, inf  ;;  %v7082_v31 = vstv %s4770_s10  ;;  %s4776_s13 = spop %4775 }
 0x6e4   : > { %5153 = vrcp.f32 %v3703_v19  ;;  %4415 = vst.msk [vmem:[%s6968_s26 + $0x40] sm:$0xff] %vm567_vm2, %v3585_v14  ;;  %v3773_v11 = vmul.f32 %v5140_v12, %v6985_v45  ;;  %v5142_v28 = vpop.eup %5141  ;;  %vm3928_vm7 = vcmp.eq.f32.partialorder %v7035_v37, 0.0  ;;  %vm3970_vm8 = vcmp.eq.f32.partialorder %v7037_v35, inf  ;;  %s4778_s14 = spop %4777 }
 0x6e5   : > { %5155 = vrsqrt.f32 %v7037_v35  ;;  %v3737_v42 = vsel %vm3736_vm11, %v6976_v43, %v3735_v38  ;;  %v5144_v53 = vpop.eup %5143  ;;  %v3629_v36 = vmul.f32 %v5142_v28, %v6773_v56  ;;  %vm3972_vm9 = vcmp.eq.f32.partialorder %v7037_v35, 0.0  ;;  %s4780_s15 = spop %4779 }
 0x6e6   : > { %v3740_v60 = vsel %vm3738_vm12, %v3739_v30, %v3737_v42  ;;  %v3775_v6 = vsel %vm3774_vm13, %v6985_v45, %v3773_v11  ;;  %5157 = vrsqrt.f32 %v7059_v62  ;;  %v5146_v5 = vpop.eup %5145  ;;  %v3811_v52 = vmul.f32 %v5144_v53, %v6998_v27 }
 0x6e7   : > { %v3741_v46 = vmax.f32 %v3740_v60, 1e-12  ;;  %v3778_v20 = vsel %vm3776_vm14, %v3777_v25, %v3775_v6  ;;  %4416 = vst.msk [vmem:[%s6968_s26 + $0x48] sm:$0xff] %vm567_vm2, %v3629_v36  ;;  %v3849_v43 = vmul.f32 %v5146_v5, %v7000_v18  ;;  %v7112_v19 = vstv %s4772_s11 }
 0x6e8   : > { %v3779_v56 = vmax.f32 %v3778_v20, 1e-12  ;;  %v3813_v45 = vsel %vm3812_vm15, %v6998_v27, %v3811_v52  ;;  %v3929_v27 = vand.u32 2147483648, %v7035_v37  ;;  %vm4008_vm10 = vcmp.eq.f32.partialorder %v7059_v62, inf }
 0x6e9   : > { %5159 = vrcp.f32 %v3741_v46  ;;  %v3816_v39 = vsel %vm3814_vm0, %v3815_v16, %v3813_v45  ;;  %v3851_v40 = vsel %vm3850_vm1, %v7000_v18, %v3849_v43  ;;  %vm4010_vm11 = vcmp.eq.f32.partialorder %v7059_v62, 0.0 }
 0x6ea   : > { %v5148_v8 = vpop.eup %5147  ;;  %5161 = vrcp.f32 %v3779_v56  ;;  %v3817_v17 = vmax.f32 %v3816_v39, 1e-12  ;;  %v3854_v61 = vsel %vm3852_vm3, %v3853_v15, %v3851_v40  ;;  %v7129_v16 = vstv %s4774_s12 }
 0x6eb   : > { %v5150_v13 = vpop.eup %5149  ;;  %v3667_v32 = vmul.f32 %v5148_v8, %v6779_v54  ;;  %5163 = vrsqrt.f32 %v7076_v0  ;;  %v3855_v54 = vmax.f32 %v3854_v61, 1e-12  ;;  %v7132_v15 = vstv %s4776_s13 }
 0x6ec   : > { %v3887_v50 = vmul.f32 %v5150_v13, %v7018_v49  ;;  %v5152_v55 = vpop.eup %5151  ;;  %5165 = vrsqrt.f32 %v7082_v31  ;;  %vm4046_vm12 = vcmp.eq.f32.partialorder %v7076_v0, inf  ;;  %vm4048_vm13 = vcmp.eq.f32.partialorder %v7076_v0, 0.0 }
 0x6ed   : > { %4417 = vst.msk [vmem:[%s6968_s26 + $0x50] sm:$0xff] %vm567_vm2, %v3667_v32  ;;  %5167 = vrcp.f32 %v3817_v17  ;;  %v3925_v3 = vmul.f32 %v5152_v55, %v7035_v37  ;;  %vm4084_vm14 = vcmp.eq.f32.partialorder %v7082_v31, inf  ;;  %v7148_v52 = vstv %s4778_s14 }
 0x6ee   : > { %v5154_v29 = vpop.eup %5153  ;;  %v3889_v18 = vsel %vm3888_vm4, %v7018_v49, %v3887_v50  ;;  %5169 = vrcp.f32 %v3855_v54  ;;  %v3973_v49 = vand.u32 2147483648, %v7037_v35  ;;  %v4087_v8 = vand.u32 2147483648, %v7082_v31 }
 0x6ef   : > { %v5156_v9 = vpop.eup %5155  ;;  %v3705_v30 = vmul.f32 %v5154_v29, %v6782_v41  ;;  %v3892_v7 = vsel %vm3890_vm5, %v3891_v58, %v3889_v18  ;;  %v3927_v48 = vsel %vm3926_vm6, %v7035_v37, %v3925_v3  ;;  %5171 = vrsqrt.f32 %v7112_v19 }
 0x6f0   : > { %v3893_v51 = vmax.f32 %v3892_v7, 1e-12  ;;  %v3969_v34 = vmul.f32 %v5156_v9, %v7037_v35  ;;  %v5158_v57 = vpop.eup %5157  ;;  %v3930_v41 = vsel %vm3928_vm7, %v3929_v27, %v3927_v48  ;;  %v4011_v37 = vand.u32 2147483648, %v7059_v62 }
 0x6f1   : > { %4418 = vst.msk [vmem:[%s6968_s26 + $0x58] sm:$0xff] %vm567_vm2, %v3705_v30  ;;  %v3931_v14 = vmax.f32 %v3930_v41, 1e-12  ;;  %v4007_v12 = vmul.f32 %v5158_v57, %v7059_v62  ;;  %vm4086_vm15 = vcmp.eq.f32.partialorder %v7082_v31, 0.0  ;;  %v7163_v17 = vstv %s4780_s15 }
 0x6f2   : > { %5173 = vrcp.f32 %v3893_v51  ;;  %v3971_v25 = vsel %vm3970_vm8, %v7037_v35, %v3969_v34  ;;  %vm4122_vm0 = vcmp.eq.f32.partialorder %v7112_v19, inf  ;;  %vm4124_vm1 = vcmp.eq.f32.partialorder %v7112_v19, 0.0 }
 0x6f3   : > { %v3974_v38 = vsel %vm3972_vm9, %v3973_v49, %v3971_v25  ;;  %v5160_v11 = vpop.eup %5159  ;;  %5175 = vrcp.f32 %v3931_v14  ;;  %v4009_v42 = vsel %vm4008_vm10, %v7059_v62, %v4007_v12  ;;  %vm4160_vm3 = vcmp.eq.f32.partialorder %v7129_v16, inf }
 0x6f4   : > { %v3975_v28 = vmax.f32 %v3974_v38, 1e-12  ;;  %v5162_v53 = vpop.eup %5161  ;;  %v3743_v36 = vmul.f32 %v5160_v11, %v6816_v33  ;;  %v4012_v35 = vsel %vm4010_vm11, %v4011_v37, %v4009_v42  ;;  %5177 = vrsqrt.f32 %v7129_v16 }
 0x6f5   : > { %v5164_v60 = vpop.eup %5163  ;;  %v3781_v6 = vmul.f32 %v5162_v53, %v6803_v47  ;;  %v4013_v5 = vmax.f32 %v4012_v35, 1e-12  ;;  %v4049_v33 = vand.u32 2147483648, %v7076_v0  ;;  %v4163_v51 = vand.u32 2147483648, %v7129_v16 }
 0x6f6   : > { %5179 = vrcp.f32 %v3975_v28  ;;  %v5166_v46 = vpop.eup %5165  ;;  %4419 = vst.msk [vmem:[%s6968_s26 + $0x60] sm:$0xff] %vm567_vm2, %v3743_v36  ;;  %v4045_v62 = vmul.f32 %v5164_v60, %v7076_v0  ;;  %vm4162_vm4 = vcmp.eq.f32.partialorder %v7129_v16, 0.0  ;;  %vm4198_vm5 = vcmp.eq.f32.partialorder %v7132_v15, inf }
 0x6f7   : > { %5181 = vrsqrt.f32 %v7132_v15  ;;  %v5168_v20 = vpop.eup %5167  ;;  %4420 = vst.msk [vmem:[%s6968_s26 + $0x68] sm:$0xff] %vm567_vm2, %v3781_v6  ;;  %v4083_v47 = vmul.f32 %v5166_v46, %v7082_v31  ;;  %vm4200_vm6 = vcmp.eq.f32.partialorder %v7132_v15, 0.0  ;;  %vm4236_vm7 = vcmp.eq.f32.partialorder %v7148_v52, inf }
 0x6f8   : > { %5183 = vrcp.f32 %v4013_v5  ;;  %v5170_v56 = vpop.eup %5169  ;;  %v3819_v43 = vmul.f32 %v5168_v20, %v6770_v22  ;;  %v4047_v58 = vsel %vm4046_vm12, %v7076_v0, %v4045_v62  ;;  %v4239_v38 = vand.u32 2147483648, %v7148_v52 }
 0x6f9   : > { %5185 = vrsqrt.f32 %v7148_v52  ;;  %v3857_v45 = vmul.f32 %v5170_v56, %v6677_v4  ;;  %v4050_v13 = vsel %vm4048_vm13, %v4049_v33, %v4047_v58  ;;  %v4085_v32 = vsel %vm4084_vm14, %v7082_v31, %v4083_v47  ;;  %v5172_v39 = vpop.eup %5171 }
 0x6fa   : > { %4421 = vst.msk [vmem:[%s6968_s26 + $0x70] sm:$0xff] %vm567_vm2, %v3819_v43  ;;  %v4051_v22 = vmax.f32 %v4050_v13, 1e-12  ;;  %v4088_v40 = vsel %vm4086_vm15, %v4087_v8, %v4085_v32  ;;  %v4121_v4 = vmul.f32 %v5172_v39, %v7112_v19  ;;  %5187 = vrsqrt.f32 %v7163_v17 }
 0x6fb   : > { %4422 = vst.msk [vmem:[%s6968_s26 + $0x78] sm:$0xff] %vm567_vm2, %v3857_v45  ;;  %v4089_v50 = vmax.f32 %v4088_v40, 1e-12  ;;  %v4125_v31 = vand.u32 2147483648, %v7112_v19  ;;  %vm4238_vm8 = vcmp.eq.f32.partialorder %v7148_v52, 0.0  ;;  %vm4274_vm9 = vcmp.eq.f32.partialorder %v7163_v17, inf }
 0x6fc   : > { %v5174_v61 = vpop.eup %5173  ;;  %5189 = vrcp.f32 %v4051_v22  ;;  %v4123_v54 = vsel %vm4122_vm0, %v7112_v19, %v4121_v4  ;;  %v4277_v35 = vand.u32 2147483648, %v7163_v17  ;;  %vm4276_vm10 = vcmp.eq.f32.partialorder %v7163_v17, 0.0 }
 0x6fd   : > { %v3895_v0 = vmul.f32 %v5174_v61, %v6785_v26  ;;  %v5176_v55 = vpop.eup %5175  ;;  %5191 = vrcp.f32 %v4089_v50  ;;  %v4126_v18 = vsel %vm4124_vm1, %v4125_v31, %v4123_v54 }
 0x6fe   : > { %v5178_v27 = vpop.eup %5177  ;;  %v3933_v29 = vmul.f32 %v5176_v55, %v6739_v63  ;;  %v4127_v3 = vmax.f32 %v4126_v18, 1e-12 }
 0x6ff   : > { %4423 = vst.msk [vmem:[%s6968_s26 + $0x80] sm:$0xff] %vm567_vm2, %v3895_v0  ;;  %v4159_v9 = vmul.f32 %v5178_v27, %v7129_v16 }
 0x700   : > { %v5180_v26 = vpop.eup %5179  ;;  %4424 = vst.msk [vmem:[%s6968_s26 + $0x88] sm:$0xff] %vm567_vm2, %v3933_v29  ;;  %5193 = vrcp.f32 %v4127_v3 }
 0x701   : > { %v5182_v30 = vpop.eup %5181  ;;  %v3977_v7 = vmul.f32 %v5180_v26, %v6841_v44  ;;  %v4161_v63 = vsel %vm4160_vm3, %v7129_v16, %v4159_v9  ;;  %v4201_v44 = vand.u32 2147483648, %v7132_v15 }
 0x702   : > { %v5184_v48 = vpop.eup %5183  ;;  %v4197_v34 = vmul.f32 %v5182_v30, %v7132_v15  ;;  %v4164_v41 = vsel %vm4162_vm4, %v4163_v51, %v4161_v63 }
 0x703   : > { %v5186_v19 = vpop.eup %5185  ;;  %4425 = vst.msk [vmem:[%s6968_s26 + $0x90] sm:$0xff] %vm567_vm2, %v3977_v7  ;;  %v4015_v57 = vmul.f32 %v5184_v48, %v6835_v10  ;;  %v4165_v49 = vmax.f32 %v4164_v41, 1e-12 }
 0x704   : > { %v4199_v14 = vsel %vm4198_vm5, %v7132_v15, %v4197_v34  ;;  %v4235_v25 = vmul.f32 %v5186_v19, %v7148_v52  ;;  %v5188_v10 = vpop.eup %5187 }
 0x705   : > { %4426 = vst.msk [vmem:[%s6968_s26 + $0x98] sm:$0xff] %vm567_vm2, %v4015_v57  ;;  %v4202_v12 = vsel %vm4200_vm6, %v4201_v44, %v4199_v14  ;;  %5195 = vrcp.f32 %v4165_v49  ;;  %v4273_v42 = vmul.f32 %v5188_v10, %v7163_v17 }
 0x706   : > { %v4203_v37 = vmax.f32 %v4202_v12, 1e-12  ;;  %v4237_v16 = vsel %vm4236_vm7, %v7148_v52, %v4235_v25  ;;  %v5190_v11 = vpop.eup %5189 }
 0x707   : > { %v4240_v28 = vsel %vm4238_vm8, %v4239_v38, %v4237_v16  ;;  %v5192_v15 = vpop.eup %5191  ;;  %v4053_v53 = vmul.f32 %v5190_v11, %v6853_v23  ;;  %v4275_v6 = vsel %vm4274_vm9, %v7163_v17, %v4273_v42 }
 0x708   : > { %5197 = vrcp.f32 %v4203_v37  ;;  %v4241_v36 = vmax.f32 %v4240_v28, 1e-12  ;;  %v4091_v60 = vmul.f32 %v5192_v15, %v6847_v21  ;;  %v4278_v5 = vsel %vm4276_vm10, %v4277_v35, %v4275_v6 }
 0x709   : > { %4427 = vst.msk [vmem:[%s6968_s26 + $0xa0] sm:$0xff] %vm567_vm2, %v4053_v53  ;;  %v4279_v23 = vmax.f32 %v4278_v5, 1e-12 }
 0x70a   : > { %5199 = vrcp.f32 %v4241_v36  ;;  %4428 = vst.msk [vmem:[%s6968_s26 + $0xa8] sm:$0xff] %vm567_vm2, %v4091_v60  ;;  %v5194_v46 = vpop.eup %5193 }
 0x70b   : > { %v4129_v62 = vmul.f32 %v5194_v46, %v6865_v2  ;;  %5201 = vrcp.f32 %v4279_v23  ;;  %v7247_v2 = vld [vmem:[#allocation2_spill] sm:$0xff] }
 0x70d   : > { %4429 = vst.msk [vmem:[%s6968_s26 + $0xb0] sm:$0xff] %vm567_vm2, %v4129_v62 }
 0x70f   : > { %v5196_v21 = vpop.eup %5195 }
 0x710   : > { %v4167_v33 = vmul.f32 %v5196_v21, %v6819_v24 }
 0x712   : > { %v5198_v20 = vpop.eup %5197  ;;  %4430 = vst.msk [vmem:[%s6968_s26 + $0xb8] sm:$0xff] %vm567_vm2, %v4167_v33 }
 0x713   : > { %v4205_v47 = vmul.f32 %v5198_v20, %v6829_v59 }
 0x714   : > { %v5200_v52 = vpop.eup %5199 }
 0x715   : > { %4431 = vst.msk [vmem:[%s6968_s26 + $0xc0] sm:$0xff] %vm567_vm2, %v4205_v47  ;;  %v4243_v56 = vmul.f32 %v5200_v52, %v6859_v1  ;;  %v5202_v43 = vpop.eup %5201 }
 0x716   : > { %v4281_v58 = vmul.f32 %v5202_v43, %v7247_v2 }
 0x717   : > { %4432 = vst.msk [vmem:[%s6968_s26 + $0xc8] sm:$0xff] %vm567_vm2, %v4243_v56 }
 0x718   : > { %4433 = vst.msk [vmem:[%s6968_s26 + $0xd0] sm:$0xff] %vm567_vm2, %v4281_v58 }
 0x719 PF: > { %s15_s18 = sadd.s32 1, %s5209_s18  }
 0x71a   : > { %p12_p4 = scmp.ge.s32.totalorder %s15_s18, 4  }
 0x71c   :  { %14 = sbr.rel (!%p12_p4) target bundleno = 1 (0x1), region = 96 }

</bundles_post_ra>
